<compile_context>
chip_gen: v6e
topology: v6e:2x2x1
jax: 0.10.0
libtpu: 0.0.40
codegen_flags: <defaults>
</compile_context>

<pallas_src>
import functools
import math

import jax
import jax.numpy as jnp
from jax.experimental import pallas as pl
from jax.experimental.pallas import tpu as pltpu

BN_EPS = 1e-5
VMEM_LIMIT_BYTES = 48 * 1024 * 1024  # < v7x 64 MiB physical, > v5e 16 MiB default


# ----------------------------------------------------------------------------
# Padded-flat activation layout (pure-JAX glue; mostly free reshapes).
#
# A (H, W, C) activation is stored as (N, (H+3)*(W+2), C): the zero-padded
# image (1 top pad row, H data rows, 2 bottom guard rows, 1 left + 1 right pad
# column) flattened row-major.  With this layout a 3x3/stride-1 tap is a
# contiguous row slice of the flat slab at a static offset.
# ----------------------------------------------------------------------------
def to_stored(x_img):
    """(N, H, W, C) -> padded-flat (N, (H+3)*(W+2), C)."""
    n, h, w, c = x_img.shape
    xp = jnp.pad(x_img, ((0, 0), (1, 2), (1, 1), (0, 0)))
    return xp.reshape(n, (h + 3) * (w + 2), c)


def conv_input_phases(x_stored, h, w, c, stride):
    """Kernel inputs for a 3x3 conv, padding=1, stride in {1, 2}.

    Returns (phases, taps, ho, wo):
      phases: list of flat (N, Mph, C) arrays (1 for stride 1, 4 for stride 2)
      taps:   per (kh, kw) row-major, (phase_index, flat_row_offset) such that
              the tap value for virtual output index m (pitch wo+2) is
              phases[phase_index][m + flat_row_offset].
    """
    wp = w + 2
    if stride == 1:
        taps = [(0, kh * wp + kw) for kh in range(3) for kw in range(3)]
        return [x_stored], taps, h, w
    assert stride == 2
    ho, wo = (h + 1) // 2, (w + 1) // 2
    hph, wph = ho + 2, wo + 2
    x4 = x_stored.reshape(-1, h + 3, wp, c)
    x4 = jnp.pad(x4, ((0, 0), (0, 2 * hph - (h + 3)), (0, 2 * wph - wp), (0, 0)))
    phases = [x4[:, p::2, q::2, :].reshape(-1, hph * wph, c)
              for p in range(2) for q in range(2)]
    taps = [((kh % 2) * 2 + (kw % 2), (kh // 2) * wph + (kw // 2))
            for kh in range(3) for kw in range(3)]
    return phases, taps, ho, wo


# ----------------------------------------------------------------------------
# Pallas kernels
# ----------------------------------------------------------------------------
def _mask_junk_cols(z, wop, wo):
    # Virtual grid has pitch wop = wo+2; columns >= wo are junk (they become
    # the next layer's zero padding), force them to exactly 0.
    col = jax.lax.broadcasted_iota(jnp.int32, z.shape, 0) % wop
    return jnp.where(col < wo, z, 0.0)


def _store_padded(o_ref, z, wop, m, total):
    co = o_ref.shape[-1]
    o_ref[0, pl.ds(0, wop + 1), :] = jnp.zeros((wop + 1, co), o_ref.dtype)
    tail = total - (wop + 1 + m)
    o_ref[0, pl.ds(wop + 1 + m, tail), :] = jnp.zeros((tail, co), o_ref.dtype)
    o_ref[0, pl.ds(wop + 1, m), :] = z.astype(o_ref.dtype)


def _conv_bn_relu_kernel(*args, num_phases, taps, wop, wo, m, total):
    """Full 3x3 conv + (folded) BN + ReLU: 9 accumulated MXU matmuls."""
    phase_refs = args[:num_phases]
    w_ref, b_ref, o_ref = args[num_phases], args[num_phases + 1], args[num_phases + 2]
    acc = None
    for k, (p, off) in enumerate(taps):
        tap = phase_refs[p][0, pl.ds(off, m), :]                  # (M, Ci) bf16
        contrib = jnp.dot(tap, w_ref[k], preferred_element_type=jnp.float32)
        acc = contrib if acc is None else acc + contrib
    z = jnp.maximum(acc + b_ref[...], 0.0)
    z = _mask_junk_cols(z, wop, wo)
    _store_padded(o_ref, z, wop, m, total)


def _dw_pw_kernel(*args, num_phases, taps, wop, wo, m, total, pool):
    """Fused depthwise 3x3 (VPU, f32 acc) + BN + ReLU + pointwise 1x1 (MXU)
    + BN + ReLU; optional fused global average pool epilogue."""
    phase_refs = args[:num_phases]
    wd_ref, bd_ref, wp_ref, bp_ref, o_ref = args[num_phases:num_phases + 5]
    # 9-tap elementwise MAC, tree-accumulated.
    prods = [phase_refs[p][0, pl.ds(off, m), :].astype(jnp.float32) * wd_ref[k]
             for k, (p, off) in enumerate(taps)]
    while len(prods) > 1:
        nxt = [prods[i] + prods[i + 1] for i in range(0, len(prods) - 1, 2)]
        if len(prods) % 2:
            nxt.append(prods[-1])
        prods = nxt
    y = jnp.maximum(prods[0] + bd_ref[...], 0.0)                  # (M, Ci) f32
    z = jnp.dot(y.astype(jnp.bfloat16), wp_ref[...],
                preferred_element_type=jnp.float32)               # (M, Co) f32
    z = jnp.maximum(z + bp_ref[...], 0.0)
    z = _mask_junk_cols(z, wop, wo)
    if pool:
        # Junk columns are zero, so the plain row-sum equals the sum over
        # valid pixels; divide by Ho*Wo.
        ho = m // wop
        pooled = jnp.sum(z, axis=0, keepdims=True) * (1.0 / float(ho * wo))
        o_ref[...] = pooled.reshape(o_ref.shape)
    else:
        _store_padded(o_ref, z, wop, m, total)


def _linear_kernel(x_ref, w_ref, b_ref, o_ref):
    acc = jnp.dot(x_ref[...], w_ref[...], preferred_element_type=jnp.float32)
    o_ref[...] = (acc + b_ref[...]).astype(o_ref.dtype)


# ----------------------------------------------------------------------------
# pallas_call wrappers
# ----------------------------------------------------------------------------
def _phase_specs(phases):
    return [pl.BlockSpec((1,) + tuple(p.shape[1:]), lambda i: (i, 0, 0))
            for p in phases]


def conv_bn_relu(phases, taps, w, b, ho, wo, out_dtype=jnp.bfloat16):
    n = phases[0].shape[0]
    co = w.shape[-1]
    wop = wo + 2
    m = ho * wop
    total = (ho + 3) * wop
    kernel = functools.partial(_conv_bn_relu_kernel, num_phases=len(phases),
                               taps=taps, wop=wop, wo=wo, m=m, total=total)
    in_specs = _phase_specs(phases) + [
        pl.BlockSpec(w.shape, lambda i: (0, 0, 0)),
        pl.BlockSpec(b.shape, lambda i: (0, 0)),
    ]
    return pl.pallas_call(
        kernel,
        out_shape=jax.ShapeDtypeStruct((n, total, co), out_dtype),
        grid=(n,),
        in_specs=in_specs,
        out_specs=pl.BlockSpec((1, total, co), lambda i: (i, 0, 0)),
        compiler_params=pltpu.CompilerParams(
            dimension_semantics=("parallel",),
            vmem_limit_bytes=VMEM_LIMIT_BYTES),
    )(*phases, w, b)


def conv_dw_block(phases, taps, wd, bd, wp, bp, ho, wo, pool=False,
                  out_dtype=jnp.bfloat16):
    n = phases[0].shape[0]
    co = wp.shape[-1]
    wop = wo + 2
    m = ho * wop
    total = (ho + 3) * wop
    kernel = functools.partial(_dw_pw_kernel, num_phases=len(phases), taps=taps,
                               wop=wop, wo=wo, m=m, total=total, pool=pool)
    in_specs = _phase_specs(phases) + [
        pl.BlockSpec(wd.shape, lambda i: (0, 0, 0)),
        pl.BlockSpec(bd.shape, lambda i: (0, 0)),
        pl.BlockSpec(wp.shape, lambda i: (0, 0)),
        pl.BlockSpec(bp.shape, lambda i: (0, 0)),
    ]
    if pool:
        out_shape = jax.ShapeDtypeStruct((n, 1, co), jnp.float32)
        out_specs = pl.BlockSpec((1, 1, co), lambda i: (i, 0, 0))
    else:
        out_shape = jax.ShapeDtypeStruct((n, total, co), out_dtype)
        out_specs = pl.BlockSpec((1, total, co), lambda i: (i, 0, 0))
    return pl.pallas_call(
        kernel,
        out_shape=out_shape,
        grid=(n,),
        in_specs=in_specs,
        out_specs=out_specs,
        compiler_params=pltpu.CompilerParams(
            dimension_semantics=("parallel",),
            vmem_limit_bytes=VMEM_LIMIT_BYTES),
    )(*phases, wd, bd, wp, bp)


def linear(x, w, b):
    n, k = x.shape
    co = w.shape[-1]
    return pl.pallas_call(
        _linear_kernel,
        out_shape=jax.ShapeDtypeStruct((n, co), jnp.float32),
        grid=(1,),
        in_specs=[pl.BlockSpec((n, k), lambda i: (0, 0)),
                  pl.BlockSpec((k, co), lambda i: (0, 0)),
                  pl.BlockSpec((1, co), lambda i: (0, 0))],
        out_specs=pl.BlockSpec((n, co), lambda i: (0, 0)),
        compiler_params=pltpu.CompilerParams(
            dimension_semantics=("arbitrary",),
            vmem_limit_bytes=VMEM_LIMIT_BYTES),
    )(x, w, b.reshape(1, co))


# ----------------------------------------------------------------------------
# Config, parameter init (matches torch _initialize_weights), BN fold
# ----------------------------------------------------------------------------
def build_config(cfg, undersample=True):
    tmp = list(cfg)
    for i in range(len(tmp)):
        if (i == 3) | (i == 5) | (i == 7) | (i == 13):
            tmp[i] = (tmp[i], 2)
    conv1_cfg = (tmp[0], tmp[1], 2 if undersample else 1)
    dw_cfg = []
    in_planes = tmp[1]
    for x in tmp[2:]:
        out_planes = x if isinstance(x, int) else x[0]
        stride = 1 if isinstance(x, int) else x[1]
        dw_cfg.append((in_planes, out_planes, stride))
        in_planes = out_planes
    return conv1_cfg, dw_cfg


def init_params(key, cfg, n_class, k=3, undersample=True):
    conv1_cfg, dw_cfg = build_config(cfg, undersample)
    keys = iter(jax.random.split(key, 2 * len(dw_cfg) + 2))
    inp, oup, _ = conv1_cfg
    params = {"conv1_w": math.sqrt(2.0 / (k * k * oup)) * jax.random.normal(
        next(keys), (oup, inp, k, k), jnp.float32)}
    blocks = []
    for (ci, co, _) in dw_cfg:
        wd = math.sqrt(2.0 / (k * k * ci)) * jax.random.normal(
            next(keys), (ci, 1, k, k), jnp.float32)
        wp = math.sqrt(2.0 / (1 * 1 * co)) * jax.random.normal(
            next(keys), (co, ci, 1, 1), jnp.float32)
        blocks.append({"dw_w": wd, "pw_w": wp})
    params["blocks"] = blocks
    params["fc_w"] = 0.01 * jax.random.normal(next(keys), (n_class, cfg[-1]),
                                              jnp.float32)
    params["fc_b"] = jnp.zeros((n_class,), jnp.float32)
    return params, conv1_cfg, dw_cfg


def fold_params(params, conv1_cfg, dw_cfg, n_class, k=3):
    """Fold inference-mode BN (mean=0, var=1, gamma=1, beta=0) into weights."""
    scale = 1.0 / math.sqrt(1.0 + BN_EPS)
    inp, oup, _ = conv1_cfg
    fp = {}
    wc = jnp.transpose(params["conv1_w"], (2, 3, 1, 0)).reshape(k * k, inp, oup)
    fp["conv1_w"] = (wc * scale).astype(jnp.bfloat16)      # (9, Ci, Co)
    fp["conv1_b"] = jnp.zeros((1, oup), jnp.float32)
    blocks = []
    for blk, (ci, co, _) in zip(params["blocks"], dw_cfg):
        wd = jnp.transpose(blk["dw_w"][:, 0], (1, 2, 0)).reshape(k * k, 1, ci)
        wp = jnp.transpose(blk["pw_w"][:, :, 0, 0], (1, 0))
        blocks.append({
            "dw_w": (wd * scale).astype(jnp.float32),       # VPU MAC stays f32
            "dw_b": jnp.zeros((1, ci), jnp.float32),
            "pw_w": (wp * scale).astype(jnp.bfloat16),      # (Ci, Co)
            "pw_b": jnp.zeros((1, co), jnp.float32),
        })
    fp["blocks"] = blocks
    fp["fc_w"] = jnp.transpose(params["fc_w"], (1, 0)).astype(jnp.bfloat16)
    fp["fc_b"] = params["fc_b"].astype(jnp.float32)
    return fp


# ----------------------------------------------------------------------------
# Forward pass
# ----------------------------------------------------------------------------
def mobilenet_forward(fparams, x_nchw, conv1_cfg, dw_cfg, n_class, k=3):
    assert k == 3, "only 3x3 depthwise kernels are implemented"
    x = jnp.transpose(x_nchw, (0, 2, 3, 1)).astype(jnp.bfloat16)   # NHWC, bf16
    n, h, w, _ = x.shape
    stored = to_stored(x)

    # conv1: 3x3 conv + BN + ReLU, taps generated in-kernel.
    inp, oup, stride = conv1_cfg
    phases, taps, h, w = conv_input_phases(stored, h, w, inp, stride)
    stored = conv_bn_relu(phases, taps, fparams["conv1_w"], fparams["conv1_b"], h, w)

    # Fused conv_dw blocks; the last one also does the global average pool.
    nblk = len(dw_cfg)
    for bi, (blk, (ci, co, stride)) in enumerate(zip(fparams["blocks"], dw_cfg)):
        phases, taps, h, w = conv_input_phases(stored, h, w, ci, stride)
        stored = conv_dw_block(phases, taps, blk["dw_w"], blk["dw_b"],
                               blk["pw_w"], blk["pw_b"], h, w,
                               pool=(bi == nblk - 1))

    pooled = stored.reshape(n, -1).astype(jnp.bfloat16)            # (N, C_last)
    return linear(pooled, fparams["fc_w"], fparams["fc_b"])        # (N, n_class) f32


# ----------------------------------------------------------------------------
if __name__ == "__main__":
    # Small config consistent with the module: strides of 2 are inserted at
    # cfg indices 3 and 5 (and 7, 13 for longer cfgs), like the torch code.
    cfg = [3, 8, 16, 16, 32, 32, 64]
    n_class = 10

    key = jax.random.PRNGKey(0)
    pkey, xkey = jax.random.split(key)
    params, conv1_cfg, dw_cfg = init_params(pkey, cfg, n_class)
    fparams = fold_params(params, conv1_cfg, dw_cfg, n_class)

    x = jax.random.normal(xkey, (2, 3, 16, 16), jnp.float32)       # NCHW like PyTorch

    @jax.jit
    def fwd(fp, xin):
        return mobilenet_forward(fp, xin, conv1_cfg, dw_cfg, n_class)

    out = jax.block_until_ready(fwd(fparams, x))
    assert out.shape == (2, n_class), out.shape
    assert bool(jnp.all(jnp.isfinite(out)))
    print("KERNEL_OK")
</pallas_src>

<mosaic_0001>
module attributes {stable_mosaic.version = 11 : i64} {
  func.func @_conv_bn_relu_kernel(%arg0: i32, %arg1: memref<1x100x3xbf16, #tpu.memory_space<vmem>>, %arg2: memref<1x100x3xbf16, #tpu.memory_space<vmem>>, %arg3: memref<1x100x3xbf16, #tpu.memory_space<vmem>>, %arg4: memref<1x100x3xbf16, #tpu.memory_space<vmem>>, %arg5: memref<9x3x8xbf16, #tpu.memory_space<vmem>>, %arg6: memref<1x8xf32, #tpu.memory_space<vmem>>, %arg7: memref<1x110x8xbf16, #tpu.memory_space<vmem>>) attributes {dimension_semantics = [#tpu.dimension_semantics<parallel>], iteration_bounds = array<i64: 2>, scalar_prefetch = 0 : i64, scratch_operands = 0 : i64, tpu.core_type = #tpu.core_type<tc>, window_params = [{transform_indices = @transform_0, window_bounds = array<i64: 1, 100, 3>}, {transform_indices = @transform_1, window_bounds = array<i64: 1, 100, 3>}, {transform_indices = @transform_2, window_bounds = array<i64: 1, 100, 3>}, {transform_indices = @transform_3, window_bounds = array<i64: 1, 100, 3>}, {pipeline_mode = #tpu.pipeline_mode<synchronous>, transform_indices = @transform_4, window_bounds = array<i64: 9, 3, 8>}, {pipeline_mode = #tpu.pipeline_mode<synchronous>, transform_indices = @transform_5, window_bounds = array<i64: 1, 8>}, {transform_indices = @transform_6, window_bounds = array<i64: 1, 110, 8>}]} {
    %c0 = arith.constant 0 : index
    %c0_0 = arith.constant 0 : index
    %c0_1 = arith.constant 0 : index
    %0 = vector.load %arg1[%c0, %c0_0, %c0_1] : memref<1x100x3xbf16, #tpu.memory_space<vmem>>, vector<1x80x3xbf16>
    %1 = vector.shape_cast %0 : vector<1x80x3xbf16> to vector<80x3xbf16>
    %c0_2 = arith.constant 0 : index
    %c0_3 = arith.constant 0 : index
    %c0_4 = arith.constant 0 : index
    %2 = vector.load %arg5[%c0_2, %c0_3, %c0_4] : memref<9x3x8xbf16, #tpu.memory_space<vmem>>, vector<1x3x8xbf16>
    %3 = vector.shape_cast %2 : vector<1x3x8xbf16> to vector<3x8xbf16>
    %cst = arith.constant dense<0.000000e+00> : vector<80x8xf32>
    %4 = tpu.matmul %1, %3, %cst {dimension_numbers = #tpu.dot_dimension_numbers<[1], [0], [0], [1], [0, 0, 1, 1], [], []>} : vector<80x3xbf16>, vector<3x8xbf16>, vector<80x8xf32> -> vector<80x8xf32>
    %c0_5 = arith.constant 0 : index
    %c0_6 = arith.constant 0 : index
    %c0_7 = arith.constant 0 : index
    %5 = vector.load %arg2[%c0_5, %c0_6, %c0_7] : memref<1x100x3xbf16, #tpu.memory_space<vmem>>, vector<1x80x3xbf16>
    %6 = vector.shape_cast %5 : vector<1x80x3xbf16> to vector<80x3xbf16>
    %c1 = arith.constant 1 : index
    %c0_8 = arith.constant 0 : index
    %c0_9 = arith.constant 0 : index
    %7 = vector.load %arg5[%c1, %c0_8, %c0_9] : memref<9x3x8xbf16, #tpu.memory_space<vmem>>, vector<1x3x8xbf16>
    %8 = vector.shape_cast %7 : vector<1x3x8xbf16> to vector<3x8xbf16>
    %cst_10 = arith.constant dense<0.000000e+00> : vector<80x8xf32>
    %9 = tpu.matmul %6, %8, %cst_10 {dimension_numbers = #tpu.dot_dimension_numbers<[1], [0], [0], [1], [0, 0, 1, 1], [], []>} : vector<80x3xbf16>, vector<3x8xbf16>, vector<80x8xf32> -> vector<80x8xf32>
    %10 = arith.addf %4, %9 : vector<80x8xf32>
    %c0_11 = arith.constant 0 : index
    %c1_12 = arith.constant 1 : index
    %c0_13 = arith.constant 0 : index
    %11 = vector.load %arg1[%c0_11, %c1_12, %c0_13] : memref<1x100x3xbf16, #tpu.memory_space<vmem>>, vector<1x80x3xbf16>
    %12 = vector.shape_cast %11 : vector<1x80x3xbf16> to vector<80x3xbf16>
    %c2 = arith.constant 2 : index
    %c0_14 = arith.constant 0 : index
    %c0_15 = arith.constant 0 : index
    %13 = vector.load %arg5[%c2, %c0_14, %c0_15] : memref<9x3x8xbf16, #tpu.memory_space<vmem>>, vector<1x3x8xbf16>
    %14 = vector.shape_cast %13 : vector<1x3x8xbf16> to vector<3x8xbf16>
    %cst_16 = arith.constant dense<0.000000e+00> : vector<80x8xf32>
    %15 = tpu.matmul %12, %14, %cst_16 {dimension_numbers = #tpu.dot_dimension_numbers<[1], [0], [0], [1], [0, 0, 1, 1], [], []>} : vector<80x3xbf16>, vector<3x8xbf16>, vector<80x8xf32> -> vector<80x8xf32>
    %16 = arith.addf %10, %15 : vector<80x8xf32>
    %c0_17 = arith.constant 0 : index
    %c0_18 = arith.constant 0 : index
    %c0_19 = arith.constant 0 : index
    %17 = vector.load %arg3[%c0_17, %c0_18, %c0_19] : memref<1x100x3xbf16, #tpu.memory_space<vmem>>, vector<1x80x3xbf16>
    %18 = vector.shape_cast %17 : vector<1x80x3xbf16> to vector<80x3xbf16>
    %c3 = arith.constant 3 : index
    %c0_20 = arith.constant 0 : index
    %c0_21 = arith.constant 0 : index
    %19 = vector.load %arg5[%c3, %c0_20, %c0_21] : memref<9x3x8xbf16, #tpu.memory_space<vmem>>, vector<1x3x8xbf16>
    %20 = vector.shape_cast %19 : vector<1x3x8xbf16> to vector<3x8xbf16>
    %cst_22 = arith.constant dense<0.000000e+00> : vector<80x8xf32>
    %21 = tpu.matmul %18, %20, %cst_22 {dimension_numbers = #tpu.dot_dimension_numbers<[1], [0], [0], [1], [0, 0, 1, 1], [], []>} : vector<80x3xbf16>, vector<3x8xbf16>, vector<80x8xf32> -> vector<80x8xf32>
    %22 = arith.addf %16, %21 : vector<80x8xf32>
    %c0_23 = arith.constant 0 : index
    %c0_24 = arith.constant 0 : index
    %c0_25 = arith.constant 0 : index
    %23 = vector.load %arg4[%c0_23, %c0_24, %c0_25] : memref<1x100x3xbf16, #tpu.memory_space<vmem>>, vector<1x80x3xbf16>
    %24 = vector.shape_cast %23 : vector<1x80x3xbf16> to vector<80x3xbf16>
    %c4 = arith.constant 4 : index
    %c0_26 = arith.constant 0 : index
    %c0_27 = arith.constant 0 : index
    %25 = vector.load %arg5[%c4, %c0_26, %c0_27] : memref<9x3x8xbf16, #tpu.memory_space<vmem>>, vector<1x3x8xbf16>
    %26 = vector.shape_cast %25 : vector<1x3x8xbf16> to vector<3x8xbf16>
    %cst_28 = arith.constant dense<0.000000e+00> : vector<80x8xf32>
    %27 = tpu.matmul %24, %26, %cst_28 {dimension_numbers = #tpu.dot_dimension_numbers<[1], [0], [0], [1], [0, 0, 1, 1], [], []>} : vector<80x3xbf16>, vector<3x8xbf16>, vector<80x8xf32> -> vector<80x8xf32>
    %28 = arith.addf %22, %27 : vector<80x8xf32>
    %c0_29 = arith.constant 0 : index
    %c1_30 = arith.constant 1 : index
    %c0_31 = arith.constant 0 : index
    %29 = vector.load %arg3[%c0_29, %c1_30, %c0_31] : memref<1x100x3xbf16, #tpu.memory_space<vmem>>, vector<1x80x3xbf16>
    %30 = vector.shape_cast %29 : vector<1x80x3xbf16> to vector<80x3xbf16>
    %c5 = arith.constant 5 : index
    %c0_32 = arith.constant 0 : index
    %c0_33 = arith.constant 0 : index
    %31 = vector.load %arg5[%c5, %c0_32, %c0_33] : memref<9x3x8xbf16, #tpu.memory_space<vmem>>, vector<1x3x8xbf16>
    %32 = vector.shape_cast %31 : vector<1x3x8xbf16> to vector<3x8xbf16>
    %cst_34 = arith.constant dense<0.000000e+00> : vector<80x8xf32>
    %33 = tpu.matmul %30, %32, %cst_34 {dimension_numbers = #tpu.dot_dimension_numbers<[1], [0], [0], [1], [0, 0, 1, 1], [], []>} : vector<80x3xbf16>, vector<3x8xbf16>, vector<80x8xf32> -> vector<80x8xf32>
    %34 = arith.addf %28, %33 : vector<80x8xf32>
    %c0_35 = arith.constant 0 : index
    %c10 = arith.constant 10 : index
    %c0_36 = arith.constant 0 : index
    %35 = vector.load %arg1[%c0_35, %c10, %c0_36] : memref<1x100x3xbf16, #tpu.memory_space<vmem>>, vector<1x80x3xbf16>
    %36 = vector.shape_cast %35 : vector<1x80x3xbf16> to vector<80x3xbf16>
    %c6 = arith.constant 6 : index
    %c0_37 = arith.constant 0 : index
    %c0_38 = arith.constant 0 : index
    %37 = vector.load %arg5[%c6, %c0_37, %c0_38] : memref<9x3x8xbf16, #tpu.memory_space<vmem>>, vector<1x3x8xbf16>
    %38 = vector.shape_cast %37 : vector<1x3x8xbf16> to vector<3x8xbf16>
    %cst_39 = arith.constant dense<0.000000e+00> : vector<80x8xf32>
    %39 = tpu.matmul %36, %38, %cst_39 {dimension_numbers = #tpu.dot_dimension_numbers<[1], [0], [0], [1], [0, 0, 1, 1], [], []>} : vector<80x3xbf16>, vector<3x8xbf16>, vector<80x8xf32> -> vector<80x8xf32>
    %40 = arith.addf %34, %39 : vector<80x8xf32>
    %c0_40 = arith.constant 0 : index
    %c10_41 = arith.constant 10 : index
    %c0_42 = arith.constant 0 : index
    %41 = vector.load %arg2[%c0_40, %c10_41, %c0_42] : memref<1x100x3xbf16, #tpu.memory_space<vmem>>, vector<1x80x3xbf16>
    %42 = vector.shape_cast %41 : vector<1x80x3xbf16> to vector<80x3xbf16>
    %c7 = arith.constant 7 : index
    %c0_43 = arith.constant 0 : index
    %c0_44 = arith.constant 0 : index
    %43 = vector.load %arg5[%c7, %c0_43, %c0_44] : memref<9x3x8xbf16, #tpu.memory_space<vmem>>, vector<1x3x8xbf16>
    %44 = vector.shape_cast %43 : vector<1x3x8xbf16> to vector<3x8xbf16>
    %cst_45 = arith.constant dense<0.000000e+00> : vector<80x8xf32>
    %45 = tpu.matmul %42, %44, %cst_45 {dimension_numbers = #tpu.dot_dimension_numbers<[1], [0], [0], [1], [0, 0, 1, 1], [], []>} : vector<80x3xbf16>, vector<3x8xbf16>, vector<80x8xf32> -> vector<80x8xf32>
    %46 = arith.addf %40, %45 : vector<80x8xf32>
    %c0_46 = arith.constant 0 : index
    %c11 = arith.constant 11 : index
    %c0_47 = arith.constant 0 : index
    %47 = vector.load %arg1[%c0_46, %c11, %c0_47] : memref<1x100x3xbf16, #tpu.memory_space<vmem>>, vector<1x80x3xbf16>
    %48 = vector.shape_cast %47 : vector<1x80x3xbf16> to vector<80x3xbf16>
    %c8 = arith.constant 8 : index
    %c0_48 = arith.constant 0 : index
    %c0_49 = arith.constant 0 : index
    %49 = vector.load %arg5[%c8, %c0_48, %c0_49] : memref<9x3x8xbf16, #tpu.memory_space<vmem>>, vector<1x3x8xbf16>
    %50 = vector.shape_cast %49 : vector<1x3x8xbf16> to vector<3x8xbf16>
    %cst_50 = arith.constant dense<0.000000e+00> : vector<80x8xf32>
    %51 = tpu.matmul %48, %50, %cst_50 {dimension_numbers = #tpu.dot_dimension_numbers<[1], [0], [0], [1], [0, 0, 1, 1], [], []>} : vector<80x3xbf16>, vector<3x8xbf16>, vector<80x8xf32> -> vector<80x8xf32>
    %52 = arith.addf %46, %51 : vector<80x8xf32>
    %c0_51 = arith.constant 0 : index
    %c0_52 = arith.constant 0 : index
    %53 = vector.load %arg6[%c0_51, %c0_52] : memref<1x8xf32, #tpu.memory_space<vmem>>, vector<1x8xf32>
    %54 = vector.broadcast %53 : vector<1x8xf32> to vector<80x8xf32>
    %55 = arith.addf %52, %54 : vector<80x8xf32>
    %cst_53 = arith.constant 0.000000e+00 : f32
    %56 = vector.broadcast %cst_53 : f32 to vector<80x8xf32>
    %57 = arith.maximumf %55, %56 : vector<80x8xf32>
    %58 = tpu.iota {dimensions = array<i32: 0>} : vector<80x8xi32>
    %c10_i32 = arith.constant 10 : i32
    %c0_i32 = arith.constant 0 : i32
    %59 = arith.cmpi eq, %c10_i32, %c0_i32 : i32
    %c1_i32 = arith.constant 1 : i32
    %60 = arith.select %59, %c1_i32, %c10_i32 : i32
    %61 = vector.broadcast %60 : i32 to vector<80x8xi32>
    %62 = arith.remsi %58, %61 : vector<80x8xi32>
    %c0_i32_54 = arith.constant 0 : i32
    %63 = vector.broadcast %c0_i32_54 : i32 to vector<80x8xi32>
    %64 = arith.cmpi ne, %62, %63 : vector<80x8xi32>
    %c0_i32_55 = arith.constant 0 : i32
    %65 = vector.broadcast %c0_i32_55 : i32 to vector<80x8xi32>
    %66 = arith.cmpi slt, %62, %65 : vector<80x8xi32>
    %c0_i32_56 = arith.constant 0 : i32
    %67 = arith.cmpi slt, %60, %c0_i32_56 : i32
    %68 = vector.broadcast %67 : i1 to vector<80x8xi1>
    %69 = vector.broadcast %68 : vector<80x8xi1> to vector<80x8xi1>
    %70 = arith.xori %66, %69 : vector<80x8xi1>
    %71 = arith.andi %70, %64 : vector<80x8xi1>
    %72 = vector.broadcast %60 : i32 to vector<80x8xi32>
    %73 = arith.addi %62, %72 : vector<80x8xi32>
    %74 = arith.select %71, %73, %62 : vector<80x8xi1>, vector<80x8xi32>
    %c8_i32 = arith.constant 8 : i32
    %75 = vector.broadcast %c8_i32 : i32 to vector<80x8xi32>
    %76 = arith.cmpi slt, %74, %75 : vector<80x8xi32>
    %cst_57 = arith.constant 0.000000e+00 : f32
    %77 = vector.broadcast %cst_57 : f32 to vector<80x8xf32>
    %78 = arith.select %76, %57, %77 : vector<80x8xi1>, vector<80x8xf32>
    %cst_58 = arith.constant 0.000000e+00 : bf16
    %79 = vector.broadcast %cst_58 : bf16 to vector<11x8xbf16>
    %c0_59 = arith.constant 0 : index
    %c0_60 = arith.constant 0 : index
    %c0_61 = arith.constant 0 : index
    %80 = vector.load %arg7[%c0_59, %c0_60, %c0_61] : memref<1x110x8xbf16, #tpu.memory_space<vmem>>, vector<1x11x8xbf16>
    %81 = vector.shape_cast %80 : vector<1x11x8xbf16> to vector<11x8xbf16>
    %82 = vector.shape_cast %79 : vector<11x8xbf16> to vector<1x11x8xbf16>
    tpu.vector_store %arg7[%c0_59, %c0_60, %c0_61], %82 {strides = array<i32>} : memref<1x110x8xbf16, #tpu.memory_space<vmem>>, vector<1x11x8xbf16>,
    %cst_62 = arith.constant 0.000000e+00 : bf16
    %83 = vector.broadcast %cst_62 : bf16 to vector<19x8xbf16>
    %c0_63 = arith.constant 0 : index
    %c91 = arith.constant 91 : index
    %c0_64 = arith.constant 0 : index
    %84 = vector.load %arg7[%c0_63, %c91, %c0_64] : memref<1x110x8xbf16, #tpu.memory_space<vmem>>, vector<1x19x8xbf16>
    %85 = vector.shape_cast %84 : vector<1x19x8xbf16> to vector<19x8xbf16>
    %86 = vector.shape_cast %83 : vector<19x8xbf16> to vector<1x19x8xbf16>
    tpu.vector_store %arg7[%c0_63, %c91, %c0_64], %86 {strides = array<i32>} : memref<1x110x8xbf16, #tpu.memory_space<vmem>>, vector<1x19x8xbf16>,
    %87 = arith.truncf %78 : vector<80x8xf32> to vector<80x8xbf16>
    %c0_65 = arith.constant 0 : index
    %c11_66 = arith.constant 11 : index
    %c0_67 = arith.constant 0 : index
    %88 = vector.load %arg7[%c0_65, %c11_66, %c0_67] : memref<1x110x8xbf16, #tpu.memory_space<vmem>>, vector<1x80x8xbf16>
    %89 = vector.shape_cast %88 : vector<1x80x8xbf16> to vector<80x8xbf16>
    %90 = vector.shape_cast %87 : vector<80x8xbf16> to vector<1x80x8xbf16>
    tpu.vector_store %arg7[%c0_65, %c11_66, %c0_67], %90 {strides = array<i32>} : memref<1x110x8xbf16, #tpu.memory_space<vmem>>, vector<1x80x8xbf16>,
    return
  }
  func.func @transform_0(%arg0: i32) -> (i32, i32, i32) {
    %c0_i32 = arith.constant 0 : i32
    %c0_i32_0 = arith.constant 0 : i32
    %c0_i32_1 = arith.constant 0 : i32
    return %arg0, %c0_i32, %c0_i32_0 : i32, i32, i32
  }
  func.func @transform_1(%arg0: i32) -> (i32, i32, i32) {
    %c0_i32 = arith.constant 0 : i32
    %c0_i32_0 = arith.constant 0 : i32
    %c0_i32_1 = arith.constant 0 : i32
    return %arg0, %c0_i32, %c0_i32_0 : i32, i32, i32
  }
  func.func @transform_2(%arg0: i32) -> (i32, i32, i32) {
    %c0_i32 = arith.constant 0 : i32
    %c0_i32_0 = arith.constant 0 : i32
    %c0_i32_1 = arith.constant 0 : i32
    return %arg0, %c0_i32, %c0_i32_0 : i32, i32, i32
  }
  func.func @transform_3(%arg0: i32) -> (i32, i32, i32) {
    %c0_i32 = arith.constant 0 : i32
    %c0_i32_0 = arith.constant 0 : i32
    %c0_i32_1 = arith.constant 0 : i32
    return %arg0, %c0_i32, %c0_i32_0 : i32, i32, i32
  }
  func.func @transform_4(%arg0: i32) -> (i32, i32, i32) {
    %c0_i32 = arith.constant 0 : i32
    %c0_i32_0 = arith.constant 0 : i32
    %c0_i32_1 = arith.constant 0 : i32
    %c0_i32_2 = arith.constant 0 : i32
    return %c0_i32, %c0_i32_0, %c0_i32_1 : i32, i32, i32
  }
  func.func @transform_5(%arg0: i32) -> (i32, i32) {
    %c0_i32 = arith.constant 0 : i32
    %c0_i32_0 = arith.constant 0 : i32
    %c0_i32_1 = arith.constant 0 : i32
    return %c0_i32, %c0_i32_0 : i32, i32
  }
  func.func @transform_6(%arg0: i32) -> (i32, i32, i32) {
    %c0_i32 = arith.constant 0 : i32
    %c0_i32_0 = arith.constant 0 : i32
    %c0_i32_1 = arith.constant 0 : i32
    return %arg0, %c0_i32, %c0_i32_0 : i32, i32, i32
  }
}

module attributes {stable_mosaic.version = 11 : i64} {
  func.func @_dw_pw_kernel(%arg0: i32, %arg1: memref<1x110x8xbf16, #tpu.memory_space<vmem>>, %arg2: memref<9x1x8xf32, #tpu.memory_space<vmem>>, %arg3: memref<1x8xf32, #tpu.memory_space<vmem>>, %arg4: memref<8x16xbf16, #tpu.memory_space<vmem>>, %arg5: memref<1x16xf32, #tpu.memory_space<vmem>>, %arg6: memref<1x110x16xbf16, #tpu.memory_space<vmem>>) attributes {dimension_semantics = [#tpu.dimension_semantics<parallel>], iteration_bounds = array<i64: 2>, scalar_prefetch = 0 : i64, scratch_operands = 0 : i64, tpu.core_type = #tpu.core_type<tc>, window_params = [{transform_indices = @transform_0, window_bounds = array<i64: 1, 110, 8>}, {pipeline_mode = #tpu.pipeline_mode<synchronous>, transform_indices = @transform_1, window_bounds = array<i64: 9, 1, 8>}, {pipeline_mode = #tpu.pipeline_mode<synchronous>, transform_indices = @transform_2, window_bounds = array<i64: 1, 8>}, {pipeline_mode = #tpu.pipeline_mode<synchronous>, transform_indices = @transform_3, window_bounds = array<i64: 8, 16>}, {pipeline_mode = #tpu.pipeline_mode<synchronous>, transform_indices = @transform_4, window_bounds = array<i64: 1, 16>}, {transform_indices = @transform_5, window_bounds = array<i64: 1, 110, 16>}]} {
    %c0 = arith.constant 0 : index
    %c0_0 = arith.constant 0 : index
    %c0_1 = arith.constant 0 : index
    %0 = vector.load %arg1[%c0, %c0_0, %c0_1] : memref<1x110x8xbf16, #tpu.memory_space<vmem>>, vector<1x80x8xbf16>
    %1 = vector.shape_cast %0 : vector<1x80x8xbf16> to vector<80x8xbf16>
    %2 = arith.extf %1 : vector<80x8xbf16> to vector<80x8xf32>
    %c0_2 = arith.constant 0 : index
    %c0_3 = arith.constant 0 : index
    %c0_4 = arith.constant 0 : index
    %3 = vector.load %arg2[%c0_2, %c0_3, %c0_4] : memref<9x1x8xf32, #tpu.memory_space<vmem>>, vector<1x1x8xf32>
    %4 = vector.shape_cast %3 : vector<1x1x8xf32> to vector<1x8xf32>
    %5 = vector.broadcast %4 : vector<1x8xf32> to vector<80x8xf32>
    %6 = arith.mulf %2, %5 : vector<80x8xf32>
    %c0_5 = arith.constant 0 : index
    %c1 = arith.constant 1 : index
    %c0_6 = arith.constant 0 : index
    %7 = vector.load %arg1[%c0_5, %c1, %c0_6] : memref<1x110x8xbf16, #tpu.memory_space<vmem>>, vector<1x80x8xbf16>
    %8 = vector.shape_cast %7 : vector<1x80x8xbf16> to vector<80x8xbf16>
    %9 = arith.extf %8 : vector<80x8xbf16> to vector<80x8xf32>
    %c1_7 = arith.constant 1 : index
    %c0_8 = arith.constant 0 : index
    %c0_9 = arith.constant 0 : index
    %10 = vector.load %arg2[%c1_7, %c0_8, %c0_9] : memref<9x1x8xf32, #tpu.memory_space<vmem>>, vector<1x1x8xf32>
    %11 = vector.shape_cast %10 : vector<1x1x8xf32> to vector<1x8xf32>
    %12 = vector.broadcast %11 : vector<1x8xf32> to vector<80x8xf32>
    %13 = arith.mulf %9, %12 : vector<80x8xf32>
    %c0_10 = arith.constant 0 : index
    %c2 = arith.constant 2 : index
    %c0_11 = arith.constant 0 : index
    %14 = vector.load %arg1[%c0_10, %c2, %c0_11] : memref<1x110x8xbf16, #tpu.memory_space<vmem>>, vector<1x80x8xbf16>
    %15 = vector.shape_cast %14 : vector<1x80x8xbf16> to vector<80x8xbf16>
    %16 = arith.extf %15 : vector<80x8xbf16> to vector<80x8xf32>
    %c2_12 = arith.constant 2 : index
    %c0_13 = arith.constant 0 : index
    %c0_14 = arith.constant 0 : index
    %17 = vector.load %arg2[%c2_12, %c0_13, %c0_14] : memref<9x1x8xf32, #tpu.memory_space<vmem>>, vector<1x1x8xf32>
    %18 = vector.shape_cast %17 : vector<1x1x8xf32> to vector<1x8xf32>
    %19 = vector.broadcast %18 : vector<1x8xf32> to vector<80x8xf32>
    %20 = arith.mulf %16, %19 : vector<80x8xf32>
    %c0_15 = arith.constant 0 : index
    %c10 = arith.constant 10 : index
    %c0_16 = arith.constant 0 : index
    %21 = vector.load %arg1[%c0_15, %c10, %c0_16] : memref<1x110x8xbf16, #tpu.memory_space<vmem>>, vector<1x80x8xbf16>
    %22 = vector.shape_cast %21 : vector<1x80x8xbf16> to vector<80x8xbf16>
    %23 = arith.extf %22 : vector<80x8xbf16> to vector<80x8xf32>
    %c3 = arith.constant 3 : index
    %c0_17 = arith.constant 0 : index
    %c0_18 = arith.constant 0 : index
    %24 = vector.load %arg2[%c3, %c0_17, %c0_18] : memref<9x1x8xf32, #tpu.memory_space<vmem>>, vector<1x1x8xf32>
    %25 = vector.shape_cast %24 : vector<1x1x8xf32> to vector<1x8xf32>
    %26 = vector.broadcast %25 : vector<1x8xf32> to vector<80x8xf32>
    %27 = arith.mulf %23, %26 : vector<80x8xf32>
    %c0_19 = arith.constant 0 : index
    %c11 = arith.constant 11 : index
    %c0_20 = arith.constant 0 : index
    %28 = vector.load %arg1[%c0_19, %c11, %c0_20] : memref<1x110x8xbf16, #tpu.memory_space<vmem>>, vector<1x80x8xbf16>
    %29 = vector.shape_cast %28 : vector<1x80x8xbf16> to vector<80x8xbf16>
    %30 = arith.extf %29 : vector<80x8xbf16> to vector<80x8xf32>
    %c4 = arith.constant 4 : index
    %c0_21 = arith.constant 0 : index
    %c0_22 = arith.constant 0 : index
    %31 = vector.load %arg2[%c4, %c0_21, %c0_22] : memref<9x1x8xf32, #tpu.memory_space<vmem>>, vector<1x1x8xf32>
    %32 = vector.shape_cast %31 : vector<1x1x8xf32> to vector<1x8xf32>
    %33 = vector.broadcast %32 : vector<1x8xf32> to vector<80x8xf32>
    %34 = arith.mulf %30, %33 : vector<80x8xf32>
    %c0_23 = arith.constant 0 : index
    %c12 = arith.constant 12 : index
    %c0_24 = arith.constant 0 : index
    %35 = vector.load %arg1[%c0_23, %c12, %c0_24] : memref<1x110x8xbf16, #tpu.memory_space<vmem>>, vector<1x80x8xbf16>
    %36 = vector.shape_cast %35 : vector<1x80x8xbf16> to vector<80x8xbf16>
    %37 = arith.extf %36 : vector<80x8xbf16> to vector<80x8xf32>
    %c5 = arith.constant 5 : index
    %c0_25 = arith.constant 0 : index
    %c0_26 = arith.constant 0 : index
    %38 = vector.load %arg2[%c5, %c0_25, %c0_26] : memref<9x1x8xf32, #tpu.memory_space<vmem>>, vector<1x1x8xf32>
    %39 = vector.shape_cast %38 : vector<1x1x8xf32> to vector<1x8xf32>
    %40 = vector.broadcast %39 : vector<1x8xf32> to vector<80x8xf32>
    %41 = arith.mulf %37, %40 : vector<80x8xf32>
    %c0_27 = arith.constant 0 : index
    %c20 = arith.constant 20 : index
    %c0_28 = arith.constant 0 : index
    %42 = vector.load %arg1[%c0_27, %c20, %c0_28] : memref<1x110x8xbf16, #tpu.memory_space<vmem>>, vector<1x80x8xbf16>
    %43 = vector.shape_cast %42 : vector<1x80x8xbf16> to vector<80x8xbf16>
    %44 = arith.extf %43 : vector<80x8xbf16> to vector<80x8xf32>
    %c6 = arith.constant 6 : index
    %c0_29 = arith.constant 0 : index
    %c0_30 = arith.constant 0 : index
    %45 = vector.load %arg2[%c6, %c0_29, %c0_30] : memref<9x1x8xf32, #tpu.memory_space<vmem>>, vector<1x1x8xf32>
    %46 = vector.shape_cast %45 : vector<1x1x8xf32> to vector<1x8xf32>
    %47 = vector.broadcast %46 : vector<1x8xf32> to vector<80x8xf32>
    %48 = arith.mulf %44, %47 : vector<80x8xf32>
    %c0_31 = arith.constant 0 : index
    %c21 = arith.constant 21 : index
    %c0_32 = arith.constant 0 : index
    %49 = vector.load %arg1[%c0_31, %c21, %c0_32] : memref<1x110x8xbf16, #tpu.memory_space<vmem>>, vector<1x80x8xbf16>
    %50 = vector.shape_cast %49 : vector<1x80x8xbf16> to vector<80x8xbf16>
    %51 = arith.extf %50 : vector<80x8xbf16> to vector<80x8xf32>
    %c7 = arith.constant 7 : index
    %c0_33 = arith.constant 0 : index
    %c0_34 = arith.constant 0 : index
    %52 = vector.load %arg2[%c7, %c0_33, %c0_34] : memref<9x1x8xf32, #tpu.memory_space<vmem>>, vector<1x1x8xf32>
    %53 = vector.shape_cast %52 : vector<1x1x8xf32> to vector<1x8xf32>
    %54 = vector.broadcast %53 : vector<1x8xf32> to vector<80x8xf32>
    %55 = arith.mulf %51, %54 : vector<80x8xf32>
    %c0_35 = arith.constant 0 : index
    %c22 = arith.constant 22 : index
    %c0_36 = arith.constant 0 : index
    %56 = vector.load %arg1[%c0_35, %c22, %c0_36] : memref<1x110x8xbf16, #tpu.memory_space<vmem>>, vector<1x80x8xbf16>
    %57 = vector.shape_cast %56 : vector<1x80x8xbf16> to vector<80x8xbf16>
    %58 = arith.extf %57 : vector<80x8xbf16> to vector<80x8xf32>
    %c8 = arith.constant 8 : index
    %c0_37 = arith.constant 0 : index
    %c0_38 = arith.constant 0 : index
    %59 = vector.load %arg2[%c8, %c0_37, %c0_38] : memref<9x1x8xf32, #tpu.memory_space<vmem>>, vector<1x1x8xf32>
    %60 = vector.shape_cast %59 : vector<1x1x8xf32> to vector<1x8xf32>
    %61 = vector.broadcast %60 : vector<1x8xf32> to vector<80x8xf32>
    %62 = arith.mulf %58, %61 : vector<80x8xf32>
    %63 = arith.addf %6, %13 : vector<80x8xf32>
    %64 = arith.addf %20, %27 : vector<80x8xf32>
    %65 = arith.addf %34, %41 : vector<80x8xf32>
    %66 = arith.addf %48, %55 : vector<80x8xf32>
    %67 = arith.addf %63, %64 : vector<80x8xf32>
    %68 = arith.addf %65, %66 : vector<80x8xf32>
    %69 = arith.addf %67, %68 : vector<80x8xf32>
    %70 = arith.addf %69, %62 : vector<80x8xf32>
    %c0_39 = arith.constant 0 : index
    %c0_40 = arith.constant 0 : index
    %71 = vector.load %arg3[%c0_39, %c0_40] : memref<1x8xf32, #tpu.memory_space<vmem>>, vector<1x8xf32>
    %72 = vector.broadcast %71 : vector<1x8xf32> to vector<80x8xf32>
    %73 = arith.addf %70, %72 : vector<80x8xf32>
    %cst = arith.constant 0.000000e+00 : f32
    %74 = vector.broadcast %cst : f32 to vector<80x8xf32>
    %75 = arith.maximumf %73, %74 : vector<80x8xf32>
    %76 = arith.truncf %75 : vector<80x8xf32> to vector<80x8xbf16>
    %c0_41 = arith.constant 0 : index
    %c0_42 = arith.constant 0 : index
    %77 = vector.load %arg4[%c0_41, %c0_42] : memref<8x16xbf16, #tpu.memory_space<vmem>>, vector<8x16xbf16>
    %cst_43 = arith.constant dense<0.000000e+00> : vector<80x16xf32>
    %78 = tpu.matmul %76, %77, %cst_43 {dimension_numbers = #tpu.dot_dimension_numbers<[1], [0], [0], [1], [0, 0, 1, 1], [], []>} : vector<80x8xbf16>, vector<8x16xbf16>, vector<80x16xf32> -> vector<80x16xf32>
    %c0_44 = arith.constant 0 : index
    %c0_45 = arith.constant 0 : index
    %79 = vector.load %arg5[%c0_44, %c0_45] : memref<1x16xf32, #tpu.memory_space<vmem>>, vector<1x16xf32>
    %80 = vector.broadcast %79 : vector<1x16xf32> to vector<80x16xf32>
    %81 = arith.addf %78, %80 : vector<80x16xf32>
    %cst_46 = arith.constant 0.000000e+00 : f32
    %82 = vector.broadcast %cst_46 : f32 to vector<80x16xf32>
    %83 = arith.maximumf %81, %82 : vector<80x16xf32>
    %84 = tpu.iota {dimensions = array<i32: 0>} : vector<80x16xi32>
    %c10_i32 = arith.constant 10 : i32
    %c0_i32 = arith.constant 0 : i32
    %85 = arith.cmpi eq, %c10_i32, %c0_i32 : i32
    %c1_i32 = arith.constant 1 : i32
    %86 = arith.select %85, %c1_i32, %c10_i32 : i32
    %87 = vector.broadcast %86 : i32 to vector<80x16xi32>
    %88 = arith.remsi %84, %87 : vector<80x16xi32>
    %c0_i32_47 = arith.constant 0 : i32
    %89 = vector.broadcast %c0_i32_47 : i32 to vector<80x16xi32>
    %90 = arith.cmpi ne, %88, %89 : vector<80x16xi32>
    %c0_i32_48 = arith.constant 0 : i32
    %91 = vector.broadcast %c0_i32_48 : i32 to vector<80x16xi32>
    %92 = arith.cmpi slt, %88, %91 : vector<80x16xi32>
    %c0_i32_49 = arith.constant 0 : i32
    %93 = arith.cmpi slt, %86, %c0_i32_49 : i32
    %94 = vector.broadcast %93 : i1 to vector<80x16xi1>
    %95 = vector.broadcast %94 : vector<80x16xi1> to vector<80x16xi1>
    %96 = arith.xori %92, %95 : vector<80x16xi1>
    %97 = arith.andi %96, %90 : vector<80x16xi1>
    %98 = vector.broadcast %86 : i32 to vector<80x16xi32>
    %99 = arith.addi %88, %98 : vector<80x16xi32>
    %100 = arith.select %97, %99, %88 : vector<80x16xi1>, vector<80x16xi32>
    %c8_i32 = arith.constant 8 : i32
    %101 = vector.broadcast %c8_i32 : i32 to vector<80x16xi32>
    %102 = arith.cmpi slt, %100, %101 : vector<80x16xi32>
    %cst_50 = arith.constant 0.000000e+00 : f32
    %103 = vector.broadcast %cst_50 : f32 to vector<80x16xf32>
    %104 = arith.select %102, %83, %103 : vector<80x16xi1>, vector<80x16xf32>
    %cst_51 = arith.constant 0.000000e+00 : bf16
    %105 = vector.broadcast %cst_51 : bf16 to vector<11x16xbf16>
    %c0_52 = arith.constant 0 : index
    %c0_53 = arith.constant 0 : index
    %c0_54 = arith.constant 0 : index
    %106 = vector.load %arg6[%c0_52, %c0_53, %c0_54] : memref<1x110x16xbf16, #tpu.memory_space<vmem>>, vector<1x11x16xbf16>
    %107 = vector.shape_cast %106 : vector<1x11x16xbf16> to vector<11x16xbf16>
    %108 = vector.shape_cast %105 : vector<11x16xbf16> to vector<1x11x16xbf16>
    tpu.vector_store %arg6[%c0_52, %c0_53, %c0_54], %108 {strides = array<i32>} : memref<1x110x16xbf16, #tpu.memory_space<vmem>>, vector<1x11x16xbf16>,
    %cst_55 = arith.constant 0.000000e+00 : bf16
    %109 = vector.broadcast %cst_55 : bf16 to vector<19x16xbf16>
    %c0_56 = arith.constant 0 : index
    %c91 = arith.constant 91 : index
    %c0_57 = arith.constant 0 : index
    %110 = vector.load %arg6[%c0_56, %c91, %c0_57] : memref<1x110x16xbf16, #tpu.memory_space<vmem>>, vector<1x19x16xbf16>
    %111 = vector.shape_cast %110 : vector<1x19x16xbf16> to vector<19x16xbf16>
    %112 = vector.shape_cast %109 : vector<19x16xbf16> to vector<1x19x16xbf16>
    tpu.vector_store %arg6[%c0_56, %c91, %c0_57], %112 {strides = array<i32>} : memref<1x110x16xbf16, #tpu.memory_space<vmem>>, vector<1x19x16xbf16>,
    %113 = arith.truncf %104 : vector<80x16xf32> to vector<80x16xbf16>
    %c0_58 = arith.constant 0 : index
    %c11_59 = arith.constant 11 : index
    %c0_60 = arith.constant 0 : index
    %114 = vector.load %arg6[%c0_58, %c11_59, %c0_60] : memref<1x110x16xbf16, #tpu.memory_space<vmem>>, vector<1x80x16xbf16>
    %115 = vector.shape_cast %114 : vector<1x80x16xbf16> to vector<80x16xbf16>
    %116 = vector.shape_cast %113 : vector<80x16xbf16> to vector<1x80x16xbf16>
    tpu.vector_store %arg6[%c0_58, %c11_59, %c0_60], %116 {strides = array<i32>} : memref<1x110x16xbf16, #tpu.memory_space<vmem>>, vector<1x80x16xbf16>,
    return
  }
  func.func @transform_0(%arg0: i32) -> (i32, i32, i32) {
    %c0_i32 = arith.constant 0 : i32
    %c0_i32_0 = arith.constant 0 : i32
    %c0_i32_1 = arith.constant 0 : i32
    return %arg0, %c0_i32, %c0_i32_0 : i32, i32, i32
  }
  func.func @transform_1(%arg0: i32) -> (i32, i32, i32) {
    %c0_i32 = arith.constant 0 : i32
    %c0_i32_0 = arith.constant 0 : i32
    %c0_i32_1 = arith.constant 0 : i32
    %c0_i32_2 = arith.constant 0 : i32
    return %c0_i32, %c0_i32_0, %c0_i32_1 : i32, i32, i32
  }
  func.func @transform_2(%arg0: i32) -> (i32, i32) {
    %c0_i32 = arith.constant 0 : i32
    %c0_i32_0 = arith.constant 0 : i32
    %c0_i32_1 = arith.constant 0 : i32
    return %c0_i32, %c0_i32_0 : i32, i32
  }
  func.func @transform_3(%arg0: i32) -> (i32, i32) {
    %c0_i32 = arith.constant 0 : i32
    %c0_i32_0 = arith.constant 0 : i32
    %c0_i32_1 = arith.constant 0 : i32
    return %c0_i32, %c0_i32_0 : i32, i32
  }
  func.func @transform_4(%arg0: i32) -> (i32, i32) {
    %c0_i32 = arith.constant 0 : i32
    %c0_i32_0 = arith.constant 0 : i32
    %c0_i32_1 = arith.constant 0 : i32
    return %c0_i32, %c0_i32_0 : i32, i32
  }
  func.func @transform_5(%arg0: i32) -> (i32, i32, i32) {
    %c0_i32 = arith.constant 0 : i32
    %c0_i32_0 = arith.constant 0 : i32
    %c0_i32_1 = arith.constant 0 : i32
    return %arg0, %c0_i32, %c0_i32_0 : i32, i32, i32
  }
}

module attributes {stable_mosaic.version = 11 : i64} {
  func.func @_dw_pw_kernel(%arg0: i32, %arg1: memref<1x36x16xbf16, #tpu.memory_space<vmem>>, %arg2: memref<1x36x16xbf16, #tpu.memory_space<vmem>>, %arg3: memref<1x36x16xbf16, #tpu.memory_space<vmem>>, %arg4: memref<1x36x16xbf16, #tpu.memory_space<vmem>>, %arg5: memref<9x1x16xf32, #tpu.memory_space<vmem>>, %arg6: memref<1x16xf32, #tpu.memory_space<vmem>>, %arg7: memref<16x16xbf16, #tpu.memory_space<vmem>>, %arg8: memref<1x16xf32, #tpu.memory_space<vmem>>, %arg9: memref<1x42x16xbf16, #tpu.memory_space<vmem>>) attributes {dimension_semantics = [#tpu.dimension_semantics<parallel>], iteration_bounds = array<i64: 2>, scalar_prefetch = 0 : i64, scratch_operands = 0 : i64, tpu.core_type = #tpu.core_type<tc>, window_params = [{transform_indices = @transform_0, window_bounds = array<i64: 1, 36, 16>}, {transform_indices = @transform_1, window_bounds = array<i64: 1, 36, 16>}, {transform_indices = @transform_2, window_bounds = array<i64: 1, 36, 16>}, {transform_indices = @transform_3, window_bounds = array<i64: 1, 36, 16>}, {pipeline_mode = #tpu.pipeline_mode<synchronous>, transform_indices = @transform_4, window_bounds = array<i64: 9, 1, 16>}, {pipeline_mode = #tpu.pipeline_mode<synchronous>, transform_indices = @transform_5, window_bounds = array<i64: 1, 16>}, {pipeline_mode = #tpu.pipeline_mode<synchronous>, transform_indices = @transform_6, window_bounds = array<i64: 16, 16>}, {pipeline_mode = #tpu.pipeline_mode<synchronous>, transform_indices = @transform_7, window_bounds = array<i64: 1, 16>}, {transform_indices = @transform_8, window_bounds = array<i64: 1, 42, 16>}]} {
    %c0 = arith.constant 0 : index
    %c0_0 = arith.constant 0 : index
    %c0_1 = arith.constant 0 : index
    %0 = vector.load %arg1[%c0, %c0_0, %c0_1] : memref<1x36x16xbf16, #tpu.memory_space<vmem>>, vector<1x24x16xbf16>
    %1 = vector.shape_cast %0 : vector<1x24x16xbf16> to vector<24x16xbf16>
    %2 = arith.extf %1 : vector<24x16xbf16> to vector<24x16xf32>
    %c0_2 = arith.constant 0 : index
    %c0_3 = arith.constant 0 : index
    %c0_4 = arith.constant 0 : index
    %3 = vector.load %arg5[%c0_2, %c0_3, %c0_4] : memref<9x1x16xf32, #tpu.memory_space<vmem>>, vector<1x1x16xf32>
    %4 = vector.shape_cast %3 : vector<1x1x16xf32> to vector<1x16xf32>
    %5 = vector.broadcast %4 : vector<1x16xf32> to vector<24x16xf32>
    %6 = arith.mulf %2, %5 : vector<24x16xf32>
    %c0_5 = arith.constant 0 : index
    %c0_6 = arith.constant 0 : index
    %c0_7 = arith.constant 0 : index
    %7 = vector.load %arg2[%c0_5, %c0_6, %c0_7] : memref<1x36x16xbf16, #tpu.memory_space<vmem>>, vector<1x24x16xbf16>
    %8 = vector.shape_cast %7 : vector<1x24x16xbf16> to vector<24x16xbf16>
    %9 = arith.extf %8 : vector<24x16xbf16> to vector<24x16xf32>
    %c1 = arith.constant 1 : index
    %c0_8 = arith.constant 0 : index
    %c0_9 = arith.constant 0 : index
    %10 = vector.load %arg5[%c1, %c0_8, %c0_9] : memref<9x1x16xf32, #tpu.memory_space<vmem>>, vector<1x1x16xf32>
    %11 = vector.shape_cast %10 : vector<1x1x16xf32> to vector<1x16xf32>
    %12 = vector.broadcast %11 : vector<1x16xf32> to vector<24x16xf32>
    %13 = arith.mulf %9, %12 : vector<24x16xf32>
    %c0_10 = arith.constant 0 : index
    %c1_11 = arith.constant 1 : index
    %c0_12 = arith.constant 0 : index
    %14 = vector.load %arg1[%c0_10, %c1_11, %c0_12] : memref<1x36x16xbf16, #tpu.memory_space<vmem>>, vector<1x24x16xbf16>
    %15 = vector.shape_cast %14 : vector<1x24x16xbf16> to vector<24x16xbf16>
    %16 = arith.extf %15 : vector<24x16xbf16> to vector<24x16xf32>
    %c2 = arith.constant 2 : index
    %c0_13 = arith.constant 0 : index
    %c0_14 = arith.constant 0 : index
    %17 = vector.load %arg5[%c2, %c0_13, %c0_14] : memref<9x1x16xf32, #tpu.memory_space<vmem>>, vector<1x1x16xf32>
    %18 = vector.shape_cast %17 : vector<1x1x16xf32> to vector<1x16xf32>
    %19 = vector.broadcast %18 : vector<1x16xf32> to vector<24x16xf32>
    %20 = arith.mulf %16, %19 : vector<24x16xf32>
    %c0_15 = arith.constant 0 : index
    %c0_16 = arith.constant 0 : index
    %c0_17 = arith.constant 0 : index
    %21 = vector.load %arg3[%c0_15, %c0_16, %c0_17] : memref<1x36x16xbf16, #tpu.memory_space<vmem>>, vector<1x24x16xbf16>
    %22 = vector.shape_cast %21 : vector<1x24x16xbf16> to vector<24x16xbf16>
    %23 = arith.extf %22 : vector<24x16xbf16> to vector<24x16xf32>
    %c3 = arith.constant 3 : index
    %c0_18 = arith.constant 0 : index
    %c0_19 = arith.constant 0 : index
    %24 = vector.load %arg5[%c3, %c0_18, %c0_19] : memref<9x1x16xf32, #tpu.memory_space<vmem>>, vector<1x1x16xf32>
    %25 = vector.shape_cast %24 : vector<1x1x16xf32> to vector<1x16xf32>
    %26 = vector.broadcast %25 : vector<1x16xf32> to vector<24x16xf32>
    %27 = arith.mulf %23, %26 : vector<24x16xf32>
    %c0_20 = arith.constant 0 : index
    %c0_21 = arith.constant 0 : index
    %c0_22 = arith.constant 0 : index
    %28 = vector.load %arg4[%c0_20, %c0_21, %c0_22] : memref<1x36x16xbf16, #tpu.memory_space<vmem>>, vector<1x24x16xbf16>
    %29 = vector.shape_cast %28 : vector<1x24x16xbf16> to vector<24x16xbf16>
    %30 = arith.extf %29 : vector<24x16xbf16> to vector<24x16xf32>
    %c4 = arith.constant 4 : index
    %c0_23 = arith.constant 0 : index
    %c0_24 = arith.constant 0 : index
    %31 = vector.load %arg5[%c4, %c0_23, %c0_24] : memref<9x1x16xf32, #tpu.memory_space<vmem>>, vector<1x1x16xf32>
    %32 = vector.shape_cast %31 : vector<1x1x16xf32> to vector<1x16xf32>
    %33 = vector.broadcast %32 : vector<1x16xf32> to vector<24x16xf32>
    %34 = arith.mulf %30, %33 : vector<24x16xf32>
    %c0_25 = arith.constant 0 : index
    %c1_26 = arith.constant 1 : index
    %c0_27 = arith.constant 0 : index
    %35 = vector.load %arg3[%c0_25, %c1_26, %c0_27] : memref<1x36x16xbf16, #tpu.memory_space<vmem>>, vector<1x24x16xbf16>
    %36 = vector.shape_cast %35 : vector<1x24x16xbf16> to vector<24x16xbf16>
    %37 = arith.extf %36 : vector<24x16xbf16> to vector<24x16xf32>
    %c5 = arith.constant 5 : index
    %c0_28 = arith.constant 0 : index
    %c0_29 = arith.constant 0 : index
    %38 = vector.load %arg5[%c5, %c0_28, %c0_29] : memref<9x1x16xf32, #tpu.memory_space<vmem>>, vector<1x1x16xf32>
    %39 = vector.shape_cast %38 : vector<1x1x16xf32> to vector<1x16xf32>
    %40 = vector.broadcast %39 : vector<1x16xf32> to vector<24x16xf32>
    %41 = arith.mulf %37, %40 : vector<24x16xf32>
    %c0_30 = arith.constant 0 : index
    %c6 = arith.constant 6 : index
    %c0_31 = arith.constant 0 : index
    %42 = vector.load %arg1[%c0_30, %c6, %c0_31] : memref<1x36x16xbf16, #tpu.memory_space<vmem>>, vector<1x24x16xbf16>
    %43 = vector.shape_cast %42 : vector<1x24x16xbf16> to vector<24x16xbf16>
    %44 = arith.extf %43 : vector<24x16xbf16> to vector<24x16xf32>
    %c6_32 = arith.constant 6 : index
    %c0_33 = arith.constant 0 : index
    %c0_34 = arith.constant 0 : index
    %45 = vector.load %arg5[%c6_32, %c0_33, %c0_34] : memref<9x1x16xf32, #tpu.memory_space<vmem>>, vector<1x1x16xf32>
    %46 = vector.shape_cast %45 : vector<1x1x16xf32> to vector<1x16xf32>
    %47 = vector.broadcast %46 : vector<1x16xf32> to vector<24x16xf32>
    %48 = arith.mulf %44, %47 : vector<24x16xf32>
    %c0_35 = arith.constant 0 : index
    %c6_36 = arith.constant 6 : index
    %c0_37 = arith.constant 0 : index
    %49 = vector.load %arg2[%c0_35, %c6_36, %c0_37] : memref<1x36x16xbf16, #tpu.memory_space<vmem>>, vector<1x24x16xbf16>
    %50 = vector.shape_cast %49 : vector<1x24x16xbf16> to vector<24x16xbf16>
    %51 = arith.extf %50 : vector<24x16xbf16> to vector<24x16xf32>
    %c7 = arith.constant 7 : index
    %c0_38 = arith.constant 0 : index
    %c0_39 = arith.constant 0 : index
    %52 = vector.load %arg5[%c7, %c0_38, %c0_39] : memref<9x1x16xf32, #tpu.memory_space<vmem>>, vector<1x1x16xf32>
    %53 = vector.shape_cast %52 : vector<1x1x16xf32> to vector<1x16xf32>
    %54 = vector.broadcast %53 : vector<1x16xf32> to vector<24x16xf32>
    %55 = arith.mulf %51, %54 : vector<24x16xf32>
    %c0_40 = arith.constant 0 : index
    %c7_41 = arith.constant 7 : index
    %c0_42 = arith.constant 0 : index
    %56 = vector.load %arg1[%c0_40, %c7_41, %c0_42] : memref<1x36x16xbf16, #tpu.memory_space<vmem>>, vector<1x24x16xbf16>
    %57 = vector.shape_cast %56 : vector<1x24x16xbf16> to vector<24x16xbf16>
    %58 = arith.extf %57 : vector<24x16xbf16> to vector<24x16xf32>
    %c8 = arith.constant 8 : index
    %c0_43 = arith.constant 0 : index
    %c0_44 = arith.constant 0 : index
    %59 = vector.load %arg5[%c8, %c0_43, %c0_44] : memref<9x1x16xf32, #tpu.memory_space<vmem>>, vector<1x1x16xf32>
    %60 = vector.shape_cast %59 : vector<1x1x16xf32> to vector<1x16xf32>
    %61 = vector.broadcast %60 : vector<1x16xf32> to vector<24x16xf32>
    %62 = arith.mulf %58, %61 : vector<24x16xf32>
    %63 = arith.addf %6, %13 : vector<24x16xf32>
    %64 = arith.addf %20, %27 : vector<24x16xf32>
    %65 = arith.addf %34, %41 : vector<24x16xf32>
    %66 = arith.addf %48, %55 : vector<24x16xf32>
    %67 = arith.addf %63, %64 : vector<24x16xf32>
    %68 = arith.addf %65, %66 : vector<24x16xf32>
    %69 = arith.addf %67, %68 : vector<24x16xf32>
    %70 = arith.addf %69, %62 : vector<24x16xf32>
    %c0_45 = arith.constant 0 : index
    %c0_46 = arith.constant 0 : index
    %71 = vector.load %arg6[%c0_45, %c0_46] : memref<1x16xf32, #tpu.memory_space<vmem>>, vector<1x16xf32>
    %72 = vector.broadcast %71 : vector<1x16xf32> to vector<24x16xf32>
    %73 = arith.addf %70, %72 : vector<24x16xf32>
    %cst = arith.constant 0.000000e+00 : f32
    %74 = vector.broadcast %cst : f32 to vector<24x16xf32>
    %75 = arith.maximumf %73, %74 : vector<24x16xf32>
    %76 = arith.truncf %75 : vector<24x16xf32> to vector<24x16xbf16>
    %c0_47 = arith.constant 0 : index
    %c0_48 = arith.constant 0 : index
    %77 = vector.load %arg7[%c0_47, %c0_48] : memref<16x16xbf16, #tpu.memory_space<vmem>>, vector<16x16xbf16>
    %cst_49 = arith.constant dense<0.000000e+00> : vector<24x16xf32>
    %78 = tpu.matmul %76, %77, %cst_49 {dimension_numbers = #tpu.dot_dimension_numbers<[1], [0], [0], [1], [0, 0, 1, 1], [], []>} : vector<24x16xbf16>, vector<16x16xbf16>, vector<24x16xf32> -> vector<24x16xf32>
    %c0_50 = arith.constant 0 : index
    %c0_51 = arith.constant 0 : index
    %79 = vector.load %arg8[%c0_50, %c0_51] : memref<1x16xf32, #tpu.memory_space<vmem>>, vector<1x16xf32>
    %80 = vector.broadcast %79 : vector<1x16xf32> to vector<24x16xf32>
    %81 = arith.addf %78, %80 : vector<24x16xf32>
    %cst_52 = arith.constant 0.000000e+00 : f32
    %82 = vector.broadcast %cst_52 : f32 to vector<24x16xf32>
    %83 = arith.maximumf %81, %82 : vector<24x16xf32>
    %84 = tpu.iota {dimensions = array<i32: 0>} : vector<24x16xi32>
    %c6_i32 = arith.constant 6 : i32
    %c0_i32 = arith.constant 0 : i32
    %85 = arith.cmpi eq, %c6_i32, %c0_i32 : i32
    %c1_i32 = arith.constant 1 : i32
    %86 = arith.select %85, %c1_i32, %c6_i32 : i32
    %87 = vector.broadcast %86 : i32 to vector<24x16xi32>
    %88 = arith.remsi %84, %87 : vector<24x16xi32>
    %c0_i32_53 = arith.constant 0 : i32
    %89 = vector.broadcast %c0_i32_53 : i32 to vector<24x16xi32>
    %90 = arith.cmpi ne, %88, %89 : vector<24x16xi32>
    %c0_i32_54 = arith.constant 0 : i32
    %91 = vector.broadcast %c0_i32_54 : i32 to vector<24x16xi32>
    %92 = arith.cmpi slt, %88, %91 : vector<24x16xi32>
    %c0_i32_55 = arith.constant 0 : i32
    %93 = arith.cmpi slt, %86, %c0_i32_55 : i32
    %94 = vector.broadcast %93 : i1 to vector<24x16xi1>
    %95 = vector.broadcast %94 : vector<24x16xi1> to vector<24x16xi1>
    %96 = arith.xori %92, %95 : vector<24x16xi1>
    %97 = arith.andi %96, %90 : vector<24x16xi1>
    %98 = vector.broadcast %86 : i32 to vector<24x16xi32>
    %99 = arith.addi %88, %98 : vector<24x16xi32>
    %100 = arith.select %97, %99, %88 : vector<24x16xi1>, vector<24x16xi32>
    %c4_i32 = arith.constant 4 : i32
    %101 = vector.broadcast %c4_i32 : i32 to vector<24x16xi32>
    %102 = arith.cmpi slt, %100, %101 : vector<24x16xi32>
    %cst_56 = arith.constant 0.000000e+00 : f32
    %103 = vector.broadcast %cst_56 : f32 to vector<24x16xf32>
    %104 = arith.select %102, %83, %103 : vector<24x16xi1>, vector<24x16xf32>
    %cst_57 = arith.constant 0.000000e+00 : bf16
    %105 = vector.broadcast %cst_57 : bf16 to vector<7x16xbf16>
    %c0_58 = arith.constant 0 : index
    %c0_59 = arith.constant 0 : index
    %c0_60 = arith.constant 0 : index
    %106 = vector.load %arg9[%c0_58, %c0_59, %c0_60] : memref<1x42x16xbf16, #tpu.memory_space<vmem>>, vector<1x7x16xbf16>
    %107 = vector.shape_cast %106 : vector<1x7x16xbf16> to vector<7x16xbf16>
    %108 = vector.shape_cast %105 : vector<7x16xbf16> to vector<1x7x16xbf16>
    tpu.vector_store %arg9[%c0_58, %c0_59, %c0_60], %108 {strides = array<i32>} : memref<1x42x16xbf16, #tpu.memory_space<vmem>>, vector<1x7x16xbf16>,
    %cst_61 = arith.constant 0.000000e+00 : bf16
    %109 = vector.broadcast %cst_61 : bf16 to vector<11x16xbf16>
    %c0_62 = arith.constant 0 : index
    %c31 = arith.constant 31 : index
    %c0_63 = arith.constant 0 : index
    %110 = vector.load %arg9[%c0_62, %c31, %c0_63] : memref<1x42x16xbf16, #tpu.memory_space<vmem>>, vector<1x11x16xbf16>
    %111 = vector.shape_cast %110 : vector<1x11x16xbf16> to vector<11x16xbf16>
    %112 = vector.shape_cast %109 : vector<11x16xbf16> to vector<1x11x16xbf16>
    tpu.vector_store %arg9[%c0_62, %c31, %c0_63], %112 {strides = array<i32>} : memref<1x42x16xbf16, #tpu.memory_space<vmem>>, vector<1x11x16xbf16>,
    %113 = arith.truncf %104 : vector<24x16xf32> to vector<24x16xbf16>
    %c0_64 = arith.constant 0 : index
    %c7_65 = arith.constant 7 : index
    %c0_66 = arith.constant 0 : index
    %114 = vector.load %arg9[%c0_64, %c7_65, %c0_66] : memref<1x42x16xbf16, #tpu.memory_space<vmem>>, vector<1x24x16xbf16>
    %115 = vector.shape_cast %114 : vector<1x24x16xbf16> to vector<24x16xbf16>
    %116 = vector.shape_cast %113 : vector<24x16xbf16> to vector<1x24x16xbf16>
    tpu.vector_store %arg9[%c0_64, %c7_65, %c0_66], %116 {strides = array<i32>} : memref<1x42x16xbf16, #tpu.memory_space<vmem>>, vector<1x24x16xbf16>,
    return
  }
  func.func @transform_0(%arg0: i32) -> (i32, i32, i32) {
    %c0_i32 = arith.constant 0 : i32
    %c0_i32_0 = arith.constant 0 : i32
    %c0_i32_1 = arith.constant 0 : i32
    return %arg0, %c0_i32, %c0_i32_0 : i32, i32, i32
  }
  func.func @transform_1(%arg0: i32) -> (i32, i32, i32) {
    %c0_i32 = arith.constant 0 : i32
    %c0_i32_0 = arith.constant 0 : i32
    %c0_i32_1 = arith.constant 0 : i32
    return %arg0, %c0_i32, %c0_i32_0 : i32, i32, i32
  }
  func.func @transform_2(%arg0: i32) -> (i32, i32, i32) {
    %c0_i32 = arith.constant 0 : i32
    %c0_i32_0 = arith.constant 0 : i32
    %c0_i32_1 = arith.constant 0 : i32
    return %arg0, %c0_i32, %c0_i32_0 : i32, i32, i32
  }
  func.func @transform_3(%arg0: i32) -> (i32, i32, i32) {
    %c0_i32 = arith.constant 0 : i32
    %c0_i32_0 = arith.constant 0 : i32
    %c0_i32_1 = arith.constant 0 : i32
    return %arg0, %c0_i32, %c0_i32_0 : i32, i32, i32
  }
  func.func @transform_4(%arg0: i32) -> (i32, i32, i32) {
    %c0_i32 = arith.constant 0 : i32
    %c0_i32_0 = arith.constant 0 : i32
    %c0_i32_1 = arith.constant 0 : i32
    %c0_i32_2 = arith.constant 0 : i32
    return %c0_i32, %c0_i32_0, %c0_i32_1 : i32, i32, i32
  }
  func.func @transform_5(%arg0: i32) -> (i32, i32) {
    %c0_i32 = arith.constant 0 : i32
    %c0_i32_0 = arith.constant 0 : i32
    %c0_i32_1 = arith.constant 0 : i32
    return %c0_i32, %c0_i32_0 : i32, i32
  }
  func.func @transform_6(%arg0: i32) -> (i32, i32) {
    %c0_i32 = arith.constant 0 : i32
    %c0_i32_0 = arith.constant 0 : i32
    %c0_i32_1 = arith.constant 0 : i32
    return %c0_i32, %c0_i32_0 : i32, i32
  }
  func.func @transform_7(%arg0: i32) -> (i32, i32) {
    %c0_i32 = arith.constant 0 : i32
    %c0_i32_0 = arith.constant 0 : i32
    %c0_i32_1 = arith.constant 0 : i32
    return %c0_i32, %c0_i32_0 : i32, i32
  }
  func.func @transform_8(%arg0: i32) -> (i32, i32, i32) {
    %c0_i32 = arith.constant 0 : i32
    %c0_i32_0 = arith.constant 0 : i32
    %c0_i32_1 = arith.constant 0 : i32
    return %arg0, %c0_i32, %c0_i32_0 : i32, i32, i32
  }
}

module attributes {stable_mosaic.version = 11 : i64} {
  func.func @_dw_pw_kernel(%arg0: i32, %arg1: memref<1x42x16xbf16, #tpu.memory_space<vmem>>, %arg2: memref<9x1x16xf32, #tpu.memory_space<vmem>>, %arg3: memref<1x16xf32, #tpu.memory_space<vmem>>, %arg4: memref<16x32xbf16, #tpu.memory_space<vmem>>, %arg5: memref<1x32xf32, #tpu.memory_space<vmem>>, %arg6: memref<1x42x32xbf16, #tpu.memory_space<vmem>>) attributes {dimension_semantics = [#tpu.dimension_semantics<parallel>], iteration_bounds = array<i64: 2>, scalar_prefetch = 0 : i64, scratch_operands = 0 : i64, tpu.core_type = #tpu.core_type<tc>, window_params = [{transform_indices = @transform_0, window_bounds = array<i64: 1, 42, 16>}, {pipeline_mode = #tpu.pipeline_mode<synchronous>, transform_indices = @transform_1, window_bounds = array<i64: 9, 1, 16>}, {pipeline_mode = #tpu.pipeline_mode<synchronous>, transform_indices = @transform_2, window_bounds = array<i64: 1, 16>}, {pipeline_mode = #tpu.pipeline_mode<synchronous>, transform_indices = @transform_3, window_bounds = array<i64: 16, 32>}, {pipeline_mode = #tpu.pipeline_mode<synchronous>, transform_indices = @transform_4, window_bounds = array<i64: 1, 32>}, {transform_indices = @transform_5, window_bounds = array<i64: 1, 42, 32>}]} {
    %c0 = arith.constant 0 : index
    %c0_0 = arith.constant 0 : index
    %c0_1 = arith.constant 0 : index
    %0 = vector.load %arg1[%c0, %c0_0, %c0_1] : memref<1x42x16xbf16, #tpu.memory_space<vmem>>, vector<1x24x16xbf16>
    %1 = vector.shape_cast %0 : vector<1x24x16xbf16> to vector<24x16xbf16>
    %2 = arith.extf %1 : vector<24x16xbf16> to vector<24x16xf32>
    %c0_2 = arith.constant 0 : index
    %c0_3 = arith.constant 0 : index
    %c0_4 = arith.constant 0 : index
    %3 = vector.load %arg2[%c0_2, %c0_3, %c0_4] : memref<9x1x16xf32, #tpu.memory_space<vmem>>, vector<1x1x16xf32>
    %4 = vector.shape_cast %3 : vector<1x1x16xf32> to vector<1x16xf32>
    %5 = vector.broadcast %4 : vector<1x16xf32> to vector<24x16xf32>
    %6 = arith.mulf %2, %5 : vector<24x16xf32>
    %c0_5 = arith.constant 0 : index
    %c1 = arith.constant 1 : index
    %c0_6 = arith.constant 0 : index
    %7 = vector.load %arg1[%c0_5, %c1, %c0_6] : memref<1x42x16xbf16, #tpu.memory_space<vmem>>, vector<1x24x16xbf16>
    %8 = vector.shape_cast %7 : vector<1x24x16xbf16> to vector<24x16xbf16>
    %9 = arith.extf %8 : vector<24x16xbf16> to vector<24x16xf32>
    %c1_7 = arith.constant 1 : index
    %c0_8 = arith.constant 0 : index
    %c0_9 = arith.constant 0 : index
    %10 = vector.load %arg2[%c1_7, %c0_8, %c0_9] : memref<9x1x16xf32, #tpu.memory_space<vmem>>, vector<1x1x16xf32>
    %11 = vector.shape_cast %10 : vector<1x1x16xf32> to vector<1x16xf32>
    %12 = vector.broadcast %11 : vector<1x16xf32> to vector<24x16xf32>
    %13 = arith.mulf %9, %12 : vector<24x16xf32>
    %c0_10 = arith.constant 0 : index
    %c2 = arith.constant 2 : index
    %c0_11 = arith.constant 0 : index
    %14 = vector.load %arg1[%c0_10, %c2, %c0_11] : memref<1x42x16xbf16, #tpu.memory_space<vmem>>, vector<1x24x16xbf16>
    %15 = vector.shape_cast %14 : vector<1x24x16xbf16> to vector<24x16xbf16>
    %16 = arith.extf %15 : vector<24x16xbf16> to vector<24x16xf32>
    %c2_12 = arith.constant 2 : index
    %c0_13 = arith.constant 0 : index
    %c0_14 = arith.constant 0 : index
    %17 = vector.load %arg2[%c2_12, %c0_13, %c0_14] : memref<9x1x16xf32, #tpu.memory_space<vmem>>, vector<1x1x16xf32>
    %18 = vector.shape_cast %17 : vector<1x1x16xf32> to vector<1x16xf32>
    %19 = vector.broadcast %18 : vector<1x16xf32> to vector<24x16xf32>
    %20 = arith.mulf %16, %19 : vector<24x16xf32>
    %c0_15 = arith.constant 0 : index
    %c6 = arith.constant 6 : index
    %c0_16 = arith.constant 0 : index
    %21 = vector.load %arg1[%c0_15, %c6, %c0_16] : memref<1x42x16xbf16, #tpu.memory_space<vmem>>, vector<1x24x16xbf16>
    %22 = vector.shape_cast %21 : vector<1x24x16xbf16> to vector<24x16xbf16>
    %23 = arith.extf %22 : vector<24x16xbf16> to vector<24x16xf32>
    %c3 = arith.constant 3 : index
    %c0_17 = arith.constant 0 : index
    %c0_18 = arith.constant 0 : index
    %24 = vector.load %arg2[%c3, %c0_17, %c0_18] : memref<9x1x16xf32, #tpu.memory_space<vmem>>, vector<1x1x16xf32>
    %25 = vector.shape_cast %24 : vector<1x1x16xf32> to vector<1x16xf32>
    %26 = vector.broadcast %25 : vector<1x16xf32> to vector<24x16xf32>
    %27 = arith.mulf %23, %26 : vector<24x16xf32>
    %c0_19 = arith.constant 0 : index
    %c7 = arith.constant 7 : index
    %c0_20 = arith.constant 0 : index
    %28 = vector.load %arg1[%c0_19, %c7, %c0_20] : memref<1x42x16xbf16, #tpu.memory_space<vmem>>, vector<1x24x16xbf16>
    %29 = vector.shape_cast %28 : vector<1x24x16xbf16> to vector<24x16xbf16>
    %30 = arith.extf %29 : vector<24x16xbf16> to vector<24x16xf32>
    %c4 = arith.constant 4 : index
    %c0_21 = arith.constant 0 : index
    %c0_22 = arith.constant 0 : index
    %31 = vector.load %arg2[%c4, %c0_21, %c0_22] : memref<9x1x16xf32, #tpu.memory_space<vmem>>, vector<1x1x16xf32>
    %32 = vector.shape_cast %31 : vector<1x1x16xf32> to vector<1x16xf32>
    %33 = vector.broadcast %32 : vector<1x16xf32> to vector<24x16xf32>
    %34 = arith.mulf %30, %33 : vector<24x16xf32>
    %c0_23 = arith.constant 0 : index
    %c8 = arith.constant 8 : index
    %c0_24 = arith.constant 0 : index
    %35 = vector.load %arg1[%c0_23, %c8, %c0_24] : memref<1x42x16xbf16, #tpu.memory_space<vmem>>, vector<1x24x16xbf16>
    %36 = vector.shape_cast %35 : vector<1x24x16xbf16> to vector<24x16xbf16>
    %37 = arith.extf %36 : vector<24x16xbf16> to vector<24x16xf32>
    %c5 = arith.constant 5 : index
    %c0_25 = arith.constant 0 : index
    %c0_26 = arith.constant 0 : index
    %38 = vector.load %arg2[%c5, %c0_25, %c0_26] : memref<9x1x16xf32, #tpu.memory_space<vmem>>, vector<1x1x16xf32>
    %39 = vector.shape_cast %38 : vector<1x1x16xf32> to vector<1x16xf32>
    %40 = vector.broadcast %39 : vector<1x16xf32> to vector<24x16xf32>
    %41 = arith.mulf %37, %40 : vector<24x16xf32>
    %c0_27 = arith.constant 0 : index
    %c12 = arith.constant 12 : index
    %c0_28 = arith.constant 0 : index
    %42 = vector.load %arg1[%c0_27, %c12, %c0_28] : memref<1x42x16xbf16, #tpu.memory_space<vmem>>, vector<1x24x16xbf16>
    %43 = vector.shape_cast %42 : vector<1x24x16xbf16> to vector<24x16xbf16>
    %44 = arith.extf %43 : vector<24x16xbf16> to vector<24x16xf32>
    %c6_29 = arith.constant 6 : index
    %c0_30 = arith.constant 0 : index
    %c0_31 = arith.constant 0 : index
    %45 = vector.load %arg2[%c6_29, %c0_30, %c0_31] : memref<9x1x16xf32, #tpu.memory_space<vmem>>, vector<1x1x16xf32>
    %46 = vector.shape_cast %45 : vector<1x1x16xf32> to vector<1x16xf32>
    %47 = vector.broadcast %46 : vector<1x16xf32> to vector<24x16xf32>
    %48 = arith.mulf %44, %47 : vector<24x16xf32>
    %c0_32 = arith.constant 0 : index
    %c13 = arith.constant 13 : index
    %c0_33 = arith.constant 0 : index
    %49 = vector.load %arg1[%c0_32, %c13, %c0_33] : memref<1x42x16xbf16, #tpu.memory_space<vmem>>, vector<1x24x16xbf16>
    %50 = vector.shape_cast %49 : vector<1x24x16xbf16> to vector<24x16xbf16>
    %51 = arith.extf %50 : vector<24x16xbf16> to vector<24x16xf32>
    %c7_34 = arith.constant 7 : index
    %c0_35 = arith.constant 0 : index
    %c0_36 = arith.constant 0 : index
    %52 = vector.load %arg2[%c7_34, %c0_35, %c0_36] : memref<9x1x16xf32, #tpu.memory_space<vmem>>, vector<1x1x16xf32>
    %53 = vector.shape_cast %52 : vector<1x1x16xf32> to vector<1x16xf32>
    %54 = vector.broadcast %53 : vector<1x16xf32> to vector<24x16xf32>
    %55 = arith.mulf %51, %54 : vector<24x16xf32>
    %c0_37 = arith.constant 0 : index
    %c14 = arith.constant 14 : index
    %c0_38 = arith.constant 0 : index
    %56 = vector.load %arg1[%c0_37, %c14, %c0_38] : memref<1x42x16xbf16, #tpu.memory_space<vmem>>, vector<1x24x16xbf16>
    %57 = vector.shape_cast %56 : vector<1x24x16xbf16> to vector<24x16xbf16>
    %58 = arith.extf %57 : vector<24x16xbf16> to vector<24x16xf32>
    %c8_39 = arith.constant 8 : index
    %c0_40 = arith.constant 0 : index
    %c0_41 = arith.constant 0 : index
    %59 = vector.load %arg2[%c8_39, %c0_40, %c0_41] : memref<9x1x16xf32, #tpu.memory_space<vmem>>, vector<1x1x16xf32>
    %60 = vector.shape_cast %59 : vector<1x1x16xf32> to vector<1x16xf32>
    %61 = vector.broadcast %60 : vector<1x16xf32> to vector<24x16xf32>
    %62 = arith.mulf %58, %61 : vector<24x16xf32>
    %63 = arith.addf %6, %13 : vector<24x16xf32>
    %64 = arith.addf %20, %27 : vector<24x16xf32>
    %65 = arith.addf %34, %41 : vector<24x16xf32>
    %66 = arith.addf %48, %55 : vector<24x16xf32>
    %67 = arith.addf %63, %64 : vector<24x16xf32>
    %68 = arith.addf %65, %66 : vector<24x16xf32>
    %69 = arith.addf %67, %68 : vector<24x16xf32>
    %70 = arith.addf %69, %62 : vector<24x16xf32>
    %c0_42 = arith.constant 0 : index
    %c0_43 = arith.constant 0 : index
    %71 = vector.load %arg3[%c0_42, %c0_43] : memref<1x16xf32, #tpu.memory_space<vmem>>, vector<1x16xf32>
    %72 = vector.broadcast %71 : vector<1x16xf32> to vector<24x16xf32>
    %73 = arith.addf %70, %72 : vector<24x16xf32>
    %cst = arith.constant 0.000000e+00 : f32
    %74 = vector.broadcast %cst : f32 to vector<24x16xf32>
    %75 = arith.maximumf %73, %74 : vector<24x16xf32>
    %76 = arith.truncf %75 : vector<24x16xf32> to vector<24x16xbf16>
    %c0_44 = arith.constant 0 : index
    %c0_45 = arith.constant 0 : index
    %77 = vector.load %arg4[%c0_44, %c0_45] : memref<16x32xbf16, #tpu.memory_space<vmem>>, vector<16x32xbf16>
    %cst_46 = arith.constant dense<0.000000e+00> : vector<24x32xf32>
    %78 = tpu.matmul %76, %77, %cst_46 {dimension_numbers = #tpu.dot_dimension_numbers<[1], [0], [0], [1], [0, 0, 1, 1], [], []>} : vector<24x16xbf16>, vector<16x32xbf16>, vector<24x32xf32> -> vector<24x32xf32>
    %c0_47 = arith.constant 0 : index
    %c0_48 = arith.constant 0 : index
    %79 = vector.load %arg5[%c0_47, %c0_48] : memref<1x32xf32, #tpu.memory_space<vmem>>, vector<1x32xf32>
    %80 = vector.broadcast %79 : vector<1x32xf32> to vector<24x32xf32>
    %81 = arith.addf %78, %80 : vector<24x32xf32>
    %cst_49 = arith.constant 0.000000e+00 : f32
    %82 = vector.broadcast %cst_49 : f32 to vector<24x32xf32>
    %83 = arith.maximumf %81, %82 : vector<24x32xf32>
    %84 = tpu.iota {dimensions = array<i32: 0>} : vector<24x32xi32>
    %c6_i32 = arith.constant 6 : i32
    %c0_i32 = arith.constant 0 : i32
    %85 = arith.cmpi eq, %c6_i32, %c0_i32 : i32
    %c1_i32 = arith.constant 1 : i32
    %86 = arith.select %85, %c1_i32, %c6_i32 : i32
    %87 = vector.broadcast %86 : i32 to vector<24x32xi32>
    %88 = arith.remsi %84, %87 : vector<24x32xi32>
    %c0_i32_50 = arith.constant 0 : i32
    %89 = vector.broadcast %c0_i32_50 : i32 to vector<24x32xi32>
    %90 = arith.cmpi ne, %88, %89 : vector<24x32xi32>
    %c0_i32_51 = arith.constant 0 : i32
    %91 = vector.broadcast %c0_i32_51 : i32 to vector<24x32xi32>
    %92 = arith.cmpi slt, %88, %91 : vector<24x32xi32>
    %c0_i32_52 = arith.constant 0 : i32
    %93 = arith.cmpi slt, %86, %c0_i32_52 : i32
    %94 = vector.broadcast %93 : i1 to vector<24x32xi1>
    %95 = vector.broadcast %94 : vector<24x32xi1> to vector<24x32xi1>
    %96 = arith.xori %92, %95 : vector<24x32xi1>
    %97 = arith.andi %96, %90 : vector<24x32xi1>
    %98 = vector.broadcast %86 : i32 to vector<24x32xi32>
    %99 = arith.addi %88, %98 : vector<24x32xi32>
    %100 = arith.select %97, %99, %88 : vector<24x32xi1>, vector<24x32xi32>
    %c4_i32 = arith.constant 4 : i32
    %101 = vector.broadcast %c4_i32 : i32 to vector<24x32xi32>
    %102 = arith.cmpi slt, %100, %101 : vector<24x32xi32>
    %cst_53 = arith.constant 0.000000e+00 : f32
    %103 = vector.broadcast %cst_53 : f32 to vector<24x32xf32>
    %104 = arith.select %102, %83, %103 : vector<24x32xi1>, vector<24x32xf32>
    %cst_54 = arith.constant 0.000000e+00 : bf16
    %105 = vector.broadcast %cst_54 : bf16 to vector<7x32xbf16>
    %c0_55 = arith.constant 0 : index
    %c0_56 = arith.constant 0 : index
    %c0_57 = arith.constant 0 : index
    %106 = vector.load %arg6[%c0_55, %c0_56, %c0_57] : memref<1x42x32xbf16, #tpu.memory_space<vmem>>, vector<1x7x32xbf16>
    %107 = vector.shape_cast %106 : vector<1x7x32xbf16> to vector<7x32xbf16>
    %108 = vector.shape_cast %105 : vector<7x32xbf16> to vector<1x7x32xbf16>
    tpu.vector_store %arg6[%c0_55, %c0_56, %c0_57], %108 {strides = array<i32>} : memref<1x42x32xbf16, #tpu.memory_space<vmem>>, vector<1x7x32xbf16>,
    %cst_58 = arith.constant 0.000000e+00 : bf16
    %109 = vector.broadcast %cst_58 : bf16 to vector<11x32xbf16>
    %c0_59 = arith.constant 0 : index
    %c31 = arith.constant 31 : index
    %c0_60 = arith.constant 0 : index
    %110 = vector.load %arg6[%c0_59, %c31, %c0_60] : memref<1x42x32xbf16, #tpu.memory_space<vmem>>, vector<1x11x32xbf16>
    %111 = vector.shape_cast %110 : vector<1x11x32xbf16> to vector<11x32xbf16>
    %112 = vector.shape_cast %109 : vector<11x32xbf16> to vector<1x11x32xbf16>
    tpu.vector_store %arg6[%c0_59, %c31, %c0_60], %112 {strides = array<i32>} : memref<1x42x32xbf16, #tpu.memory_space<vmem>>, vector<1x11x32xbf16>,
    %113 = arith.truncf %104 : vector<24x32xf32> to vector<24x32xbf16>
    %c0_61 = arith.constant 0 : index
    %c7_62 = arith.constant 7 : index
    %c0_63 = arith.constant 0 : index
    %114 = vector.load %arg6[%c0_61, %c7_62, %c0_63] : memref<1x42x32xbf16, #tpu.memory_space<vmem>>, vector<1x24x32xbf16>
    %115 = vector.shape_cast %114 : vector<1x24x32xbf16> to vector<24x32xbf16>
    %116 = vector.shape_cast %113 : vector<24x32xbf16> to vector<1x24x32xbf16>
    tpu.vector_store %arg6[%c0_61, %c7_62, %c0_63], %116 {strides = array<i32>} : memref<1x42x32xbf16, #tpu.memory_space<vmem>>, vector<1x24x32xbf16>,
    return
  }
  func.func @transform_0(%arg0: i32) -> (i32, i32, i32) {
    %c0_i32 = arith.constant 0 : i32
    %c0_i32_0 = arith.constant 0 : i32
    %c0_i32_1 = arith.constant 0 : i32
    return %arg0, %c0_i32, %c0_i32_0 : i32, i32, i32
  }
  func.func @transform_1(%arg0: i32) -> (i32, i32, i32) {
    %c0_i32 = arith.constant 0 : i32
    %c0_i32_0 = arith.constant 0 : i32
    %c0_i32_1 = arith.constant 0 : i32
    %c0_i32_2 = arith.constant 0 : i32
    return %c0_i32, %c0_i32_0, %c0_i32_1 : i32, i32, i32
  }
  func.func @transform_2(%arg0: i32) -> (i32, i32) {
    %c0_i32 = arith.constant 0 : i32
    %c0_i32_0 = arith.constant 0 : i32
    %c0_i32_1 = arith.constant 0 : i32
    return %c0_i32, %c0_i32_0 : i32, i32
  }
  func.func @transform_3(%arg0: i32) -> (i32, i32) {
    %c0_i32 = arith.constant 0 : i32
    %c0_i32_0 = arith.constant 0 : i32
    %c0_i32_1 = arith.constant 0 : i32
    return %c0_i32, %c0_i32_0 : i32, i32
  }
  func.func @transform_4(%arg0: i32) -> (i32, i32) {
    %c0_i32 = arith.constant 0 : i32
    %c0_i32_0 = arith.constant 0 : i32
    %c0_i32_1 = arith.constant 0 : i32
    return %c0_i32, %c0_i32_0 : i32, i32
  }
  func.func @transform_5(%arg0: i32) -> (i32, i32, i32) {
    %c0_i32 = arith.constant 0 : i32
    %c0_i32_0 = arith.constant 0 : i32
    %c0_i32_1 = arith.constant 0 : i32
    return %arg0, %c0_i32, %c0_i32_0 : i32, i32, i32
  }
}

module attributes {stable_mosaic.version = 11 : i64} {
  func.func @_dw_pw_kernel(%arg0: i32, %arg1: memref<1x16x32xbf16, #tpu.memory_space<vmem>>, %arg2: memref<1x16x32xbf16, #tpu.memory_space<vmem>>, %arg3: memref<1x16x32xbf16, #tpu.memory_space<vmem>>, %arg4: memref<1x16x32xbf16, #tpu.memory_space<vmem>>, %arg5: memref<9x1x32xf32, #tpu.memory_space<vmem>>, %arg6: memref<1x32xf32, #tpu.memory_space<vmem>>, %arg7: memref<32x32xbf16, #tpu.memory_space<vmem>>, %arg8: memref<1x32xf32, #tpu.memory_space<vmem>>, %arg9: memref<1x20x32xbf16, #tpu.memory_space<vmem>>) attributes {dimension_semantics = [#tpu.dimension_semantics<parallel>], iteration_bounds = array<i64: 2>, scalar_prefetch = 0 : i64, scratch_operands = 0 : i64, tpu.core_type = #tpu.core_type<tc>, window_params = [{transform_indices = @transform_0, window_bounds = array<i64: 1, 16, 32>}, {transform_indices = @transform_1, window_bounds = array<i64: 1, 16, 32>}, {transform_indices = @transform_2, window_bounds = array<i64: 1, 16, 32>}, {transform_indices = @transform_3, window_bounds = array<i64: 1, 16, 32>}, {pipeline_mode = #tpu.pipeline_mode<synchronous>, transform_indices = @transform_4, window_bounds = array<i64: 9, 1, 32>}, {pipeline_mode = #tpu.pipeline_mode<synchronous>, transform_indices = @transform_5, window_bounds = array<i64: 1, 32>}, {pipeline_mode = #tpu.pipeline_mode<synchronous>, transform_indices = @transform_6, window_bounds = array<i64: 32, 32>}, {pipeline_mode = #tpu.pipeline_mode<synchronous>, transform_indices = @transform_7, window_bounds = array<i64: 1, 32>}, {transform_indices = @transform_8, window_bounds = array<i64: 1, 20, 32>}]} {
    %c0 = arith.constant 0 : index
    %c0_0 = arith.constant 0 : index
    %c0_1 = arith.constant 0 : index
    %0 = vector.load %arg1[%c0, %c0_0, %c0_1] : memref<1x16x32xbf16, #tpu.memory_space<vmem>>, vector<1x8x32xbf16>
    %1 = vector.shape_cast %0 : vector<1x8x32xbf16> to vector<8x32xbf16>
    %2 = arith.extf %1 : vector<8x32xbf16> to vector<8x32xf32>
    %c0_2 = arith.constant 0 : index
    %c0_3 = arith.constant 0 : index
    %c0_4 = arith.constant 0 : index
    %3 = vector.load %arg5[%c0_2, %c0_3, %c0_4] : memref<9x1x32xf32, #tpu.memory_space<vmem>>, vector<1x1x32xf32>
    %4 = vector.shape_cast %3 : vector<1x1x32xf32> to vector<1x32xf32>
    %5 = vector.broadcast %4 : vector<1x32xf32> to vector<8x32xf32>
    %6 = arith.mulf %2, %5 : vector<8x32xf32>
    %c0_5 = arith.constant 0 : index
    %c0_6 = arith.constant 0 : index
    %c0_7 = arith.constant 0 : index
    %7 = vector.load %arg2[%c0_5, %c0_6, %c0_7] : memref<1x16x32xbf16, #tpu.memory_space<vmem>>, vector<1x8x32xbf16>
    %8 = vector.shape_cast %7 : vector<1x8x32xbf16> to vector<8x32xbf16>
    %9 = arith.extf %8 : vector<8x32xbf16> to vector<8x32xf32>
    %c1 = arith.constant 1 : index
    %c0_8 = arith.constant 0 : index
    %c0_9 = arith.constant 0 : index
    %10 = vector.load %arg5[%c1, %c0_8, %c0_9] : memref<9x1x32xf32, #tpu.memory_space<vmem>>, vector<1x1x32xf32>
    %11 = vector.shape_cast %10 : vector<1x1x32xf32> to vector<1x32xf32>
    %12 = vector.broadcast %11 : vector<1x32xf32> to vector<8x32xf32>
    %13 = arith.mulf %9, %12 : vector<8x32xf32>
    %c0_10 = arith.constant 0 : index
    %c1_11 = arith.constant 1 : index
    %c0_12 = arith.constant 0 : index
    %14 = vector.load %arg1[%c0_10, %c1_11, %c0_12] : memref<1x16x32xbf16, #tpu.memory_space<vmem>>, vector<1x8x32xbf16>
    %15 = vector.shape_cast %14 : vector<1x8x32xbf16> to vector<8x32xbf16>
    %16 = arith.extf %15 : vector<8x32xbf16> to vector<8x32xf32>
    %c2 = arith.constant 2 : index
    %c0_13 = arith.constant 0 : index
    %c0_14 = arith.constant 0 : index
    %17 = vector.load %arg5[%c2, %c0_13, %c0_14] : memref<9x1x32xf32, #tpu.memory_space<vmem>>, vector<1x1x32xf32>
    %18 = vector.shape_cast %17 : vector<1x1x32xf32> to vector<1x32xf32>
    %19 = vector.broadcast %18 : vector<1x32xf32> to vector<8x32xf32>
    %20 = arith.mulf %16, %19 : vector<8x32xf32>
    %c0_15 = arith.constant 0 : index
    %c0_16 = arith.constant 0 : index
    %c0_17 = arith.constant 0 : index
    %21 = vector.load %arg3[%c0_15, %c0_16, %c0_17] : memref<1x16x32xbf16, #tpu.memory_space<vmem>>, vector<1x8x32xbf16>
    %22 = vector.shape_cast %21 : vector<1x8x32xbf16> to vector<8x32xbf16>
    %23 = arith.extf %22 : vector<8x32xbf16> to vector<8x32xf32>
    %c3 = arith.constant 3 : index
    %c0_18 = arith.constant 0 : index
    %c0_19 = arith.constant 0 : index
    %24 = vector.load %arg5[%c3, %c0_18, %c0_19] : memref<9x1x32xf32, #tpu.memory_space<vmem>>, vector<1x1x32xf32>
    %25 = vector.shape_cast %24 : vector<1x1x32xf32> to vector<1x32xf32>
    %26 = vector.broadcast %25 : vector<1x32xf32> to vector<8x32xf32>
    %27 = arith.mulf %23, %26 : vector<8x32xf32>
    %c0_20 = arith.constant 0 : index
    %c0_21 = arith.constant 0 : index
    %c0_22 = arith.constant 0 : index
    %28 = vector.load %arg4[%c0_20, %c0_21, %c0_22] : memref<1x16x32xbf16, #tpu.memory_space<vmem>>, vector<1x8x32xbf16>
    %29 = vector.shape_cast %28 : vector<1x8x32xbf16> to vector<8x32xbf16>
    %30 = arith.extf %29 : vector<8x32xbf16> to vector<8x32xf32>
    %c4 = arith.constant 4 : index
    %c0_23 = arith.constant 0 : index
    %c0_24 = arith.constant 0 : index
    %31 = vector.load %arg5[%c4, %c0_23, %c0_24] : memref<9x1x32xf32, #tpu.memory_space<vmem>>, vector<1x1x32xf32>
    %32 = vector.shape_cast %31 : vector<1x1x32xf32> to vector<1x32xf32>
    %33 = vector.broadcast %32 : vector<1x32xf32> to vector<8x32xf32>
    %34 = arith.mulf %30, %33 : vector<8x32xf32>
    %c0_25 = arith.constant 0 : index
    %c1_26 = arith.constant 1 : index
    %c0_27 = arith.constant 0 : index
    %35 = vector.load %arg3[%c0_25, %c1_26, %c0_27] : memref<1x16x32xbf16, #tpu.memory_space<vmem>>, vector<1x8x32xbf16>
    %36 = vector.shape_cast %35 : vector<1x8x32xbf16> to vector<8x32xbf16>
    %37 = arith.extf %36 : vector<8x32xbf16> to vector<8x32xf32>
    %c5 = arith.constant 5 : index
    %c0_28 = arith.constant 0 : index
    %c0_29 = arith.constant 0 : index
    %38 = vector.load %arg5[%c5, %c0_28, %c0_29] : memref<9x1x32xf32, #tpu.memory_space<vmem>>, vector<1x1x32xf32>
    %39 = vector.shape_cast %38 : vector<1x1x32xf32> to vector<1x32xf32>
    %40 = vector.broadcast %39 : vector<1x32xf32> to vector<8x32xf32>
    %41 = arith.mulf %37, %40 : vector<8x32xf32>
    %c0_30 = arith.constant 0 : index
    %c4_31 = arith.constant 4 : index
    %c0_32 = arith.constant 0 : index
    %42 = vector.load %arg1[%c0_30, %c4_31, %c0_32] : memref<1x16x32xbf16, #tpu.memory_space<vmem>>, vector<1x8x32xbf16>
    %43 = vector.shape_cast %42 : vector<1x8x32xbf16> to vector<8x32xbf16>
    %44 = arith.extf %43 : vector<8x32xbf16> to vector<8x32xf32>
    %c6 = arith.constant 6 : index
    %c0_33 = arith.constant 0 : index
    %c0_34 = arith.constant 0 : index
    %45 = vector.load %arg5[%c6, %c0_33, %c0_34] : memref<9x1x32xf32, #tpu.memory_space<vmem>>, vector<1x1x32xf32>
    %46 = vector.shape_cast %45 : vector<1x1x32xf32> to vector<1x32xf32>
    %47 = vector.broadcast %46 : vector<1x32xf32> to vector<8x32xf32>
    %48 = arith.mulf %44, %47 : vector<8x32xf32>
    %c0_35 = arith.constant 0 : index
    %c4_36 = arith.constant 4 : index
    %c0_37 = arith.constant 0 : index
    %49 = vector.load %arg2[%c0_35, %c4_36, %c0_37] : memref<1x16x32xbf16, #tpu.memory_space<vmem>>, vector<1x8x32xbf16>
    %50 = vector.shape_cast %49 : vector<1x8x32xbf16> to vector<8x32xbf16>
    %51 = arith.extf %50 : vector<8x32xbf16> to vector<8x32xf32>
    %c7 = arith.constant 7 : index
    %c0_38 = arith.constant 0 : index
    %c0_39 = arith.constant 0 : index
    %52 = vector.load %arg5[%c7, %c0_38, %c0_39] : memref<9x1x32xf32, #tpu.memory_space<vmem>>, vector<1x1x32xf32>
    %53 = vector.shape_cast %52 : vector<1x1x32xf32> to vector<1x32xf32>
    %54 = vector.broadcast %53 : vector<1x32xf32> to vector<8x32xf32>
    %55 = arith.mulf %51, %54 : vector<8x32xf32>
    %c0_40 = arith.constant 0 : index
    %c5_41 = arith.constant 5 : index
    %c0_42 = arith.constant 0 : index
    %56 = vector.load %arg1[%c0_40, %c5_41, %c0_42] : memref<1x16x32xbf16, #tpu.memory_space<vmem>>, vector<1x8x32xbf16>
    %57 = vector.shape_cast %56 : vector<1x8x32xbf16> to vector<8x32xbf16>
    %58 = arith.extf %57 : vector<8x32xbf16> to vector<8x32xf32>
    %c8 = arith.constant 8 : index
    %c0_43 = arith.constant 0 : index
    %c0_44 = arith.constant 0 : index
    %59 = vector.load %arg5[%c8, %c0_43, %c0_44] : memref<9x1x32xf32, #tpu.memory_space<vmem>>, vector<1x1x32xf32>
    %60 = vector.shape_cast %59 : vector<1x1x32xf32> to vector<1x32xf32>
    %61 = vector.broadcast %60 : vector<1x32xf32> to vector<8x32xf32>
    %62 = arith.mulf %58, %61 : vector<8x32xf32>
    %63 = arith.addf %6, %13 : vector<8x32xf32>
    %64 = arith.addf %20, %27 : vector<8x32xf32>
    %65 = arith.addf %34, %41 : vector<8x32xf32>
    %66 = arith.addf %48, %55 : vector<8x32xf32>
    %67 = arith.addf %63, %64 : vector<8x32xf32>
    %68 = arith.addf %65, %66 : vector<8x32xf32>
    %69 = arith.addf %67, %68 : vector<8x32xf32>
    %70 = arith.addf %69, %62 : vector<8x32xf32>
    %c0_45 = arith.constant 0 : index
    %c0_46 = arith.constant 0 : index
    %71 = vector.load %arg6[%c0_45, %c0_46] : memref<1x32xf32, #tpu.memory_space<vmem>>, vector<1x32xf32>
    %72 = vector.broadcast %71 : vector<1x32xf32> to vector<8x32xf32>
    %73 = arith.addf %70, %72 : vector<8x32xf32>
    %cst = arith.constant 0.000000e+00 : f32
    %74 = vector.broadcast %cst : f32 to vector<8x32xf32>
    %75 = arith.maximumf %73, %74 : vector<8x32xf32>
    %76 = arith.truncf %75 : vector<8x32xf32> to vector<8x32xbf16>
    %c0_47 = arith.constant 0 : index
    %c0_48 = arith.constant 0 : index
    %77 = vector.load %arg7[%c0_47, %c0_48] : memref<32x32xbf16, #tpu.memory_space<vmem>>, vector<32x32xbf16>
    %cst_49 = arith.constant dense<0.000000e+00> : vector<8x32xf32>
    %78 = tpu.matmul %76, %77, %cst_49 {dimension_numbers = #tpu.dot_dimension_numbers<[1], [0], [0], [1], [0, 0, 1, 1], [], []>} : vector<8x32xbf16>, vector<32x32xbf16>, vector<8x32xf32> -> vector<8x32xf32>
    %c0_50 = arith.constant 0 : index
    %c0_51 = arith.constant 0 : index
    %79 = vector.load %arg8[%c0_50, %c0_51] : memref<1x32xf32, #tpu.memory_space<vmem>>, vector<1x32xf32>
    %80 = vector.broadcast %79 : vector<1x32xf32> to vector<8x32xf32>
    %81 = arith.addf %78, %80 : vector<8x32xf32>
    %cst_52 = arith.constant 0.000000e+00 : f32
    %82 = vector.broadcast %cst_52 : f32 to vector<8x32xf32>
    %83 = arith.maximumf %81, %82 : vector<8x32xf32>
    %84 = tpu.iota {dimensions = array<i32: 0>} : vector<8x32xi32>
    %c4_i32 = arith.constant 4 : i32
    %c0_i32 = arith.constant 0 : i32
    %85 = arith.cmpi eq, %c4_i32, %c0_i32 : i32
    %c1_i32 = arith.constant 1 : i32
    %86 = arith.select %85, %c1_i32, %c4_i32 : i32
    %87 = vector.broadcast %86 : i32 to vector<8x32xi32>
    %88 = arith.remsi %84, %87 : vector<8x32xi32>
    %c0_i32_53 = arith.constant 0 : i32
    %89 = vector.broadcast %c0_i32_53 : i32 to vector<8x32xi32>
    %90 = arith.cmpi ne, %88, %89 : vector<8x32xi32>
    %c0_i32_54 = arith.constant 0 : i32
    %91 = vector.broadcast %c0_i32_54 : i32 to vector<8x32xi32>
    %92 = arith.cmpi slt, %88, %91 : vector<8x32xi32>
    %c0_i32_55 = arith.constant 0 : i32
    %93 = arith.cmpi slt, %86, %c0_i32_55 : i32
    %94 = vector.broadcast %93 : i1 to vector<8x32xi1>
    %95 = vector.broadcast %94 : vector<8x32xi1> to vector<8x32xi1>
    %96 = arith.xori %92, %95 : vector<8x32xi1>
    %97 = arith.andi %96, %90 : vector<8x32xi1>
    %98 = vector.broadcast %86 : i32 to vector<8x32xi32>
    %99 = arith.addi %88, %98 : vector<8x32xi32>
    %100 = arith.select %97, %99, %88 : vector<8x32xi1>, vector<8x32xi32>
    %c2_i32 = arith.constant 2 : i32
    %101 = vector.broadcast %c2_i32 : i32 to vector<8x32xi32>
    %102 = arith.cmpi slt, %100, %101 : vector<8x32xi32>
    %cst_56 = arith.constant 0.000000e+00 : f32
    %103 = vector.broadcast %cst_56 : f32 to vector<8x32xf32>
    %104 = arith.select %102, %83, %103 : vector<8x32xi1>, vector<8x32xf32>
    %cst_57 = arith.constant 0.000000e+00 : bf16
    %105 = vector.broadcast %cst_57 : bf16 to vector<5x32xbf16>
    %c0_58 = arith.constant 0 : index
    %c0_59 = arith.constant 0 : index
    %c0_60 = arith.constant 0 : index
    %106 = vector.load %arg9[%c0_58, %c0_59, %c0_60] : memref<1x20x32xbf16, #tpu.memory_space<vmem>>, vector<1x5x32xbf16>
    %107 = vector.shape_cast %106 : vector<1x5x32xbf16> to vector<5x32xbf16>
    %108 = vector.shape_cast %105 : vector<5x32xbf16> to vector<1x5x32xbf16>
    tpu.vector_store %arg9[%c0_58, %c0_59, %c0_60], %108 {strides = array<i32>} : memref<1x20x32xbf16, #tpu.memory_space<vmem>>, vector<1x5x32xbf16>,
    %cst_61 = arith.constant 0.000000e+00 : bf16
    %109 = vector.broadcast %cst_61 : bf16 to vector<7x32xbf16>
    %c0_62 = arith.constant 0 : index
    %c13 = arith.constant 13 : index
    %c0_63 = arith.constant 0 : index
    %110 = vector.load %arg9[%c0_62, %c13, %c0_63] : memref<1x20x32xbf16, #tpu.memory_space<vmem>>, vector<1x7x32xbf16>
    %111 = vector.shape_cast %110 : vector<1x7x32xbf16> to vector<7x32xbf16>
    %112 = vector.shape_cast %109 : vector<7x32xbf16> to vector<1x7x32xbf16>
    tpu.vector_store %arg9[%c0_62, %c13, %c0_63], %112 {strides = array<i32>} : memref<1x20x32xbf16, #tpu.memory_space<vmem>>, vector<1x7x32xbf16>,
    %113 = arith.truncf %104 : vector<8x32xf32> to vector<8x32xbf16>
    %c0_64 = arith.constant 0 : index
    %c5_65 = arith.constant 5 : index
    %c0_66 = arith.constant 0 : index
    %114 = vector.load %arg9[%c0_64, %c5_65, %c0_66] : memref<1x20x32xbf16, #tpu.memory_space<vmem>>, vector<1x8x32xbf16>
    %115 = vector.shape_cast %114 : vector<1x8x32xbf16> to vector<8x32xbf16>
    %116 = vector.shape_cast %113 : vector<8x32xbf16> to vector<1x8x32xbf16>
    tpu.vector_store %arg9[%c0_64, %c5_65, %c0_66], %116 {strides = array<i32>} : memref<1x20x32xbf16, #tpu.memory_space<vmem>>, vector<1x8x32xbf16>,
    return
  }
  func.func @transform_0(%arg0: i32) -> (i32, i32, i32) {
    %c0_i32 = arith.constant 0 : i32
    %c0_i32_0 = arith.constant 0 : i32
    %c0_i32_1 = arith.constant 0 : i32
    return %arg0, %c0_i32, %c0_i32_0 : i32, i32, i32
  }
  func.func @transform_1(%arg0: i32) -> (i32, i32, i32) {
    %c0_i32 = arith.constant 0 : i32
    %c0_i32_0 = arith.constant 0 : i32
    %c0_i32_1 = arith.constant 0 : i32
    return %arg0, %c0_i32, %c0_i32_0 : i32, i32, i32
  }
  func.func @transform_2(%arg0: i32) -> (i32, i32, i32) {
    %c0_i32 = arith.constant 0 : i32
    %c0_i32_0 = arith.constant 0 : i32
    %c0_i32_1 = arith.constant 0 : i32
    return %arg0, %c0_i32, %c0_i32_0 : i32, i32, i32
  }
  func.func @transform_3(%arg0: i32) -> (i32, i32, i32) {
    %c0_i32 = arith.constant 0 : i32
    %c0_i32_0 = arith.constant 0 : i32
    %c0_i32_1 = arith.constant 0 : i32
    return %arg0, %c0_i32, %c0_i32_0 : i32, i32, i32
  }
  func.func @transform_4(%arg0: i32) -> (i32, i32, i32) {
    %c0_i32 = arith.constant 0 : i32
    %c0_i32_0 = arith.constant 0 : i32
    %c0_i32_1 = arith.constant 0 : i32
    %c0_i32_2 = arith.constant 0 : i32
    return %c0_i32, %c0_i32_0, %c0_i32_1 : i32, i32, i32
  }
  func.func @transform_5(%arg0: i32) -> (i32, i32) {
    %c0_i32 = arith.constant 0 : i32
    %c0_i32_0 = arith.constant 0 : i32
    %c0_i32_1 = arith.constant 0 : i32
    return %c0_i32, %c0_i32_0 : i32, i32
  }
  func.func @transform_6(%arg0: i32) -> (i32, i32) {
    %c0_i32 = arith.constant 0 : i32
    %c0_i32_0 = arith.constant 0 : i32
    %c0_i32_1 = arith.constant 0 : i32
    return %c0_i32, %c0_i32_0 : i32, i32
  }
  func.func @transform_7(%arg0: i32) -> (i32, i32) {
    %c0_i32 = arith.constant 0 : i32
    %c0_i32_0 = arith.constant 0 : i32
    %c0_i32_1 = arith.constant 0 : i32
    return %c0_i32, %c0_i32_0 : i32, i32
  }
  func.func @transform_8(%arg0: i32) -> (i32, i32, i32) {
    %c0_i32 = arith.constant 0 : i32
    %c0_i32_0 = arith.constant 0 : i32
    %c0_i32_1 = arith.constant 0 : i32
    return %arg0, %c0_i32, %c0_i32_0 : i32, i32, i32
  }
}

module attributes {stable_mosaic.version = 11 : i64} {
  func.func @_dw_pw_kernel(%arg0: i32, %arg1: memref<1x20x32xbf16, #tpu.memory_space<vmem>>, %arg2: memref<9x1x32xf32, #tpu.memory_space<vmem>>, %arg3: memref<1x32xf32, #tpu.memory_space<vmem>>, %arg4: memref<32x64xbf16, #tpu.memory_space<vmem>>, %arg5: memref<1x64xf32, #tpu.memory_space<vmem>>, %arg6: memref<1x1x64xf32, #tpu.memory_space<vmem>>) attributes {dimension_semantics = [#tpu.dimension_semantics<parallel>], iteration_bounds = array<i64: 2>, scalar_prefetch = 0 : i64, scratch_operands = 0 : i64, tpu.core_type = #tpu.core_type<tc>, window_params = [{transform_indices = @transform_0, window_bounds = array<i64: 1, 20, 32>}, {pipeline_mode = #tpu.pipeline_mode<synchronous>, transform_indices = @transform_1, window_bounds = array<i64: 9, 1, 32>}, {pipeline_mode = #tpu.pipeline_mode<synchronous>, transform_indices = @transform_2, window_bounds = array<i64: 1, 32>}, {pipeline_mode = #tpu.pipeline_mode<synchronous>, transform_indices = @transform_3, window_bounds = array<i64: 32, 64>}, {pipeline_mode = #tpu.pipeline_mode<synchronous>, transform_indices = @transform_4, window_bounds = array<i64: 1, 64>}, {transform_indices = @transform_5, window_bounds = array<i64: 1, 1, 64>}]} {
    %c0 = arith.constant 0 : index
    %c0_0 = arith.constant 0 : index
    %c0_1 = arith.constant 0 : index
    %0 = vector.load %arg1[%c0, %c0_0, %c0_1] : memref<1x20x32xbf16, #tpu.memory_space<vmem>>, vector<1x8x32xbf16>
    %1 = vector.shape_cast %0 : vector<1x8x32xbf16> to vector<8x32xbf16>
    %2 = arith.extf %1 : vector<8x32xbf16> to vector<8x32xf32>
    %c0_2 = arith.constant 0 : index
    %c0_3 = arith.constant 0 : index
    %c0_4 = arith.constant 0 : index
    %3 = vector.load %arg2[%c0_2, %c0_3, %c0_4] : memref<9x1x32xf32, #tpu.memory_space<vmem>>, vector<1x1x32xf32>
    %4 = vector.shape_cast %3 : vector<1x1x32xf32> to vector<1x32xf32>
    %5 = vector.broadcast %4 : vector<1x32xf32> to vector<8x32xf32>
    %6 = arith.mulf %2, %5 : vector<8x32xf32>
    %c0_5 = arith.constant 0 : index
    %c1 = arith.constant 1 : index
    %c0_6 = arith.constant 0 : index
    %7 = vector.load %arg1[%c0_5, %c1, %c0_6] : memref<1x20x32xbf16, #tpu.memory_space<vmem>>, vector<1x8x32xbf16>
    %8 = vector.shape_cast %7 : vector<1x8x32xbf16> to vector<8x32xbf16>
    %9 = arith.extf %8 : vector<8x32xbf16> to vector<8x32xf32>
    %c1_7 = arith.constant 1 : index
    %c0_8 = arith.constant 0 : index
    %c0_9 = arith.constant 0 : index
    %10 = vector.load %arg2[%c1_7, %c0_8, %c0_9] : memref<9x1x32xf32, #tpu.memory_space<vmem>>, vector<1x1x32xf32>
    %11 = vector.shape_cast %10 : vector<1x1x32xf32> to vector<1x32xf32>
    %12 = vector.broadcast %11 : vector<1x32xf32> to vector<8x32xf32>
    %13 = arith.mulf %9, %12 : vector<8x32xf32>
    %c0_10 = arith.constant 0 : index
    %c2 = arith.constant 2 : index
    %c0_11 = arith.constant 0 : index
    %14 = vector.load %arg1[%c0_10, %c2, %c0_11] : memref<1x20x32xbf16, #tpu.memory_space<vmem>>, vector<1x8x32xbf16>
    %15 = vector.shape_cast %14 : vector<1x8x32xbf16> to vector<8x32xbf16>
    %16 = arith.extf %15 : vector<8x32xbf16> to vector<8x32xf32>
    %c2_12 = arith.constant 2 : index
    %c0_13 = arith.constant 0 : index
    %c0_14 = arith.constant 0 : index
    %17 = vector.load %arg2[%c2_12, %c0_13, %c0_14] : memref<9x1x32xf32, #tpu.memory_space<vmem>>, vector<1x1x32xf32>
    %18 = vector.shape_cast %17 : vector<1x1x32xf32> to vector<1x32xf32>
    %19 = vector.broadcast %18 : vector<1x32xf32> to vector<8x32xf32>
    %20 = arith.mulf %16, %19 : vector<8x32xf32>
    %c0_15 = arith.constant 0 : index
    %c4 = arith.constant 4 : index
    %c0_16 = arith.constant 0 : index
    %21 = vector.load %arg1[%c0_15, %c4, %c0_16] : memref<1x20x32xbf16, #tpu.memory_space<vmem>>, vector<1x8x32xbf16>
    %22 = vector.shape_cast %21 : vector<1x8x32xbf16> to vector<8x32xbf16>
    %23 = arith.extf %22 : vector<8x32xbf16> to vector<8x32xf32>
    %c3 = arith.constant 3 : index
    %c0_17 = arith.constant 0 : index
    %c0_18 = arith.constant 0 : index
    %24 = vector.load %arg2[%c3, %c0_17, %c0_18] : memref<9x1x32xf32, #tpu.memory_space<vmem>>, vector<1x1x32xf32>
    %25 = vector.shape_cast %24 : vector<1x1x32xf32> to vector<1x32xf32>
    %26 = vector.broadcast %25 : vector<1x32xf32> to vector<8x32xf32>
    %27 = arith.mulf %23, %26 : vector<8x32xf32>
    %c0_19 = arith.constant 0 : index
    %c5 = arith.constant 5 : index
    %c0_20 = arith.constant 0 : index
    %28 = vector.load %arg1[%c0_19, %c5, %c0_20] : memref<1x20x32xbf16, #tpu.memory_space<vmem>>, vector<1x8x32xbf16>
    %29 = vector.shape_cast %28 : vector<1x8x32xbf16> to vector<8x32xbf16>
    %30 = arith.extf %29 : vector<8x32xbf16> to vector<8x32xf32>
    %c4_21 = arith.constant 4 : index
    %c0_22 = arith.constant 0 : index
    %c0_23 = arith.constant 0 : index
    %31 = vector.load %arg2[%c4_21, %c0_22, %c0_23] : memref<9x1x32xf32, #tpu.memory_space<vmem>>, vector<1x1x32xf32>
    %32 = vector.shape_cast %31 : vector<1x1x32xf32> to vector<1x32xf32>
    %33 = vector.broadcast %32 : vector<1x32xf32> to vector<8x32xf32>
    %34 = arith.mulf %30, %33 : vector<8x32xf32>
    %c0_24 = arith.constant 0 : index
    %c6 = arith.constant 6 : index
    %c0_25 = arith.constant 0 : index
    %35 = vector.load %arg1[%c0_24, %c6, %c0_25] : memref<1x20x32xbf16, #tpu.memory_space<vmem>>, vector<1x8x32xbf16>
    %36 = vector.shape_cast %35 : vector<1x8x32xbf16> to vector<8x32xbf16>
    %37 = arith.extf %36 : vector<8x32xbf16> to vector<8x32xf32>
    %c5_26 = arith.constant 5 : index
    %c0_27 = arith.constant 0 : index
    %c0_28 = arith.constant 0 : index
    %38 = vector.load %arg2[%c5_26, %c0_27, %c0_28] : memref<9x1x32xf32, #tpu.memory_space<vmem>>, vector<1x1x32xf32>
    %39 = vector.shape_cast %38 : vector<1x1x32xf32> to vector<1x32xf32>
    %40 = vector.broadcast %39 : vector<1x32xf32> to vector<8x32xf32>
    %41 = arith.mulf %37, %40 : vector<8x32xf32>
    %c0_29 = arith.constant 0 : index
    %c8 = arith.constant 8 : index
    %c0_30 = arith.constant 0 : index
    %42 = vector.load %arg1[%c0_29, %c8, %c0_30] : memref<1x20x32xbf16, #tpu.memory_space<vmem>>, vector<1x8x32xbf16>
    %43 = vector.shape_cast %42 : vector<1x8x32xbf16> to vector<8x32xbf16>
    %44 = arith.extf %43 : vector<8x32xbf16> to vector<8x32xf32>
    %c6_31 = arith.constant 6 : index
    %c0_32 = arith.constant 0 : index
    %c0_33 = arith.constant 0 : index
    %45 = vector.load %arg2[%c6_31, %c0_32, %c0_33] : memref<9x1x32xf32, #tpu.memory_space<vmem>>, vector<1x1x32xf32>
    %46 = vector.shape_cast %45 : vector<1x1x32xf32> to vector<1x32xf32>
    %47 = vector.broadcast %46 : vector<1x32xf32> to vector<8x32xf32>
    %48 = arith.mulf %44, %47 : vector<8x32xf32>
    %c0_34 = arith.constant 0 : index
    %c9 = arith.constant 9 : index
    %c0_35 = arith.constant 0 : index
    %49 = vector.load %arg1[%c0_34, %c9, %c0_35] : memref<1x20x32xbf16, #tpu.memory_space<vmem>>, vector<1x8x32xbf16>
    %50 = vector.shape_cast %49 : vector<1x8x32xbf16> to vector<8x32xbf16>
    %51 = arith.extf %50 : vector<8x32xbf16> to vector<8x32xf32>
    %c7 = arith.constant 7 : index
    %c0_36 = arith.constant 0 : index
    %c0_37 = arith.constant 0 : index
    %52 = vector.load %arg2[%c7, %c0_36, %c0_37] : memref<9x1x32xf32, #tpu.memory_space<vmem>>, vector<1x1x32xf32>
    %53 = vector.shape_cast %52 : vector<1x1x32xf32> to vector<1x32xf32>
    %54 = vector.broadcast %53 : vector<1x32xf32> to vector<8x32xf32>
    %55 = arith.mulf %51, %54 : vector<8x32xf32>
    %c0_38 = arith.constant 0 : index
    %c10 = arith.constant 10 : index
    %c0_39 = arith.constant 0 : index
    %56 = vector.load %arg1[%c0_38, %c10, %c0_39] : memref<1x20x32xbf16, #tpu.memory_space<vmem>>, vector<1x8x32xbf16>
    %57 = vector.shape_cast %56 : vector<1x8x32xbf16> to vector<8x32xbf16>
    %58 = arith.extf %57 : vector<8x32xbf16> to vector<8x32xf32>
    %c8_40 = arith.constant 8 : index
    %c0_41 = arith.constant 0 : index
    %c0_42 = arith.constant 0 : index
    %59 = vector.load %arg2[%c8_40, %c0_41, %c0_42] : memref<9x1x32xf32, #tpu.memory_space<vmem>>, vector<1x1x32xf32>
    %60 = vector.shape_cast %59 : vector<1x1x32xf32> to vector<1x32xf32>
    %61 = vector.broadcast %60 : vector<1x32xf32> to vector<8x32xf32>
    %62 = arith.mulf %58, %61 : vector<8x32xf32>
    %63 = arith.addf %6, %13 : vector<8x32xf32>
    %64 = arith.addf %20, %27 : vector<8x32xf32>
    %65 = arith.addf %34, %41 : vector<8x32xf32>
    %66 = arith.addf %48, %55 : vector<8x32xf32>
    %67 = arith.addf %63, %64 : vector<8x32xf32>
    %68 = arith.addf %65, %66 : vector<8x32xf32>
    %69 = arith.addf %67, %68 : vector<8x32xf32>
    %70 = arith.addf %69, %62 : vector<8x32xf32>
    %c0_43 = arith.constant 0 : index
    %c0_44 = arith.constant 0 : index
    %71 = vector.load %arg3[%c0_43, %c0_44] : memref<1x32xf32, #tpu.memory_space<vmem>>, vector<1x32xf32>
    %72 = vector.broadcast %71 : vector<1x32xf32> to vector<8x32xf32>
    %73 = arith.addf %70, %72 : vector<8x32xf32>
    %cst = arith.constant 0.000000e+00 : f32
    %74 = vector.broadcast %cst : f32 to vector<8x32xf32>
    %75 = arith.maximumf %73, %74 : vector<8x32xf32>
    %76 = arith.truncf %75 : vector<8x32xf32> to vector<8x32xbf16>
    %c0_45 = arith.constant 0 : index
    %c0_46 = arith.constant 0 : index
    %77 = vector.load %arg4[%c0_45, %c0_46] : memref<32x64xbf16, #tpu.memory_space<vmem>>, vector<32x64xbf16>
    %cst_47 = arith.constant dense<0.000000e+00> : vector<8x64xf32>
    %78 = tpu.matmul %76, %77, %cst_47 {dimension_numbers = #tpu.dot_dimension_numbers<[1], [0], [0], [1], [0, 0, 1, 1], [], []>} : vector<8x32xbf16>, vector<32x64xbf16>, vector<8x64xf32> -> vector<8x64xf32>
    %c0_48 = arith.constant 0 : index
    %c0_49 = arith.constant 0 : index
    %79 = vector.load %arg5[%c0_48, %c0_49] : memref<1x64xf32, #tpu.memory_space<vmem>>, vector<1x64xf32>
    %80 = vector.broadcast %79 : vector<1x64xf32> to vector<8x64xf32>
    %81 = arith.addf %78, %80 : vector<8x64xf32>
    %cst_50 = arith.constant 0.000000e+00 : f32
    %82 = vector.broadcast %cst_50 : f32 to vector<8x64xf32>
    %83 = arith.maximumf %81, %82 : vector<8x64xf32>
    %84 = tpu.iota {dimensions = array<i32: 0>} : vector<8x64xi32>
    %c4_i32 = arith.constant 4 : i32
    %c0_i32 = arith.constant 0 : i32
    %85 = arith.cmpi eq, %c4_i32, %c0_i32 : i32
    %c1_i32 = arith.constant 1 : i32
    %86 = arith.select %85, %c1_i32, %c4_i32 : i32
    %87 = vector.broadcast %86 : i32 to vector<8x64xi32>
    %88 = arith.remsi %84, %87 : vector<8x64xi32>
    %c0_i32_51 = arith.constant 0 : i32
    %89 = vector.broadcast %c0_i32_51 : i32 to vector<8x64xi32>
    %90 = arith.cmpi ne, %88, %89 : vector<8x64xi32>
    %c0_i32_52 = arith.constant 0 : i32
    %91 = vector.broadcast %c0_i32_52 : i32 to vector<8x64xi32>
    %92 = arith.cmpi slt, %88, %91 : vector<8x64xi32>
    %c0_i32_53 = arith.constant 0 : i32
    %93 = arith.cmpi slt, %86, %c0_i32_53 : i32
    %94 = vector.broadcast %93 : i1 to vector<8x64xi1>
    %95 = vector.broadcast %94 : vector<8x64xi1> to vector<8x64xi1>
    %96 = arith.xori %92, %95 : vector<8x64xi1>
    %97 = arith.andi %96, %90 : vector<8x64xi1>
    %98 = vector.broadcast %86 : i32 to vector<8x64xi32>
    %99 = arith.addi %88, %98 : vector<8x64xi32>
    %100 = arith.select %97, %99, %88 : vector<8x64xi1>, vector<8x64xi32>
    %c2_i32 = arith.constant 2 : i32
    %101 = vector.broadcast %c2_i32 : i32 to vector<8x64xi32>
    %102 = arith.cmpi slt, %100, %101 : vector<8x64xi32>
    %cst_54 = arith.constant 0.000000e+00 : f32
    %103 = vector.broadcast %cst_54 : f32 to vector<8x64xf32>
    %104 = arith.select %102, %83, %103 : vector<8x64xi1>, vector<8x64xf32>
    %cst_55 = arith.constant dense<0.000000e+00> : vector<64xf32>
    %105 = vector.multi_reduction <add>, %104, %cst_55 [0] : vector<8x64xf32> to vector<64xf32>
    %106 = vector.shape_cast %105 : vector<64xf32> to vector<1x64xf32>
    %cst_56 = arith.constant 2.500000e-01 : f32
    %107 = vector.broadcast %cst_56 : f32 to vector<1x64xf32>
    %108 = arith.mulf %106, %107 : vector<1x64xf32>
    %109 = vector.shape_cast %108 : vector<1x64xf32> to vector<1x1x64xf32>
    %c0_57 = arith.constant 0 : index
    %c0_58 = arith.constant 0 : index
    %c0_59 = arith.constant 0 : index
    %110 = vector.load %arg6[%c0_57, %c0_58, %c0_59] : memref<1x1x64xf32, #tpu.memory_space<vmem>>, vector<1x1x64xf32>
    tpu.vector_store %arg6[%c0_57, %c0_58, %c0_59], %109 {strides = array<i32>} : memref<1x1x64xf32, #tpu.memory_space<vmem>>, vector<1x1x64xf32>,
    return
  }
  func.func @transform_0(%arg0: i32) -> (i32, i32, i32) {
    %c0_i32 = arith.constant 0 : i32
    %c0_i32_0 = arith.constant 0 : i32
    %c0_i32_1 = arith.constant 0 : i32
    return %arg0, %c0_i32, %c0_i32_0 : i32, i32, i32
  }
  func.func @transform_1(%arg0: i32) -> (i32, i32, i32) {
    %c0_i32 = arith.constant 0 : i32
    %c0_i32_0 = arith.constant 0 : i32
    %c0_i32_1 = arith.constant 0 : i32
    %c0_i32_2 = arith.constant 0 : i32
    return %c0_i32, %c0_i32_0, %c0_i32_1 : i32, i32, i32
  }
  func.func @transform_2(%arg0: i32) -> (i32, i32) {
    %c0_i32 = arith.constant 0 : i32
    %c0_i32_0 = arith.constant 0 : i32
    %c0_i32_1 = arith.constant 0 : i32
    return %c0_i32, %c0_i32_0 : i32, i32
  }
  func.func @transform_3(%arg0: i32) -> (i32, i32) {
    %c0_i32 = arith.constant 0 : i32
    %c0_i32_0 = arith.constant 0 : i32
    %c0_i32_1 = arith.constant 0 : i32
    return %c0_i32, %c0_i32_0 : i32, i32
  }
  func.func @transform_4(%arg0: i32) -> (i32, i32) {
    %c0_i32 = arith.constant 0 : i32
    %c0_i32_0 = arith.constant 0 : i32
    %c0_i32_1 = arith.constant 0 : i32
    return %c0_i32, %c0_i32_0 : i32, i32
  }
  func.func @transform_5(%arg0: i32) -> (i32, i32, i32) {
    %c0_i32 = arith.constant 0 : i32
    %c0_i32_0 = arith.constant 0 : i32
    %c0_i32_1 = arith.constant 0 : i32
    return %arg0, %c0_i32, %c0_i32_0 : i32, i32, i32
  }
}

module attributes {stable_mosaic.version = 11 : i64} {
  func.func @_linear_kernel(%arg0: i32, %arg1: memref<2x64xbf16, #tpu.memory_space<vmem>>, %arg2: memref<64x10xbf16, #tpu.memory_space<vmem>>, %arg3: memref<1x10xf32, #tpu.memory_space<vmem>>, %arg4: memref<2x10xf32, #tpu.memory_space<vmem>>) attributes {dimension_semantics = [#tpu.dimension_semantics<arbitrary>], iteration_bounds = array<i64: 1>, scalar_prefetch = 0 : i64, scratch_operands = 0 : i64, tpu.core_type = #tpu.core_type<tc>, window_params = [{pipeline_mode = #tpu.pipeline_mode<synchronous>, transform_indices = @transform_0, window_bounds = array<i64: 2, 64>}, {pipeline_mode = #tpu.pipeline_mode<synchronous>, transform_indices = @transform_1, window_bounds = array<i64: 64, 10>}, {pipeline_mode = #tpu.pipeline_mode<synchronous>, transform_indices = @transform_2, window_bounds = array<i64: 1, 10>}, {pipeline_mode = #tpu.pipeline_mode<synchronous>, transform_indices = @transform_3, window_bounds = array<i64: 2, 10>}]} {
    %c0 = arith.constant 0 : index
    %c0_0 = arith.constant 0 : index
    %0 = vector.load %arg1[%c0, %c0_0] : memref<2x64xbf16, #tpu.memory_space<vmem>>, vector<2x64xbf16>
    %c0_1 = arith.constant 0 : index
    %c0_2 = arith.constant 0 : index
    %1 = vector.load %arg2[%c0_1, %c0_2] : memref<64x10xbf16, #tpu.memory_space<vmem>>, vector<64x10xbf16>
    %cst = arith.constant dense<0.000000e+00> : vector<2x10xf32>
    %2 = tpu.matmul %0, %1, %cst {dimension_numbers = #tpu.dot_dimension_numbers<[1], [0], [0], [1], [0, 0, 1, 1], [], []>} : vector<2x64xbf16>, vector<64x10xbf16>, vector<2x10xf32> -> vector<2x10xf32>
    %c0_3 = arith.constant 0 : index
    %c0_4 = arith.constant 0 : index
    %3 = vector.load %arg3[%c0_3, %c0_4] : memref<1x10xf32, #tpu.memory_space<vmem>>, vector<1x10xf32>
    %4 = vector.broadcast %3 : vector<1x10xf32> to vector<2x10xf32>
    %5 = arith.addf %2, %4 : vector<2x10xf32>
    %c0_5 = arith.constant 0 : index
    %c0_6 = arith.constant 0 : index
    %6 = vector.load %arg4[%c0_5, %c0_6] : memref<2x10xf32, #tpu.memory_space<vmem>>, vector<2x10xf32>
    tpu.vector_store %arg4[%c0_5, %c0_6], %5 {strides = array<i32>} : memref<2x10xf32, #tpu.memory_space<vmem>>, vector<2x10xf32>,
    return
  }
  func.func @transform_0(%arg0: i32) -> (i32, i32) {
    %c0_i32 = arith.constant 0 : i32
    %c0_i32_0 = arith.constant 0 : i32
    %c0_i32_1 = arith.constant 0 : i32
    return %c0_i32, %c0_i32_0 : i32, i32
  }
  func.func @transform_1(%arg0: i32) -> (i32, i32) {
    %c0_i32 = arith.constant 0 : i32
    %c0_i32_0 = arith.constant 0 : i32
    %c0_i32_1 = arith.constant 0 : i32
    return %c0_i32, %c0_i32_0 : i32, i32
  }
  func.func @transform_2(%arg0: i32) -> (i32, i32) {
    %c0_i32 = arith.constant 0 : i32
    %c0_i32_0 = arith.constant 0 : i32
    %c0_i32_1 = arith.constant 0 : i32
    return %c0_i32, %c0_i32_0 : i32, i32
  }
  func.func @transform_3(%arg0: i32) -> (i32, i32) {
    %c0_i32 = arith.constant 0 : i32
    %c0_i32_0 = arith.constant 0 : i32
    %c0_i32_1 = arith.constant 0 : i32
    return %c0_i32, %c0_i32_0 : i32, i32
  }
}

</mosaic_0001>

<bundles_post_ra>
// kernel: fwd.10
= control target key start
LH: loop header
LB: loop body
LE: loop exit
PB: predicated region body
PF: predicated region fallthrough
CT: control target
= control target key end

     0   :  { %s878_s18 = smov 0   ;;  %s1117_s0 = inlined_call_operand.vmem [shape: bf16[2,42,16], index: 0, kind: input, shape index: {}]   ;;  %s1118_s1 = inlined_call_operand.vmem [shape: f32[9,1,16], index: 1, kind: input, shape index: {}]   ;;  %s1119_s2 = inlined_call_operand.vmem [shape: f32[1,16], index: 2, kind: input, shape index: {}]   ;;  %s1120_s3 = inlined_call_operand.vmem [shape: bf16[16,32], index: 3, kind: input, shape index: {}]   ;;  %s1121_s4 = inlined_call_operand.vmem [shape: f32[1,32], index: 4, kind: input, shape index: {}]   ;;  %s1122_s5 = inlined_call_operand.vmem [shape: bf16[2,42,32], index: 5, kind: output, shape index: {}]  }
   0x1 LB: > { %s772_s19 = sadd.s32 4294967295, %s845_s18   ;;  %p776_p0 = scmp.ge.s32.totalorder %s845_s18, 1  ;;  %s845_s18 = sphi %s878_s18, %s15_s18  }
   0x2   : > { %p187_p1 = scmp.lt.s32.totalorder %s845_s18, 3 }
   0x4   : > { %p188_p2 = pnand %p776_p0, %p187_p1 }
   0x5   : > { %p215_p3 = scmp.lt.s32.totalorder (!%p188_p2), %s772_s19, 1 }
   0x6   : > { %191 = sbr.rel (%p188_p2) target bundleno = 280 (0x118), region = 40 }
   0xb   : > { %v838_v0 = vld [vmem:[%s1120_s3] sm:$0xff]   ;;  %s1128_s19 = smov (!%p215_p3, %s772_s19), 1  ;;  %vm359_vm0 = vcmask 1046528   ;;  %vm377_vm1 = vcmask 1043456   ;;  %vm432_vm2 = vcmask 1045504   ;;  %vm450_vm3 = vcmask 1042432  }
   0xc   : > { %816 = vmatprep.subr.bf16.mxu0 %v838_v0  ;;  %s822_s22 = smul.u32 24, %s1128_s19  ;;  %v902_v1 = vld [vmem:[%s1118_s1] ss:$0 sm:$0xff]  ;;  %v907_v2 = vld [vmem:[%s1118_s1 + $0x1] ss:$0 sm:$0xff]  ;;  %vm488_vm4 = vcmask 1041408  }
   0xd   : > { %817 = vmatpush3.bf16.msra.mxu0 %v838_v0  ;;  %v918_v12 = vld [vmem:[%s1118_s1 + $0x2] ss:$0 sm:$0xff]  ;;  %v785_v16 = vld [vmem:[%s1118_s1 + $0x3] ss:$0 sm:$0xff]  ;;  %v936_v23 = vld [vmem:[%s1118_s1 + $0x4] ss:$0 sm:$0xff] }
   0xe   : > { %s897_s25 = scalar_lea.vmem %s1117_s0, %s822_s22  ;;  %v789_v24 = vld [vmem:[%s1118_s1 + $0x5] ss:$0 sm:$0xff]  ;;  %v952_v29 = vld [vmem:[%s1118_s1 + $0x6] ss:$0 sm:$0xff]  ;;  %v793_v35 = vld [vmem:[%s1118_s1 + $0x7] ss:$0 sm:$0xff]  ;;  %s1063_s26 = scalar_lea.vmem %s1122_s5, %s822_s22 }
   0xf   : > { %v810_v3 = vld [vmem:[%s897_s25] sm:$0xff]   ;;  %v228_v4 = vld [vmem:[%s897_s25 + $0x8] sm:$0xff]   ;;  %v955_v30 = vld [vmem:[%s897_s25 + $0x10] sm:$0x7]  ;;  %vm470_vm5 = vcmask 1040384   ;;  %vm532_vm6 = vcmask 130048  }
  0x10   : > { %v256_v5 = vld [vmem:[%s897_s25] sm:$0xe]  ;;  %v811_v6 = vunpack.c.l.bf16 %v810_v3  ;;  %v271_v9 = vld [vmem:[%s897_s25 + $0xc] sm:$0x7]  ;;  %v311_v10 = vld [vmem:[%s897_s25 + $0x4] sm:$0xc]  ;;  %v812_v11 = vunpack.c.h.bf16 %v810_v3  ;;  %v920_v15 = vunpack.c.l.bf16 %v228_v4  ;;  %v925_v17 = vunpack.c.h.bf16 %v228_v4 }
  0x11   : > { %v257_v7 = vunpack.c.l.bf16 %v256_v5  ;;  %v270_v8 = vld [vmem:[%s897_s25] sm:$0x8]  ;;  %v273_v14 = vunpack.c.l.bf16 %v271_v9  ;;  %v313_v18 = vunpack.c.l.bf16 %v311_v10  ;;  %v341_v36 = vld [vmem:[%s897_s25 + $0x4] sm:$0x8]  ;;  %v328_v44 = vunpack.c.l.bf16 %v955_v30  ;;  %v981_v49 = vld [vmem:[%s1118_s1 + $0x8] ss:$0 sm:$0xff] }
  0x12   : > { %v272_v13 = vunpack.c.l.bf16 %v270_v8  ;;  %v239_v19 = vmul.f32 %v811_v6, %v902_v1  ;;  %v929_v20 = vmul.f32 %v812_v11, %v902_v1  ;;  %v252_v21 = vmul.f32 %v811_v6, %v907_v2 }
  0x13   : > { %v253_v22 = vmul.f32 %v812_v11, %v907_v2  ;;  %v943_v25 = vmul.f32 %v907_v2, %v920_v15  ;;  %v266_v26 = vmul.f32 %v918_v12, %v257_v7  ;;  %v267_v27 = vmul.f32 %v812_v11, %v918_v12 }
  0x14   : > { %v268_v28 = vmul.f32 %v918_v12, %v920_v15  ;;  %v282_v31 = vmul.f32 %v785_v16, %v272_v13  ;;  %v283_v32 = vmul.f32 %v812_v11, %v785_v16  ;;  %v284_v33 = vmul.f32 %v785_v16, %v920_v15 }
  0x15   : > { %v958_v34 = vmul.f32 %v785_v16, %v273_v14  ;;  %v296_v37 = vmul.f32 %v936_v23, %v272_v13  ;;  %v297_v38 = vmul.f32 %v812_v11, %v936_v23  ;;  %v298_v39 = vmul.f32 %v936_v23, %v920_v15 }
  0x16   : > { %v308_v40 = vmul.f32 %v812_v11, %v789_v24  ;;  %v309_v41 = vmul.f32 %v789_v24, %v920_v15  ;;  %v970_v42 = vmul.f32 %v789_v24, %v925_v17  ;;  %v323_v43 = vmul.f32 %v952_v29, %v313_v18 }
  0x17   : > { %v324_v45 = vmul.f32 %v952_v29, %v920_v15  ;;  %v325_v46 = vmul.f32 %v952_v29, %v925_v17  ;;  %v337_v47 = vmul.f32 %v793_v35, %v313_v18  ;;  %v342_v48 = vunpack.c.l.bf16 %v341_v36 }
  0x18   : > { %v338_v50 = vmul.f32 %v793_v35, %v920_v15  ;;  %v339_v51 = vmul.f32 %v793_v35, %v925_v17  ;;  %v360_v52 = vrot.slane %v252_v21, 1  ;;  %v361_v53 = vrot.slane %v253_v22, 1 }
  0x19   : > { %v363_v54 = vrot.slane %v943_v25, 1  ;;  %v378_v55 = vrot.slane %v282_v31, 4  ;;  %v379_v56 = vrot.slane %v283_v32, 4  ;;  %v381_v57 = vrot.slane %v284_v33, 4 }
  0x1a   : > { %v988_v58 = vmul.f32 %v793_v35, %v328_v44  ;;  %v992_v59 = vmul.f32 %v981_v49, %v920_v15  ;;  %v362_v60 = vsel %vm359_vm0, %v360_v52, %v361_v53  ;;  %v383_v61 = vrot.slane %v958_v34, 4 }
  0x1b   : > { %v351_v62 = vmul.f32 %v981_v49, %v342_v48  ;;  %v380_v63 = vsel %vm377_vm1, %v378_v55, %v379_v56  ;;  %v382_v0 = vsel %vm377_vm1, %v379_v56, %v381_v57  ;;  %v396_v3 = vrot.slane %v308_v40, 1  ;;  %v242_v40 = vld [vmem:[%s897_s25 + $0xc] sm:$0x1]  ;;  %v312_v56 = vld [vmem:[%s897_s25 + $0x10] sm:$0x3] }
  0x1c   : > { %v384_v4 = vsel %vm377_vm1, %v381_v57, %v383_v61  ;;  %v389_v5 = vadd.f32 %v380_v63, %v266_v26  ;;  %v390_v6 = vadd.f32 %v382_v0, %v267_v27  ;;  %v397_v7 = vrot.slane %v309_v41, 1 }
  0x1d   : > { %v364_v8 = vsel %vm359_vm0, %v361_v53, %v363_v54  ;;  %v370_v9 = vadd.f32 %v362_v60, %v239_v19  ;;  %v399_v10 = vrot.slane %v970_v42, 1  ;;  %v413_v11 = vrot.slane %v337_v47, 1 }
  0x1e   : > { %v1006_v13 = vadd.f32 %v384_v4, %v268_v28  ;;  %v414_v14 = vrot.slane %v338_v50, 1  ;;  %v416_v16 = vrot.slane %v339_v51, 1  ;;  %v418_v18 = vrot.slane %v988_v58, 1 }
  0x1f   : > { %v398_v21 = vsel %vm359_vm0, %v396_v3, %v397_v7  ;;  %v400_v22 = vsel %vm359_vm0, %v397_v7, %v399_v10  ;;  %v433_v24 = vrot.slane %v389_v5, 2  ;;  %v434_v26 = vrot.slane %v390_v6, 2 }
  0x20   : > { %v405_v19 = vadd.f32 %v396_v3, %v296_v37  ;;  %v415_v27 = vsel %vm359_vm0, %v413_v11, %v414_v14  ;;  %v417_v28 = vsel %vm359_vm0, %v414_v14, %v416_v16  ;;  %v419_v31 = vsel %vm359_vm0, %v416_v16, %v418_v18 }
  0x21   : > { %v424_v32 = vadd.f32 %v415_v27, %v323_v43  ;;  %v425_v33 = vadd.f32 %v417_v28, %v324_v45  ;;  %v426_v35 = vadd.f32 %v419_v31, %v325_v46  ;;  %v435_v36 = vsel %vm432_vm2, %v433_v24, %v434_v26 }
  0x22   : > { %v1020_v41 = vmul.f32 %v981_v49, %v925_v17  ;;  %v406_v47 = vadd.f32 %v398_v21, %v297_v38  ;;  %v407_v48 = vadd.f32 %v400_v22, %v298_v39  ;;  %v436_v37 = vrot.slane %v1006_v13, 2 }
  0x23   : > { %v371_v50 = vadd.f32 %v364_v8, %v929_v20  ;;  %v451_v51 = vrot.slane %v424_v32, 5  ;;  %v452_v52 = vrot.slane %v425_v33, 5  ;;  %v454_v53 = vrot.slane %v426_v35, 5 }
  0x24   : > { %v437_v43 = vsel %vm432_vm2, %v434_v26, %v436_v37  ;;  %v443_v45 = vadd.f32 %v435_v36, %v370_v9  ;;  %v489_v46 = vrot.slane %v351_v62, 6  ;;  %v243_v55 = vunpack.c.l.bf16 %v242_v40 }
  0x25   : > { %v453_v57 = vsel %vm450_vm3, %v451_v51, %v452_v52  ;;  %v455_v58 = vsel %vm450_vm3, %v452_v52, %v454_v53  ;;  %v462_v60 = vadd.f32 %v451_v51, %v405_v19  ;;  %v490_v38 = vrot.slane %v992_v59, 6  ;;  %v657_v52 = vld [vmem:[%s1063_s26 + $0xc] sm:$0x8] }
  0x26   : > { %v463_v39 = vadd.f32 %v453_v57, %v406_v47  ;;  %v464_v63 = vadd.f32 %v455_v58, %v407_v48  ;;  %v492_v20 = vrot.slane %v1020_v41, 6  ;;  %v255_v0 = vmul.f32 %v907_v2, %v243_v55  ;;  %v651_v48 = vld [vmem:[%s1063_s26] sm:$0xf] }
  0x27   : > { %v444_v3 = vadd.f32 %v437_v43, %v371_v50  ;;  %v471_v4 = vrot.slane %v462_v60, 7  ;;  %v269_v5 = vmul.f32 %v918_v12, %v243_v55  ;;  %v314_v62 = vunpack.c.l.bf16 %v312_v56 }
  0x28   : > { %v472_v6 = vrot.slane %v463_v39, 7  ;;  %v474_v7 = vrot.slane %v464_v63, 7  ;;  %v299_v8 = vmul.f32 %v936_v23, %v925_v17  ;;  %v365_v9 = vrot.slane %v255_v0, 1 }
  0x29   : > { %v491_v11 = vsel %vm488_vm4, %v489_v46, %v490_v38  ;;  %v241_v59 = vmul.f32 %v902_v1, %v920_v15  ;;  %v326_v13 = vmul.f32 %v952_v29, %v314_v62  ;;  %v392_v2 = vadd.f32 %v383_v61, %v269_v5  ;;  %v796_v1 = vld [vmem:[%s1119_s2] ss:$0 sm:$0xff] }
  0x2a   : > { %v473_v14 = vsel %vm470_vm5, %v471_v4, %v472_v6  ;;  %v475_v12 = vsel %vm470_vm5, %v472_v6, %v474_v7  ;;  %v493_v16 = vsel %vm488_vm4, %v490_v38, %v492_v20  ;;  %v366_v17 = vsel %vm359_vm0, %v363_v54, %v365_v9 }
  0x2b   : > { %v481_v23 = vadd.f32 %v473_v14, %v443_v45  ;;  %v482_v21 = vadd.f32 %v475_v12, %v444_v3  ;;  %v427_v22 = vadd.f32 %v418_v18, %v326_v13  ;;  %v354_v15 = vmul.f32 %v981_v49, %v328_v44 }
  0x2c   : > { %v408_v29 = vadd.f32 %v399_v10, %v299_v8  ;;  %v438_v34 = vrot.slane %v392_v2, 2  ;;  %v372_v25 = vadd.f32 %v366_v17, %v241_v59  ;;  %vm648_vm7 = vcmask 257024   ;;  %v797_v59 = vld [vmem:[%s1121_s4] ss:$0 sm:$0xff] }
  0x2d   : > { %v499_v61 = vadd.f32 %v491_v11, %v481_v23  ;;  %v500_v24 = vadd.f32 %v493_v16, %v482_v21  ;;  %v456_v26 = vrot.slane %v427_v22, 5  ;;  %v494_v31 = vrot.slane %v354_v15, 6 }
  0x2e   : > { %v439_v54 = vsel %vm432_vm2, %v436_v37, %v438_v34  ;;  %vm649_vm8 = vsmask.f32 3328  ;;  %vm654_vm10 = vcmask 257027   ;;  %vm655_vm11 = vsmask.f32 7950 }
  0x2f   : > { %v509_v19 = vadd.f32 %v796_v1, %v499_v61  ;;  %v510_v18 = vadd.f32 %v796_v1, %v500_v24  ;;  %v457_v27 = vsel %vm450_vm3, %v454_v53, %v456_v26  ;;  %v445_v44 = vadd.f32 %v439_v54, %v372_v25  ;;  %vm1068_vm9 = vmand %vm648_vm7, %vm649_vm8 }
  0x30   : > { %v465_v28 = vadd.f32 %v457_v27, %v408_v29  ;;  %v495_v33 = vsel %vm488_vm4, %v492_v20, %v494_v31  ;;  %v652_v50 = vsel %vm1068_vm9, 0, %v651_v48  ;;  %vm1074_vm12 = vmand %vm654_vm10, %vm655_vm11  ;;  %vm662_vm13 = vcmask 253952  }
  0x31   : > { %v512_v30 = vmax.f32 %v509_v19, 0.0  ;;  %v513_v32 = vmax.f32 %v510_v18, 0.0  ;;  %653 = vst [vmem:[%s1063_s26] sm:$0xf] %v652_v50  ;;  %v658_v53 = vsel %vm1074_vm12, 0, %v657_v52  ;;  %v847_v43 = vmov 0  }
  0x32   : > { %v476_v42 = vrot.slane %v465_v28, 7  ;;  %659 = vst [vmem:[%s1063_s26 + $0xc] sm:$0x8] %v658_v53  ;;  %661 = vst.msk [vmem:[%s1063_s26 + $0x10] sm:$0xf] %vm648_vm7, %v847_v43  ;;  %v590_v45 = vlaneseq }
  0x33   : > { %v515_v49 = vpack.c.bf16 %v513_v32, %v512_v30  ;;  %663 = vst.msk [vmem:[%s1063_s26 + $0x14] sm:$0x1] %vm662_vm13, %v847_v43 }
  0x34   : > { %v477_v10 = vsel %vm470_vm5, %v474_v7, %v476_v42  ;;  %v591_v46 = vshrl.u32 %v590_v45, 7 }
  0x35   : > { %818 = vmatprep.mubr.msk.bf16.mxu0 %vm532_vm6, %v515_v49  ;;  %v483_v35 = vadd.f32 %v477_v10, %v445_v44 }
  0x36   : > { %v593_v55 = vadd.s32 16, %v591_v46  ;;  %v1089_v58 = vmul.u32.u64.low 2863311531, %v591_v46  ;;  %v1090_v60 = vmul.u32.u64.high 2863311531, %v591_v46, %v1089_v58  ;;  %v592_v38 = vadd.s32 8, %v591_v46 }
  0x37   : > { %v501_v36 = vadd.f32 %v495_v33, %v483_v35 }
  0x38   : > { %v1086_v56 = vmul.u32.u64.low 2863311531, %v593_v55  ;;  %v1087_v57 = vmul.u32.u64.high 2863311531, %v593_v55, %v1086_v56  ;;  %v1092_v39 = vmul.u32.u64.low 2863311531, %v592_v38  ;;  %v1093_v63 = vmul.u32.u64.high 2863311531, %v592_v38, %v1092_v39  ;;  %v709_v32 = vld [vmem:[%s1063_s26] sm:$0x8] }
  0x39   : > { %v511_v40 = vadd.f32 %v796_v1, %v501_v36  ;;  %v600_v0 = vshrl.u32 %v1090_v60, 2  ;;  %v714_v35 = vld [vmem:[%s1063_s26 + $0xc] sm:$0xf] }
  0x3a   : > { %v622_v20 = vshrl.u32 %v1087_v57, 2  ;;  %v611_v5 = vshrl.u32 %v1093_v63, 2 }
  0x3b   : > { %v514_v41 = vmax.f32 %v511_v40, 0.0  ;;  %v601_v4 = vmul.u32 6, %v600_v0 }
  0x3c   : > { %v623_v3 = vmul.u32 6, %v622_v20  ;;  %v612_v7 = vmul.u32 6, %v611_v5 }
  0x3d   : > { %v516_v47 = vpack.c.bf16 %v514_v41, %v514_v41  ;;  %v602_v6 = vsub.s32 %v591_v46, %v601_v4 }
  0x3e   : > { %v624_v62 = vsub.s32 %v593_v55, %v623_v3  ;;  %v613_v9 = vsub.s32 %v592_v38, %v612_v7 }
  0x3f   : > { %819 = vmatmul.mubr.msk.bf16.vlgmr.msra.gmra.mxu0 %vm532_vm6, %v516_v47  ;;  %vm627_vm0 = vcmp.ne.s32.totalorder %v602_v6, 0  ;;  %vm630_vm1 = vcmp.lt.s32.totalorder %v602_v6, 0  ;;  %v636_v11 = vadd.s32 6, %v602_v6 }
  0x40   : > { %vm629_vm14 = vcmp.ne.s32.totalorder %v624_v62, 0  ;;  %vm632_vm15 = vcmp.lt.s32.totalorder %v624_v62, 0  ;;  %v638_v8 = vadd.s32 6, %v624_v62  ;;  %vm633_vm3 = vmand %vm630_vm1, %vm627_vm0  ;;  %vm628_vm4 = vcmp.ne.s32.totalorder %v613_v9, 0 }
  0x41   : > { %vm635_vm2 = vmand %vm632_vm15, %vm629_vm14  ;;  %vm631_vm5 = vcmp.lt.s32.totalorder %v613_v9, 0  ;;  %v639_v12 = vsel %vm633_vm3, %v636_v11, %v602_v6  ;;  %v637_v16 = vadd.s32 6, %v613_v9  ;;  %vm674_vm14 = vsmask.f32 7440 }
  0x42   : > { %v641_v13 = vsel %vm635_vm2, %v638_v8, %v624_v62  ;;  %vm634_vm10 = vmand %vm631_vm5, %vm628_vm4  ;;  %vm642_vm11 = vcmp.lt.s32.totalorder %v639_v12, 4 }
  0x43   : > { %vm644_vm6 = vcmp.lt.s32.totalorder %v641_v13, 4  ;;  %v640_v29 = vsel %vm634_vm10, %v637_v16, %v613_v9  ;;  %vm675_vm15 = vmor %vm649_vm8, %vm674_vm14 }
  0x44   : > { %vm643_vm13 = vcmp.lt.s32.totalorder %v640_v29, 4 }
  0xff   : > { %v820_v2 = vpop.f32.mrf.mxu0 }
 0x100   : > { %v582_v14 = vadd.f32 %v820_v2, %v797_v59 }
 0x101   : > { %v573_v17 = vpop.f32.mrf.mxu0 }
 0x102   : > { %v589_v23 = vmax.f32 %v582_v14, 0.0  ;;  %v574_v21 = vadd.f32 %v797_v59, %v573_v17 }
 0x103   : > { %v821_v22 = vpop.f32.mrf.mxu0 }
 0x104   : > { %v647_v1 = vsel %vm644_vm6, %v589_v23, 0.0  ;;  %v587_v15 = vmax.f32 %v574_v21, 0.0 }
 0x105   : > { %v808_v34 = vpack.c.bf16 %v647_v1, %v647_v1  ;;  %v576_v61 = vpop.f32.mrf.mxu0 }
 0x106   : > { %v645_v24 = vsel %vm642_vm11, %v587_v15, 0.0  ;;  %v577_v25 = vadd.f32 %v797_v59, %v576_v61 }
 0x107   : > { %v696_v26 = vshll.u32 %v808_v34, 16  ;;  %v700_v54 = vshrl.u32 %v808_v34, 16  ;;  %v806_v19 = vpack.c.bf16 %v645_v24, %v645_v24 }
 0x108   : > { %v588_v18 = vmax.f32 %v577_v25, 0.0 }
 0x109   : > { %v698_v27 = vrot.slane %v696_v26, 5  ;;  %v702_v28 = vrot.slane %v700_v54, 4  ;;  %v677_v31 = vshll.u32 %v806_v19, 16  ;;  %v680_v30 = vshrl.u32 %v806_v19, 16 }
 0x10a   : > { %v646_v44 = vsel %vm643_vm13, %v588_v18, 0.0 }
 0x10b   : > { %v703_v42 = vor.u32 %v702_v28, %v698_v27  ;;  %v679_v49 = vrot.slane %v677_v31, 5  ;;  %v682_v10 = vrot.slane %v680_v30, 4  ;;  %v807_v33 = vpack.c.bf16 %v646_v44, %v646_v44 }
 0x10d   : > { %v704_v36 = vrot.slane %v703_v42, 4  ;;  %v683_v40 = vor.u32 %v682_v10, %v679_v49  ;;  %v710_v41 = vsel %vm1074_vm12, %v679_v49, %v709_v32  ;;  %v686_v47 = vshll.u32 %v807_v33, 16 }
 0x10e   : > { %711 = vst [vmem:[%s1063_s26] sm:$0x8] %v710_v41  ;;  %v690_v48 = vshrl.u32 %v807_v33, 16 }
 0x10f   : > { %v684_v50 = vrot.slane %v683_v40, 4  ;;  %v715_v52 = vsel %vm1068_vm9, %v704_v36, %v714_v35  ;;  %v688_v53 = vrot.slane %v686_v47, 5 }
 0x110   : > { %716 = vst [vmem:[%s1063_s26 + $0xc] sm:$0xf] %v715_v52  ;;  %v692_v43 = vrot.slane %v690_v48, 4 }
 0x111   : > { %v689_v45 = vsel %vm675_vm15, %v684_v50, %v688_v53 }
 0x112   : > { %v693_v46 = vor.u32 %v692_v43, %v688_v53  ;;  %712 = vst.msk [vmem:[%s1063_s26 + $0x4] sm:$0xf] %vm648_vm7, %v689_v45 }
 0x114   : > { %v694_v55 = vrot.slane %v693_v46, 4 }
 0x116   : > { %v699_v51 = vsel %vm675_vm15, %v694_v55, %v698_v27 }
 0x117   : > { %713 = vst.msk [vmem:[%s1063_s26 + $0x8] sm:$0xf] %vm648_vm7, %v699_v51 }
 0x118 PF: > { %s15_s18 = sadd.s32 1, %s845_s18  }
 0x119   : > { %p12_p4 = scmp.ge.s32.totalorder %s15_s18, 4  }
 0x11b   :  { %14 = sbr.rel (!%p12_p4) target bundleno = 1 (0x1), region = 78 }

// kernel: fwd.9
= control target key start
LH: loop header
LB: loop body
LE: loop exit
PB: predicated region body
PF: predicated region fallthrough
CT: control target
= control target key end

     0   :  { %s1048_s27 = smov 0   ;;  %s1278_s0 = inlined_call_operand.vmem [shape: bf16[2,36,16], index: 0, kind: input, shape index: {}]   ;;  %s1279_s1 = inlined_call_operand.vmem [shape: bf16[2,36,16], index: 1, kind: input, shape index: {}]   ;;  %s1280_s2 = inlined_call_operand.vmem [shape: bf16[2,36,16], index: 2, kind: input, shape index: {}]   ;;  %s1281_s3 = inlined_call_operand.vmem [shape: bf16[2,36,16], index: 3, kind: input, shape index: {}]   ;;  %s1282_s4 = inlined_call_operand.vmem [shape: f32[9,1,16], index: 4, kind: input, shape index: {}]   ;;  %s1283_s5 = inlined_call_operand.vmem [shape: f32[1,16], index: 5, kind: input, shape index: {}]   ;;  %s1284_s6 = inlined_call_operand.vmem [shape: bf16[16,16], index: 6, kind: input, shape index: {}]   ;;  %s1285_s7 = inlined_call_operand.vmem [shape: f32[1,16], index: 7, kind: input, shape index: {}]   ;;  %s1286_s8 = inlined_call_operand.vmem [shape: bf16[2,42,16], index: 8, kind: output, shape index: {}]  }
   0x1 LB: > { %s911_s28 = sadd.s32 4294967295, %s1000_s27   ;;  %p915_p0 = scmp.ge.s32.totalorder %s1000_s27, 1  ;;  %s1000_s27 = sphi %s1048_s27, %s18_s27  }
   0x2   : > { %p292_p1 = scmp.lt.s32.totalorder %s1000_s27, 3 }
   0x4   : > { %p293_p2 = pnand %p915_p0, %p292_p1 }
   0x5   : > { %p341_p3 = scmp.lt.s32.totalorder (!%p293_p2), %s911_s28, 1 }
   0x6   : > { %296 = sbr.rel (%p293_p2) target bundleno = 275 (0x113), region = 52 }
   0xb   : > { %v993_v0 = vld [vmem:[%s1284_s6] sm:$0xff]   ;;  %s1292_s28 = smov (!%p341_p3, %s911_s28), 1  ;;  %vm514_vm0 = vcmask 1040384   ;;  %vm532_vm1 = vcmask 1046528   ;;  %v1152_v41 = vld [vmem:[%s1282_s4 + $0x8] ss:$0 sm:$0xff] }
   0xc   : > { %970 = vmatprep.subr.bf16.mxu0 %v993_v0  ;;  %s976_s9 = smul.u32 20, %s1292_s28  ;;  %v1075_v1 = vld [vmem:[%s1282_s4] ss:$0 sm:$0xff]  ;;  %v1080_v2 = vld [vmem:[%s1282_s4 + $0x1] ss:$0 sm:$0xff]  ;;  %vm571_vm2 = vcmask 1041408  }
   0xd   : > { %971 = vmatpush3.bf16.msra.mxu0 %v993_v0  ;;  %v1085_v3 = vld [vmem:[%s1282_s4 + $0x2] ss:$0 sm:$0xff]  ;;  %v927_v17 = vld [vmem:[%s1282_s4 + $0x3] ss:$0 sm:$0xff]  ;;  %v1121_v23 = vld [vmem:[%s1282_s4 + $0x5] ss:$0 sm:$0xff] }
   0xe   : > { %s1065_s12 = scalar_lea.vmem %s1278_s0, %s976_s9  ;;  %s1070_s15 = scalar_lea.vmem %s1279_s1, %s976_s9  ;;  %v1129_v28 = vld [vmem:[%s1282_s4 + $0x4] ss:$0 sm:$0xff]  ;;  %v1137_v34 = vld [vmem:[%s1282_s4 + $0x6] ss:$0 sm:$0xff]  ;;  %v1143_v36 = vld [vmem:[%s1282_s4 + $0x7] ss:$0 sm:$0xff] }
   0xf   : > { %s1090_s24 = scalar_lea.vmem %s1280_s2, %s976_s9  ;;  %s1095_s29 = scalar_lea.vmem %s1281_s3, %s976_s9  ;;  %v952_v4 = vld [vmem:[%s1065_s12] sm:$0xff]   ;;  %v1099_v5 = vld [vmem:[%s1065_s12 + $0x8] sm:$0xff]   ;;  %vm635_vm3 = vcmask 130048   ;;  %vm751_vm4 = vcmask 125952   ;;  %vm752_vm5 = vsmask.f32 3328 }
  0x10   : > { %v956_v6 = vld [vmem:[%s1070_s15] sm:$0xff]   ;;  %v953_v7 = vunpack.c.l.bf16 %v952_v4  ;;  %v954_v8 = vunpack.c.h.bf16 %v952_v4  ;;  %v1103_v9 = vunpack.c.l.bf16 %v1099_v5  ;;  %v1106_v11 = vld [vmem:[%s1070_s15 + $0x8] sm:$0xf]  ;;  %vm1229_vm6 = vmand %vm751_vm4, %vm752_vm5  ;;  %vm757_vm7 = vcmask 125955  }
  0x11   : > { %v957_v10 = vunpack.c.l.bf16 %v956_v6  ;;  %v960_v12 = vld [vmem:[%s1090_s24] sm:$0xff]   ;;  %v416_v13 = vld [vmem:[%s1090_s24 + $0x8] sm:$0xf]  ;;  %v958_v14 = vunpack.c.h.bf16 %v956_v6  ;;  %v388_v21 = vunpack.c.l.bf16 %v1106_v11  ;;  %vm758_vm8 = vsmask.f32 7950 }
  0x12   : > { %v961_v15 = vunpack.c.l.bf16 %v960_v12  ;;  %v962_v16 = vunpack.c.h.bf16 %v960_v12  ;;  %v964_v18 = vld [vmem:[%s1095_s29] sm:$0xff]   ;;  %v380_v19 = vmul.f32 %v953_v7, %v1075_v1  ;;  %v381_v20 = vmul.f32 %v954_v8, %v1075_v1  ;;  %v433_v12 = vld [vmem:[%s1095_s29 + $0x8] sm:$0xf]  ;;  %vm1235_vm9 = vmand %vm757_vm7, %vm758_vm8 }
  0x13   : > { %v397_v22 = vmul.f32 %v957_v10, %v1080_v2  ;;  %v398_v24 = vmul.f32 %v958_v14, %v1080_v2  ;;  %v410_v25 = vmul.f32 %v953_v7, %v1085_v3  ;;  %v411_v26 = vmul.f32 %v954_v8, %v1085_v3  ;;  %v462_v29 = vld [vmem:[%s1065_s12] sm:$0x8] }
  0x14   : > { %v419_v27 = vunpack.c.l.bf16 %v416_v13  ;;  %v412_v30 = vmul.f32 %v1085_v3, %v1103_v9  ;;  %v428_v31 = vmul.f32 %v961_v15, %v927_v17  ;;  %v965_v32 = vunpack.c.l.bf16 %v964_v18  ;;  %v478_v35 = vld [vmem:[%s1070_s15] sm:$0x8] }
  0x15   : > { %v966_v33 = vunpack.c.h.bf16 %v964_v18  ;;  %v429_v37 = vmul.f32 %v962_v16, %v927_v17  ;;  %v458_v39 = vmul.f32 %v961_v15, %v1121_v23  ;;  %v459_v40 = vmul.f32 %v962_v16, %v1121_v23 }
  0x16   : > { %v1145_v38 = vmul.f32 %v927_v17, %v419_v27  ;;  %v445_v42 = vmul.f32 %v965_v32, %v1129_v28  ;;  %v1157_v44 = vmul.f32 %v1121_v23, %v419_v27  ;;  %v464_v45 = vunpack.c.l.bf16 %v462_v29  ;;  %v400_v32 = vld [vmem:[%s1065_s12 + $0xc] sm:$0x1] }
  0x17   : > { %v446_v43 = vmul.f32 %v966_v33, %v1129_v28  ;;  %v475_v46 = vmul.f32 %v954_v8, %v1137_v34  ;;  %v476_v47 = vmul.f32 %v1137_v34, %v1103_v9  ;;  %v480_v48 = vunpack.c.l.bf16 %v478_v35 }
  0x18   : > { %v491_v49 = vmul.f32 %v958_v14, %v1143_v36  ;;  %v474_v50 = vmul.f32 %v1137_v34, %v464_v45  ;;  %v492_v51 = vmul.f32 %v1143_v36, %v388_v21  ;;  %v504_v52 = vmul.f32 %v1152_v41, %v464_v45 }
  0x19   : > { %v505_v53 = vmul.f32 %v954_v8, %v1152_v41  ;;  %v490_v54 = vmul.f32 %v1143_v36, %v480_v48  ;;  %v1172_v55 = vmul.f32 %v1152_v41, %v1103_v9  ;;  %v508_v56 = vadd.f32 %v397_v22, %v380_v19 }
  0x1a   : > { %v509_v57 = vadd.f32 %v398_v24, %v381_v20  ;;  %v515_v58 = vrot.slane %v428_v31, 7  ;;  %v516_v59 = vrot.slane %v429_v37, 7  ;;  %v518_v60 = vrot.slane %v1145_v38, 7 }
  0x1b   : > { %v533_v61 = vrot.slane %v458_v39, 1  ;;  %v534_v62 = vrot.slane %v459_v40, 1  ;;  %v536_v63 = vrot.slane %v1157_v44, 1  ;;  %v546_v0 = vadd.f32 %v490_v54, %v474_v50  ;;  %v448_v39 = vld [vmem:[%s1090_s24 + $0xc] sm:$0x1] }
  0x1c   : > { %v547_v4 = vadd.f32 %v491_v49, %v475_v46  ;;  %v517_v6 = vsel %vm514_vm0, %v515_v58, %v516_v59  ;;  %v519_v7 = vsel %vm514_vm0, %v516_v59, %v518_v60  ;;  %v524_v8 = vadd.f32 %v515_v58, %v410_v25  ;;  %v463_v46 = vld [vmem:[%s1065_s12 + $0xc] sm:$0x7]  ;;  %s977_s12 = smul.u32 24, %s1292_s28 }
  0x1d   : > { %v1178_v10 = vadd.f32 %v492_v51, %v476_v47  ;;  %v525_v13 = vadd.f32 %v517_v6, %v411_v26  ;;  %v526_v14 = vadd.f32 %v519_v7, %v412_v30  ;;  %v535_v15 = vsel %vm532_vm1, %v533_v61, %v534_v62  ;;  %v479_v47 = vld [vmem:[%s1070_s15 + $0xc] sm:$0x7] }
  0x1e   : > { %v537_v16 = vsel %vm532_vm1, %v534_v62, %v536_v63  ;;  %v543_v17 = vadd.f32 %v535_v15, %v445_v42  ;;  %v554_v19 = vrot.slane %v524_v8, 1  ;;  %v572_v20 = vrot.slane %v546_v0, 6  ;;  %s1224_s25 = scalar_lea.vmem %s1286_s8, %s977_s12 }
  0x1f   : > { %v544_v18 = vadd.f32 %v537_v16, %v446_v43  ;;  %v555_v22 = vrot.slane %v525_v13, 1  ;;  %v557_v24 = vrot.slane %v526_v14, 1  ;;  %v573_v25 = vrot.slane %v547_v4, 6 }
  0x20   : > { %v575_v27 = vrot.slane %v1178_v10, 6  ;;  %v436_v26 = vunpack.c.l.bf16 %v433_v12  ;;  %v592_v29 = vrot.slane %v504_v52, 7  ;;  %v593_v30 = vrot.slane %v505_v53, 7 }
  0x21   : > { %v595_v31 = vrot.slane %v1172_v55, 7  ;;  %v556_v33 = vsel %vm532_vm1, %v554_v19, %v555_v22  ;;  %v558_v35 = vsel %vm532_vm1, %v555_v22, %v557_v24  ;;  %v574_v37 = vsel %vm571_vm2, %v572_v20, %v573_v25  ;;  %v754_v22 = vld [vmem:[%s1224_s25] sm:$0xf] }
  0x22   : > { %v576_v38 = vsel %vm571_vm2, %v573_v25, %v575_v27  ;;  %v564_v40 = vadd.f32 %v556_v33, %v508_v56  ;;  %v565_v42 = vadd.f32 %v558_v35, %v509_v57  ;;  %v582_v43 = vadd.f32 %v574_v37, %v543_v17  ;;  %v938_v56 = vld [vmem:[%s1283_s5] ss:$0 sm:$0xff] }
  0x23   : > { %v583_v45 = vadd.f32 %v576_v38, %v544_v18  ;;  %v594_v48 = vsel %vm514_vm0, %v592_v29, %v593_v30  ;;  %v596_v49 = vsel %vm514_vm0, %v593_v30, %v595_v31  ;;  %v382_v50 = vmul.f32 %v1075_v1, %v1103_v9 }
  0x24   : > { %v401_v51 = vunpack.c.l.bf16 %v400_v32  ;;  %v585_v52 = vadd.f32 %v582_v43, %v564_v40  ;;  %v399_v54 = vmul.f32 %v1080_v2, %v388_v21  ;;  %v449_v55 = vunpack.c.l.bf16 %v448_v39 }
  0x25   : > { %v586_v53 = vadd.f32 %v583_v45, %v565_v42  ;;  %v465_v58 = vunpack.c.l.bf16 %v463_v46  ;;  %v481_v59 = vunpack.c.l.bf16 %v479_v47  ;;  %v495_v61 = vunpack.c.h.bf16 %v1099_v5 }
  0x26   : > { %v413_v57 = vmul.f32 %v1085_v3, %v401_v51  ;;  %v602_v62 = vadd.f32 %v594_v48, %v585_v52  ;;  %v447_v9 = vmul.f32 %v1129_v28, %v436_v26  ;;  %v461_v0 = vmul.f32 %v1121_v23, %v449_v55  ;;  %v760_v26 = vld [vmem:[%s1224_s25 + $0xc] sm:$0x8] }
  0x27   : > { %v603_v1 = vadd.f32 %v596_v49, %v586_v53  ;;  %v477_v11 = vmul.f32 %v1137_v34, %v465_v58  ;;  %v493_v2 = vmul.f32 %v1143_v36, %v481_v59  ;;  %v507_v21 = vmul.f32 %v1152_v41, %v495_v61 }
  0x28   : > { %v527_v4 = vadd.f32 %v518_v60, %v413_v57  ;;  %v612_v6 = vadd.f32 %v938_v56, %v602_v62  ;;  %v510_v3 = vadd.f32 %v399_v54, %v382_v50  ;;  %v538_v8 = vrot.slane %v461_v0, 1 }
  0x29   : > { %v613_v7 = vadd.f32 %v938_v56, %v603_v1  ;;  %v549_v10 = vadd.f32 %v493_v2, %v477_v11  ;;  %v597_v41 = vrot.slane %v507_v21, 7  ;;  %v755_v25 = vsel %vm1229_vm6, 0, %v754_v22 }
  0x2a   : > { %v559_v12 = vrot.slane %v527_v4, 1  ;;  %v615_v5 = vmax.f32 %v612_v6, 0.0  ;;  %v539_v23 = vsel %vm532_vm1, %v536_v63, %v538_v8  ;;  %756 = vst [vmem:[%s1224_s25] sm:$0xf] %v755_v25  ;;  %v761_v29 = vsel %vm1235_vm9, 0, %v760_v26 }
  0x2b   : > { %v616_v13 = vmax.f32 %v613_v7, 0.0  ;;  %v545_v28 = vadd.f32 %v539_v23, %v447_v9  ;;  %v577_v36 = vrot.slane %v549_v10, 6  ;;  %v598_v17 = vsel %vm514_vm0, %v595_v31, %v597_v41  ;;  %762 = vst [vmem:[%s1224_s25 + $0xc] sm:$0x8] %v761_v29 }
  0x2c   : > { %v560_v34 = vsel %vm532_vm1, %v557_v24, %v559_v12  ;;  %vm765_vm10 = vcmask 122880   ;;  %v1002_v30 = vmov 0   ;;  %v693_v31 = vlaneseq }
  0x2d   : > { %v618_v60 = vpack.c.bf16 %v616_v13, %v615_v5  ;;  %v566_v14 = vadd.f32 %v560_v34, %v510_v3  ;;  %v578_v15 = vsel %vm571_vm2, %v575_v27, %v577_v36  ;;  %764 = vst.msk [vmem:[%s1224_s25 + $0x10] sm:$0xf] %vm751_vm4, %v1002_v30 }
  0x2e   : > { %v584_v16 = vadd.f32 %v578_v15, %v545_v28  ;;  %766 = vst.msk [vmem:[%s1224_s25 + $0x14] sm:$0x1] %vm765_vm10, %v1002_v30  ;;  %v694_v32 = vshrl.u32 %v693_v31, 7 }
  0x2f   : > { %972 = vmatprep.mubr.msk.bf16.mxu0 %vm635_vm3, %v618_v60 }
  0x30   : > { %v587_v18 = vadd.f32 %v584_v16, %v566_v14  ;;  %v696_v33 = vadd.s32 16, %v694_v32  ;;  %v1250_v38 = vmul.u32.u64.low 2863311531, %v694_v32  ;;  %v1251_v39 = vmul.u32.u64.high 2863311531, %v694_v32, %v1250_v38 }
  0x31   : > { %v695_v40 = vadd.s32 8, %v694_v32  ;;  %v812_v41 = vld [vmem:[%s1224_s25] sm:$0x8] }
  0x32   : > { %v604_v19 = vadd.f32 %v598_v17, %v587_v18  ;;  %v1247_v35 = vmul.u32.u64.low 2863311531, %v696_v33  ;;  %v1248_v37 = vmul.u32.u64.high 2863311531, %v696_v33, %v1247_v35  ;;  %v703_v46 = vshrl.u32 %v1251_v39, 2  ;;  %v817_v18 = vld [vmem:[%s1224_s25 + $0xc] sm:$0xf] }
  0x33   : > { %v1253_v42 = vmul.u32.u64.low 2863311531, %v695_v40  ;;  %v1254_v43 = vmul.u32.u64.high 2863311531, %v695_v40, %v1253_v42 }
  0x34   : > { %v614_v44 = vadd.f32 %v938_v56, %v604_v19  ;;  %v725_v45 = vshrl.u32 %v1248_v37, 2  ;;  %v704_v48 = vmul.u32 6, %v703_v46  ;;  %v939_v56 = vld [vmem:[%s1285_s7] ss:$0 sm:$0xff] }
  0x35   : > { %v714_v49 = vshrl.u32 %v1254_v43, 2 }
  0x36   : > { %v617_v20 = vmax.f32 %v614_v44, 0.0  ;;  %v726_v47 = vmul.u32 6, %v725_v45  ;;  %v705_v51 = vsub.s32 %v694_v32, %v704_v48 }
  0x37   : > { %v715_v52 = vmul.u32 6, %v714_v49 }
  0x38   : > { %v619_v63 = vpack.c.bf16 %v617_v20, %v617_v20  ;;  %v727_v50 = vsub.s32 %v696_v33, %v726_v47  ;;  %vm730_vm13 = vcmp.ne.s32.totalorder %v705_v51, 0  ;;  %vm733_vm14 = vcmp.lt.s32.totalorder %v705_v51, 0 }
  0x39   : > { %v716_v54 = vsub.s32 %v695_v40, %v715_v52  ;;  %v739_v55 = vadd.s32 6, %v705_v51  ;;  %vm736_vm0 = vmand %vm733_vm14, %vm730_vm13 }
  0x3a   : > { %973 = vmatmul.mubr.msk.bf16.vlgmr.msra.gmra.mxu0 %vm635_vm3, %v619_v63  ;;  %vm732_vm11 = vcmp.ne.s32.totalorder %v727_v50, 0  ;;  %vm735_vm12 = vcmp.lt.s32.totalorder %v727_v50, 0  ;;  %v741_v53 = vadd.s32 6, %v727_v50 }
  0x3b   : > { %vm738_vm15 = vmand %vm735_vm12, %vm732_vm11  ;;  %vm731_vm1 = vcmp.ne.s32.totalorder %v716_v54, 0  ;;  %vm734_vm2 = vcmp.lt.s32.totalorder %v716_v54, 0  ;;  %v742_v61 = vsel %vm736_vm0, %v739_v55, %v705_v51  ;;  %v740_v62 = vadd.s32 6, %v716_v54 }
  0x3c   : > { %v744_v57 = vsel %vm738_vm15, %v741_v53, %v727_v50  ;;  %vm737_vm7 = vmand %vm734_vm2, %vm731_vm1  ;;  %vm745_vm8 = vcmp.lt.s32.totalorder %v742_v61, 4  ;;  %vm777_vm11 = vsmask.f32 7440 }
  0x3d   : > { %vm747_vm3 = vcmp.lt.s32.totalorder %v744_v57, 4  ;;  %v743_v4 = vsel %vm737_vm7, %v740_v62, %v716_v54  ;;  %vm778_vm12 = vmor %vm752_vm5, %vm777_vm11 }
  0x3e   : > { %vm746_vm10 = vcmp.lt.s32.totalorder %v743_v4, 4 }
  0xfa   : > { %v974_v58 = vpop.f32.mrf.mxu0 }
  0xfb   : > { %v685_v59 = vadd.f32 %v974_v58, %v939_v56 }
  0xfc   : > { %v676_v1 = vpop.f32.mrf.mxu0 }
  0xfd   : > { %v692_v9 = vmax.f32 %v685_v59, 0.0  ;;  %v677_v0 = vadd.f32 %v939_v56, %v676_v1 }
  0xfe   : > { %v975_v11 = vpop.f32.mrf.mxu0 }
  0xff   : > { %v750_v2 = vsel %vm747_vm3, %v692_v9, 0.0  ;;  %v690_v21 = vmax.f32 %v677_v0, 0.0 }
 0x100   : > { %v950_v6 = vpack.c.bf16 %v750_v2, %v750_v2  ;;  %v679_v7 = vpop.f32.mrf.mxu0 }
 0x101   : > { %v748_v3 = vsel %vm745_vm8, %v690_v21, 0.0  ;;  %v680_v8 = vadd.f32 %v939_v56, %v679_v7 }
 0x102   : > { %v799_v10 = vshll.u32 %v950_v6, 16  ;;  %v803_v12 = vshrl.u32 %v950_v6, 16  ;;  %v948_v5 = vpack.c.bf16 %v748_v3, %v748_v3 }
 0x103   : > { %v691_v13 = vmax.f32 %v680_v8, 0.0 }
 0x104   : > { %v801_v23 = vrot.slane %v799_v10, 5  ;;  %v805_v28 = vrot.slane %v803_v12, 4  ;;  %v780_v34 = vshll.u32 %v948_v5, 16  ;;  %v783_v36 = vshrl.u32 %v948_v5, 16 }
 0x105   : > { %v749_v60 = vsel %vm746_vm10, %v691_v13, 0.0 }
 0x106   : > { %v806_v14 = vor.u32 %v805_v28, %v801_v23  ;;  %v782_v15 = vrot.slane %v780_v34, 5  ;;  %v785_v16 = vrot.slane %v783_v36, 4  ;;  %v949_v17 = vpack.c.bf16 %v749_v60, %v749_v60 }
 0x108   : > { %v807_v19 = vrot.slane %v806_v14, 4  ;;  %v786_v44 = vor.u32 %v785_v16, %v782_v15  ;;  %v813_v20 = vsel %vm1235_vm9, %v782_v15, %v812_v41  ;;  %v789_v63 = vshll.u32 %v949_v17, 16 }
 0x109   : > { %814 = vst [vmem:[%s1224_s25] sm:$0x8] %v813_v20  ;;  %v793_v22 = vshrl.u32 %v949_v17, 16 }
 0x10a   : > { %v787_v25 = vrot.slane %v786_v44, 4  ;;  %v818_v26 = vsel %vm1229_vm6, %v807_v19, %v817_v18  ;;  %v791_v29 = vrot.slane %v789_v63, 5 }
 0x10b   : > { %819 = vst [vmem:[%s1224_s25 + $0xc] sm:$0xf] %v818_v26  ;;  %v795_v30 = vrot.slane %v793_v22, 4 }
 0x10c   : > { %v792_v31 = vsel %vm778_vm12, %v787_v25, %v791_v29 }
 0x10d   : > { %v796_v32 = vor.u32 %v795_v30, %v791_v29  ;;  %815 = vst.msk [vmem:[%s1224_s25 + $0x4] sm:$0xf] %vm751_vm4, %v792_v31 }
 0x10f   : > { %v797_v33 = vrot.slane %v796_v32, 4 }
 0x111   : > { %v802_v27 = vsel %vm778_vm12, %v797_v33, %v801_v23 }
 0x112   : > { %816 = vst.msk [vmem:[%s1224_s25 + $0x8] sm:$0xf] %vm751_vm4, %v802_v27 }
 0x113 PF: > { %s18_s27 = sadd.s32 1, %s1000_s27  }
 0x114   : > { %p15_p4 = scmp.ge.s32.totalorder %s18_s27, 4  }
 0x116   :  { %17 = sbr.rel (!%p15_p4) target bundleno = 1 (0x1), region = 99 }

// kernel: fwd.8
= control target key start
LH: loop header
LB: loop body
LE: loop exit
PB: predicated region body
PF: predicated region fallthrough
CT: control target
= control target key end

     0   :  { %s1567_s18 = smov 0   ;;  %s2370_s0 = inlined_call_operand.vmem [shape: bf16[2,110,8], index: 0, kind: input, shape index: {}]   ;;  %s2371_s1 = inlined_call_operand.vmem [shape: f32[9,1,8], index: 1, kind: input, shape index: {}]   ;;  %s2372_s2 = inlined_call_operand.vmem [shape: f32[1,8], index: 2, kind: input, shape index: {}]   ;;  %s2373_s3 = inlined_call_operand.vmem [shape: bf16[8,16], index: 3, kind: input, shape index: {}]   ;;  %s2374_s4 = inlined_call_operand.vmem [shape: f32[1,16], index: 4, kind: input, shape index: {}]   ;;  %s2375_s5 = inlined_call_operand.vmem [shape: bf16[2,110,16], index: 5, kind: output, shape index: {}]  }
   0x1 LB: > { %s1387_s19 = sadd.s32 4294967295, %s1532_s18   ;;  %p1391_p0 = scmp.ge.s32.totalorder %s1532_s18, 1  ;;  %s1532_s18 = sphi %s1567_s18, %s15_s18  }
   0x2   : > { %p187_p1 = scmp.lt.s32.totalorder %s1532_s18, 3 }
   0x4   : > { %p188_p2 = pnand %p1391_p0, %p187_p1 }
   0x6   : > { %191 = sbr.rel (%p188_p2) target bundleno = 341 (0x155), region = 40 }
   0xb   : > { %v856_v0 = vld [vmem:[%s2373_s3] sm:$0xf]  ;;  %vm880_vm0 = vcmask 1043456   ;;  %p215_p3 = scmp.lt.s32.totalorder %s1387_s19, 1  ;;  %v2383_v1 = vmov 0.0   ;;  %vm1535_vm1 = vmmov 0  }
   0xc   : > { %1470 = vmatprep.subr.bf16.mxu0 %v2383_v1  ;;  %v882_v2 = vsel %vm880_vm0, %v856_v0, 0  ;;  %1492 = vmatprep.subr.bf16.mxu1 %v2383_v1  ;;  %v1597_v3 = vld [vmem:[%s2371_s1] ss:$0 sm:$0xff]  ;;  %v1602_v4 = vld [vmem:[%s2371_s1 + $0x1] ss:$0 sm:$0xff]  ;;  %vm450_vm2 = vcmask 1046528  }
   0xd   : > { %1471 = vmatpush3.bf16.msra.mxu0 %v882_v2  ;;  %1493 = vmatpush3.bf16.msra.mxu1 %v882_v2  ;;  %s2494_s19 = smov (!%p215_p3, %s1387_s19), 1  ;;  %v1618_v14 = vld [vmem:[%s2371_s1 + $0x2] ss:$0 sm:$0xff]  ;;  %v1631_v20 = vld [vmem:[%s2371_s1 + $0x3] ss:$0 sm:$0xff]  ;;  %vm622_vm3 = vcmask 1045504  }
   0xe   : > { %1472 = vmatprep.mubr.msk.bf16.mxu0 %vm1535_vm1, %v2383_v1  ;;  %1484 = vmatprep.mubr.msk.bf16.mxu1 %vm1535_vm1, %v2383_v1  ;;  %s1494_s22 = smul.u32 56, %s2494_s19  ;;  %v1636_v21 = vld [vmem:[%s2371_s1 + $0x4] ss:$0 sm:$0xff]  ;;  %v1646_v27 = vld [vmem:[%s2371_s1 + $0x5] ss:$0 sm:$0xff]  ;;  %vm782_vm4 = vcmask 1041408  }
   0xf   : > { %v1666_v37 = vld [vmem:[%s2371_s1 + $0x6] ss:$0 sm:$0xff]  ;;  %v1677_v42 = vld [vmem:[%s2371_s1 + $0x7] ss:$0 sm:$0xff]  ;;  %v1689_v48 = vld [vmem:[%s2371_s1 + $0x8] ss:$0 sm:$0xff] }
  0x10   : > { %s1592_s25 = scalar_lea.vmem %s2370_s0, %s1494_s22  ;;  %vm729_vm5 = vcmask 1044480   ;;  %vm864_vm6 = vcmask 64512   ;;  %s2158_s26 = scalar_lea.vmem %s2375_s5, %s1494_s22  ;;  %vm1160_vm7 = vcmask 123904   ;;  %vm1161_vm8 = vsmask.f32 1280 }
  0x11   : > { %v1441_v5 = vld [vmem:[%s1592_s25] sm:$0xff]   ;;  %v1460_v6 = vld [vmem:[%s1592_s25 + $0x8] sm:$0xff]   ;;  %v1461_v7 = vld [vmem:[%s1592_s25 + $0x10] sm:$0xff]   ;;  %vm1166_vm10 = vcmask 125953   ;;  %vm1167_vm11 = vsmask.f32 7942 }
  0x12   : > { %v1442_v8 = vunpack.c.l.bf16 %v1441_v5  ;;  %v1443_v9 = vunpack.c.h.bf16 %v1441_v5  ;;  %v1607_v10 = vunpack.c.l.bf16 %v1460_v6  ;;  %v1609_v11 = vunpack.c.h.bf16 %v1460_v6  ;;  %v1612_v12 = vld [vmem:[%s1592_s25 + $0x18] sm:$0xff]   ;;  %v284_v13 = vld [vmem:[%s1592_s25] sm:$0xe]  ;;  %v305_v19 = vld [vmem:[%s1592_s25 + $0x4] sm:$0xe] }
  0x13   : > { %v1620_v15 = vunpack.c.l.bf16 %v1461_v7  ;;  %v1622_v16 = vunpack.c.h.bf16 %v1461_v7  ;;  %v1625_v17 = vunpack.c.l.bf16 %v1612_v12  ;;  %v285_v18 = vunpack.c.l.bf16 %v284_v13  ;;  %v351_v26 = vld [vmem:[%s1592_s25 + $0x4] sm:$0xc]  ;;  %v372_v32 = vld [vmem:[%s1592_s25 + $0x8] sm:$0xc]  ;;  %vm2162_vm9 = vmand %vm1160_vm7, %vm1161_vm8 }
  0x14   : > { %v253_v22 = vmul.f32 %v1442_v8, %v1597_v3  ;;  %v254_v23 = vmul.f32 %v1443_v9, %v1597_v3  ;;  %v273_v24 = vmul.f32 %v1442_v8, %v1602_v4  ;;  %v274_v25 = vmul.f32 %v1443_v9, %v1602_v4  ;;  %v418_v47 = vld [vmem:[%s1592_s25 + $0x8] sm:$0x8]  ;;  %vm2169_vm12 = vmand %vm1166_vm10, %vm1167_vm11 }
  0x15   : > { %v1650_v28 = vmul.f32 %v1607_v10, %v1602_v4  ;;  %v294_v29 = vmul.f32 %v1618_v14, %v285_v18  ;;  %v295_v30 = vmul.f32 %v1443_v9, %v1618_v14  ;;  %v296_v31 = vmul.f32 %v1607_v10, %v1618_v14 }
  0x16   : > { %v308_v33 = vunpack.c.l.bf16 %v305_v19  ;;  %v320_v34 = vmul.f32 %v1607_v10, %v1631_v20  ;;  %v321_v35 = vmul.f32 %v1609_v11, %v1631_v20  ;;  %v341_v36 = vmul.f32 %v1607_v10, %v1636_v21 }
  0x17   : > { %v342_v38 = vmul.f32 %v1609_v11, %v1636_v21  ;;  %v352_v39 = vunpack.c.l.bf16 %v351_v26  ;;  %v362_v40 = vmul.f32 %v1607_v10, %v1646_v27  ;;  %v363_v41 = vmul.f32 %v1609_v11, %v1646_v27 }
  0x18   : > { %v319_v43 = vmul.f32 %v1631_v20, %v308_v33  ;;  %v340_v44 = vmul.f32 %v1636_v21, %v308_v33  ;;  %v1683_v45 = vmul.f32 %v1620_v15, %v1646_v27  ;;  %v375_v46 = vunpack.c.l.bf16 %v372_v32 }
  0x19   : > { %v361_v49 = vmul.f32 %v1646_v27, %v352_v39  ;;  %v387_v50 = vmul.f32 %v1609_v11, %v1666_v37  ;;  %v388_v51 = vmul.f32 %v1620_v15, %v1666_v37  ;;  %v389_v52 = vmul.f32 %v1622_v16, %v1666_v37 }
  0x1a   : > { %v386_v53 = vmul.f32 %v1666_v37, %v375_v46  ;;  %v407_v54 = vmul.f32 %v1677_v42, %v375_v46  ;;  %v408_v55 = vmul.f32 %v1609_v11, %v1677_v42  ;;  %v409_v56 = vmul.f32 %v1620_v15, %v1677_v42 }
  0x1b   : > { %v410_v57 = vmul.f32 %v1622_v16, %v1677_v42  ;;  %v1708_v58 = vmul.f32 %v1625_v17, %v1677_v42  ;;  %v419_v59 = vunpack.c.l.bf16 %v418_v47  ;;  %v1712_v60 = vmul.f32 %v1609_v11, %v1689_v48 }
  0x1c   : > { %v1716_v61 = vmul.f32 %v1620_v15, %v1689_v48  ;;  %v451_v62 = vrot.slane %v273_v24, 1  ;;  %v452_v63 = vrot.slane %v274_v25, 1  ;;  %v2382_v0 = vrot.slane %v1650_v28, 1 }
  0x1d   : > { %v428_v2 = vmul.f32 %v1689_v48, %v419_v59  ;;  %v492_v5 = vadd.f32 %v319_v43, %v294_v29  ;;  %v493_v6 = vadd.f32 %v320_v34, %v295_v30  ;;  %v1720_v7 = vadd.f32 %v321_v35, %v296_v31 }
  0x1e   : > { %2420 = vst [vmem:[#allocation2_spill] sm:$0xff] %v1716_v61  ;;  %v453_v8 = vsel %vm450_vm2, %v451_v62, %v452_v63  ;;  %v455_v9 = vsel %vm450_vm2, %v452_v63, %v2382_v0  ;;  %v514_v13 = vrot.slane %v361_v49, 1  ;;  %v515_v18 = vrot.slane %v362_v40, 1 }
  0x1f   : > { %v482_v19 = vadd.f32 %v453_v8, %v253_v22  ;;  %v483_v24 = vadd.f32 %v455_v9, %v254_v23  ;;  %v517_v25 = vrot.slane %v363_v41, 1  ;;  %v2381_v26 = vrot.slane %v1683_v45, 1 }
  0x20   : > { %v516_v32 = vsel %vm450_vm2, %v514_v13, %v515_v18  ;;  %v568_v29 = vrot.slane %v407_v54, 1  ;;  %v569_v30 = vrot.slane %v408_v55, 1  ;;  %v571_v31 = vrot.slane %v409_v56, 1 }
  0x21   : > { %v518_v33 = vsel %vm450_vm2, %v515_v18, %v517_v25  ;;  %v520_v34 = vsel %vm450_vm2, %v517_v25, %v2381_v26  ;;  %v546_v35 = vadd.f32 %v516_v32, %v340_v44  ;;  %v573_v39 = vrot.slane %v410_v57, 1 }
  0x22   : > { %v547_v40 = vadd.f32 %v518_v33, %v341_v36  ;;  %v548_v43 = vadd.f32 %v520_v34, %v342_v38  ;;  %v570_v22 = vsel %vm450_vm2, %v568_v29, %v569_v30  ;;  %v572_v23 = vsel %vm450_vm2, %v569_v30, %v571_v31 }
  0x23   : > { %v574_v41 = vsel %vm450_vm2, %v571_v31, %v573_v39  ;;  %v2380_v46 = vrot.slane %v1708_v58, 1  ;;  %v600_v47 = vadd.f32 %v570_v22, %v386_v53  ;;  %v601_v49 = vadd.f32 %v572_v23, %v387_v50  ;;  %v1463_v53 = vld [vmem:[%s1592_s25 + $0x20] sm:$0xff]  }
  0x24   : > { %v602_v54 = vadd.f32 %v574_v41, %v388_v51  ;;  %v623_v55 = vrot.slane %v492_v5, 2  ;;  %v624_v56 = vrot.slane %v493_v6, 2  ;;  %v2379_v44 = vrot.slane %v1720_v7, 2 }
  0x25   : > { %v576_v36 = vsel %vm450_vm2, %v573_v39, %v2380_v46  ;;  %v675_v38 = vrot.slane %v600_v47, 1  ;;  %v676_v57 = vrot.slane %v601_v49, 1  ;;  %v783_v59 = vrot.slane %v428_v2, 6  ;;  %v306_v39 = vld [vmem:[%s1592_s25 + $0x28] sm:$0xff]  }
  0x26   : > { %v1740_v62 = vadd.f32 %v576_v36, %v389_v52  ;;  %v625_v63 = vsel %vm622_vm3, %v623_v55, %v624_v56  ;;  %v627_v50 = vsel %vm622_vm3, %v624_v56, %v2379_v44  ;;  %v678_v51 = vrot.slane %v602_v54, 1 }
  0x27   : > { %v654_v5 = vadd.f32 %v625_v63, %v482_v19  ;;  %v655_v6 = vadd.f32 %v627_v50, %v483_v24  ;;  %v677_v8 = vsel %vm450_vm2, %v675_v38, %v676_v57  ;;  %v784_v9 = vrot.slane %v1712_v60, 6 }
  0x28   : > { %2421 = vst [vmem:[#allocation3_spill] sm:$0xff] %v1740_v62  ;;  %v679_v13 = vsel %vm450_vm2, %v676_v57, %v678_v51  ;;  %v2377_v52 = vrot.slane %v1740_v62, 1  ;;  %v707_v2 = vadd.f32 %v677_v8, %v546_v35  ;;  %v2378_v18 = vrot.slane %v1716_v61, 6 }
  0x29   : > { %v708_v25 = vadd.f32 %v679_v13, %v547_v40  ;;  %v785_v32 = vsel %vm782_vm4, %v783_v59, %v784_v9  ;;  %v1754_v29 = vunpack.c.h.bf16 %v1612_v12  ;;  %v1756_v19 = vunpack.c.l.bf16 %v1463_v53  ;;  %v1803_v59 = vld [vmem:[%s2372_s2] ss:$0 sm:$0xff]  ;;  %v1818_v13 = vld [vmem:[%s1592_s25 + $0x30] sm:$0x7] }
  0x2a   : > { %v681_v60 = vsel %vm450_vm2, %v678_v51, %v2377_v52  ;;  %v730_v24 = vrot.slane %v707_v2, 3  ;;  %v787_v30 = vsel %vm782_vm4, %v784_v9, %v2378_v18  ;;  %v1764_v31 = vunpack.c.h.bf16 %v1463_v53  ;;  %2426 = vst [vmem:[#allocation8_spill] sm:$0xff] %v1818_v13 }
  0x2b   : > { %2422 = vst [vmem:[#allocation4_spill] sm:$0xff] %v1756_v19  ;;  %v1766_v33 = vadd.f32 %v681_v60, %v548_v43  ;;  %v731_v34 = vrot.slane %v708_v25, 3  ;;  %v259_v12 = vmul.f32 %v1625_v17, %v1597_v3  ;;  %v260_v35 = vmul.f32 %v1754_v29, %v1597_v3 }
  0x2c   : > { %2423 = vst [vmem:[#allocation5_spill] sm:$0xff] %v1764_v31  ;;  %v1775_v40 = vmul.f32 %v1625_v17, %v1602_v4  ;;  %v280_v22 = vmul.f32 %v1754_v29, %v1602_v4  ;;  %v1781_v23 = vmul.f32 %v1756_v19, %v1602_v4  ;;  %v300_v43 = vmul.f32 %v1625_v17, %v1618_v14 }
  0x2d   : > { %2424 = vst [vmem:[#allocation6_spill] sm:$0xff] %v1766_v33  ;;  %v732_v41 = vsel %vm729_vm5, %v730_v24, %v731_v34  ;;  %v2376_v47 = vrot.slane %v1766_v33, 3  ;;  %v301_v49 = vmul.f32 %v1754_v29, %v1618_v14  ;;  %v302_v54 = vmul.f32 %v1756_v19, %v1618_v14 }
  0x2e   : > { %v761_v55 = vadd.f32 %v732_v41, %v654_v5  ;;  %v1791_v56 = vunpack.c.l.bf16 %v306_v39  ;;  %v325_v36 = vmul.f32 %v1754_v29, %v1631_v20  ;;  %v326_v38 = vmul.f32 %v1756_v19, %v1631_v20 }
  0x2f   : > { %v734_v57 = vsel %vm729_vm5, %v731_v34, %v2376_v47  ;;  %v327_v63 = vmul.f32 %v1764_v31, %v1631_v20  ;;  %v346_v50 = vmul.f32 %v1754_v29, %v1636_v21  ;;  %v347_v51 = vmul.f32 %v1756_v19, %v1636_v21 }
  0x30   : > { %2425 = vst [vmem:[#allocation7_spill] sm:$0xff] %v1791_v56  ;;  %v762_v53 = vadd.f32 %v734_v57, %v655_v6  ;;  %v814_v5 = vadd.f32 %v785_v32, %v761_v55  ;;  %v348_v8 = vmul.f32 %v1764_v31, %v1636_v21  ;;  %v1815_v9 = vmul.f32 %v1754_v29, %v1646_v27 }
  0x31   : > { %v368_v2 = vmul.f32 %v1756_v19, %v1646_v27  ;;  %v369_v25 = vmul.f32 %v1764_v31, %v1646_v27  ;;  %v1826_v60 = vmul.f32 %v1646_v27, %v1791_v56  ;;  %v1828_v6 = vunpack.c.h.bf16 %v306_v39 }
  0x32   : > { %v815_v32 = vadd.f32 %v787_v30, %v762_v53  ;;  %v831_v24 = vadd.f32 %v1803_v59, %v814_v5  ;;  %v392_v34 = vmul.f32 %v1756_v19, %v1666_v37  ;;  %v393_v41 = vmul.f32 %v1764_v31, %v1666_v37 }
  0x33   : > { %2427 = vst [vmem:[#allocation9_spill] sm:$0xff] %v1828_v6  ;;  %v394_v55 = vmul.f32 %v1666_v37, %v1791_v56  ;;  %v395_v57 = vmul.f32 %v1666_v37, %v1828_v6  ;;  %v2386_v47 = vunpack.c.l.bf16 %v1818_v13  ;;  %v1842_v39 = vmul.f32 %v1756_v19, %v1677_v42 }
  0x34   : > { %v832_v30 = vadd.f32 %v1803_v59, %v815_v32  ;;  %v841_v53 = vmax.f32 %v831_v24, 0.0  ;;  %v414_v5 = vmul.f32 %v1764_v31, %v1677_v42  ;;  %v415_v52 = vmul.f32 %v1677_v42, %v1791_v56 }
  0x35   : > { %v416_v18 = vmul.f32 %v1677_v42, %v1828_v6  ;;  %v1854_v44 = vmul.f32 %v1677_v42, %v2386_v47  ;;  %v1858_v46 = vmul.f32 %v1756_v19, %v1689_v48  ;;  %v1862_v32 = vmul.f32 %v1764_v31, %v1689_v48 }
  0x36   : > { %v842_v24 = vmax.f32 %v832_v30, 0.0  ;;  %v1866_v26 = vmul.f32 %v1689_v48, %v1791_v56  ;;  %v2398_v0 = vrot.slane %v1775_v40, 1  ;;  %v464_v1 = vrot.slane %v280_v22, 1 }
  0x37   : > { %2428 = vst [vmem:[#allocation10_spill] sm:$0xff] %v1858_v46  ;;  %v2407_v33 = vrot.slane %v1781_v23, 1  ;;  %v1870_v47 = vadd.f32 %v325_v36, %v300_v43  ;;  %v499_v13 = vadd.f32 %v326_v38, %v301_v49  ;;  %v1872_v6 = vadd.f32 %v327_v63, %v302_v54 }
  0x38   : > { %v851_v62 = vpack.c.bf16 %v842_v24, %v841_v53  ;;  %v465_v31 = vsel %vm450_vm2, %v2398_v0, %v464_v1  ;;  %v2400_v30 = vrot.slane %v1815_v9, 1  ;;  %v527_v19 = vrot.slane %v368_v2, 1 }
  0x39   : > { %v467_v56 = vsel %vm450_vm2, %v464_v1, %v2407_v33  ;;  %v488_v22 = vadd.f32 %v465_v31, %v259_v12  ;;  %v529_v61 = vrot.slane %v369_v25, 1  ;;  %v2405_v43 = vrot.slane %v1826_v60, 1 }
  0x3a   : > { %1473 = vmatmul.mubr.msk.bf16.vlgmr.msra.gmra.mxu0 %vm864_vm6, %v851_v62  ;;  %v489_v49 = vadd.f32 %v467_v56, %v260_v35  ;;  %v528_v54 = vsel %vm450_vm2, %v2400_v30, %v527_v19  ;;  %v2408_v36 = vrot.slane %v1842_v39, 1  ;;  %v581_v38 = vrot.slane %v414_v5, 1 }
  0x3b   : > { %v530_v63 = vsel %vm450_vm2, %v527_v19, %v529_v61  ;;  %v532_v1 = vsel %vm450_vm2, %v529_v61, %v2405_v43  ;;  %v552_v31 = vadd.f32 %v528_v54, %v346_v50  ;;  %v583_v12 = vrot.slane %v415_v52, 1 }
  0x3c   : > { %v2429_v2 = vmov 0.0   ;;  %v553_v62 = vadd.f32 %v530_v63, %v347_v51  ;;  %v554_v35 = vadd.f32 %v532_v1, %v348_v8  ;;  %v582_v56 = vsel %vm450_vm2, %v2408_v36, %v581_v38 }
  0x3d   : > { %1476 = vmatprep.mubr.msk.bf16.mxu0 %vm1535_vm1, %v2429_v2  ;;  %v585_v25 = vrot.slane %v416_v18, 1  ;;  %v584_v53 = vsel %vm450_vm2, %v581_v38, %v583_v12  ;;  %v2406_v19 = vrot.slane %v1854_v44, 1  ;;  %v1898_v5 = vadd.f32 %v582_v56, %v392_v34 }
  0x3e   : > { %v2397_v61 = vrot.slane %v1870_v47, 2  ;;  %v607_v50 = vadd.f32 %v584_v53, %v393_v41  ;;  %v636_v24 = vrot.slane %v499_v13, 2  ;;  %v2404_v51 = vrot.slane %v1872_v6, 2 }
  0x3f   : > { %v586_v52 = vsel %vm450_vm2, %v583_v12, %v585_v25  ;;  %v588_v8 = vsel %vm450_vm2, %v585_v25, %v2406_v19  ;;  %v2399_v18 = vrot.slane %v1898_v5, 1  ;;  %v2396_v38 = vrot.slane %v1858_v46, 6 }
  0x40   : > { %v608_v54 = vadd.f32 %v586_v52, %v394_v55  ;;  %v1908_v63 = vadd.f32 %v588_v8, %v395_v57  ;;  %v637_v34 = vsel %vm622_vm3, %v2397_v61, %v636_v24  ;;  %v639_v13 = vsel %vm622_vm3, %v636_v24, %v2404_v51 }
  0x41   : > { %v688_v41 = vrot.slane %v607_v50, 1  ;;  %v660_v1 = vadd.f32 %v637_v34, %v488_v22  ;;  %v661_v12 = vadd.f32 %v639_v13, %v489_v49  ;;  %v796_v55 = vrot.slane %v1862_v32, 6 }
  0x42   : > { %v690_v56 = vrot.slane %v608_v54, 1  ;;  %v2403_v57 = vrot.slane %v1908_v63, 1  ;;  %v2401_v53 = vrot.slane %v1866_v26, 6  ;;  %v255_v52 = vmul.f32 %v1607_v10, %v1597_v3 }
  0x43   : > { %v689_v25 = vsel %vm450_vm2, %v2399_v18, %v688_v41  ;;  %v797_v22 = vsel %vm782_vm4, %v2396_v38, %v796_v55  ;;  %v256_v32 = vmul.f32 %v1609_v11, %v1597_v3  ;;  %v1945_v13 = vmul.f32 %v1620_v15, %v1602_v4 }
  0x44   : > { %v691_v8 = vsel %vm450_vm2, %v688_v41, %v690_v56  ;;  %v1925_v24 = vadd.f32 %v689_v25, %v552_v31  ;;  %v693_v49 = vsel %vm450_vm2, %v690_v56, %v2403_v57  ;;  %v799_v10 = vsel %vm782_vm4, %v796_v55, %v2401_v53 }
  0x45   : > { %v714_v50 = vadd.f32 %v691_v8, %v553_v62  ;;  %v276_v31 = vmul.f32 %v1609_v11, %v1602_v4  ;;  %v1940_v54 = vadd.f32 %v693_v49, %v554_v35  ;;  %v297_v41 = vmul.f32 %v1609_v11, %v1618_v14 }
  0x46   : > { %2430 = vst [vmem:[#allocation11_spill] sm:$0xff] %v1925_v24  ;;  %v2402_v34 = vrot.slane %v1925_v24, 3  ;;  %v298_v62 = vmul.f32 %v1620_v15, %v1618_v14  ;;  %v322_v55 = vmul.f32 %v1620_v15, %v1631_v20  ;;  %v323_v35 = vmul.f32 %v1622_v16, %v1631_v20 }
  0x47   : > { %v743_v56 = vrot.slane %v714_v50, 3  ;;  %v2410_v25 = vrot.slane %v1940_v54, 3  ;;  %v343_v8 = vmul.f32 %v1620_v15, %v1636_v21  ;;  %v344_v49 = vmul.f32 %v1622_v16, %v1636_v21 }
  0x48   : > { %v365_v11 = vmul.f32 %v1622_v16, %v1646_v27  ;;  %v1967_v38 = vmul.f32 %v1625_v17, %v1646_v27  ;;  %v390_v61 = vmul.f32 %v1625_v17, %v1666_v37  ;;  %v391_v0 = vmul.f32 %v1754_v29, %v1666_v37 }
  0x49   : > { %v744_v50 = vsel %vm729_vm5, %v2402_v34, %v743_v56  ;;  %v746_v18 = vsel %vm729_vm5, %v743_v56, %v2410_v25  ;;  %v412_v53 = vmul.f32 %v1754_v29, %v1677_v42  ;;  %v431_v34 = vmul.f32 %v1622_v16, %v1689_v48 }
  0x4a   : > { %v767_v30 = vadd.f32 %v744_v50, %v660_v1  ;;  %v768_v57 = vadd.f32 %v746_v18, %v661_v12  ;;  %v1982_v51 = vmul.f32 %v1625_v17, %v1689_v48  ;;  %v456_v43 = vrot.slane %v276_v31, 1 }
  0x4b   : > { %v2414_v19 = vrot.slane %v1945_v13, 1  ;;  %v495_v36 = vadd.f32 %v322_v55, %v297_v41  ;;  %v1985_v46 = vadd.f32 %v323_v35, %v298_v62  ;;  %v521_v56 = vrot.slane %v365_v11, 1 }
  0x4c   : > { %2431 = vst [vmem:[#allocation12_spill] sm:$0xff] %v1982_v51  ;;  %v820_v33 = vadd.f32 %v797_v22, %v767_v30  ;;  %v821_v1 = vadd.f32 %v799_v10, %v768_v57  ;;  %v2432_v50 = vrot.slane %v1650_v28, 1  ;;  %v2416_v12 = vrot.slane %v1967_v38, 1 }
  0x4d   : > { %v459_v18 = vsel %vm450_vm2, %v456_v43, %v2414_v19  ;;  %v2433_v30 = vrot.slane %v1683_v45, 1  ;;  %v577_v41 = vrot.slane %v412_v53, 1  ;;  %v628_v55 = vrot.slane %v495_v36, 2 }
  0x4e   : > { %v457_v42 = vsel %vm450_vm2, %v2432_v50, %v456_v43  ;;  %v837_v31 = vadd.f32 %v1803_v59, %v820_v33  ;;  %v485_v24 = vadd.f32 %v459_v18, %v256_v32  ;;  %v838_v57 = vadd.f32 %v1803_v59, %v821_v1 }
  0x4f   : > { %v484_v25 = vadd.f32 %v457_v42, %v255_v52  ;;  %v522_v22 = vsel %vm450_vm2, %v2433_v30, %v521_v56  ;;  %v524_v28 = vsel %vm450_vm2, %v521_v56, %v2416_v12  ;;  %v2413_v33 = vrot.slane %v1985_v46, 2 }
  0x50   : > { %v549_v10 = vadd.f32 %v522_v22, %v343_v8  ;;  %v847_v43 = vmax.f32 %v837_v31, 0.0  ;;  %v550_v62 = vadd.f32 %v524_v28, %v344_v49  ;;  %v848_v52 = vmax.f32 %v838_v57, 0.0  ;;  %v2439_v22 = vld [vmem:[#allocation4_spill] sm:$0xff]  ;;  %v2440_v28 = vld [vmem:[#allocation5_spill] sm:$0xff] }
  0x51   : > { %v2434_v45 = vrot.slane %v1708_v58, 1  ;;  %v2435_v35 = vrot.slane %v1842_v39, 1  ;;  %v788_v1 = vrot.slane %v431_v34, 6  ;;  %v2436_v53 = vrot.slane %v1720_v7, 2  ;;  %v263_v58 = vld [vmem:[%s1592_s25 + $0x28] sm:$0x1] }
  0x52   : > { %v631_v36 = vsel %vm622_vm3, %v628_v55, %v2413_v33  ;;  %v854_v49 = vpack.c.bf16 %v848_v52, %v847_v43  ;;  %v2437_v39 = vld [vmem:[#allocation2_spill] sm:$0xff]  ;;  %v2412_v30 = vrot.slane %v1982_v51, 6  ;;  %v261_v57 = vmul.f32 %v2439_v22, %v1597_v3  ;;  %v2441_v52 = vld [vmem:[#allocation3_spill] sm:$0xff] }
  0x53   : > { %v578_v32 = vsel %vm450_vm2, %v2434_v45, %v577_v41  ;;  %v580_v11 = vsel %vm450_vm2, %v577_v41, %v2435_v35  ;;  %v629_v8 = vsel %vm622_vm3, %v2436_v53, %v628_v55  ;;  %v657_v18 = vadd.f32 %v631_v36, %v485_v24  ;;  %v330_v55 = vld [vmem:[%s1592_s25 + $0x2c] sm:$0x3]  ;;  %v374_v53 = vld [vmem:[%s1592_s25 + $0x30] sm:$0x3] }
  0x54   : > { %v604_v50 = vadd.f32 %v578_v32, %v390_v61  ;;  %v2009_v56 = vadd.f32 %v580_v11, %v391_v0  ;;  %v656_v42 = vadd.f32 %v629_v8, %v484_v25  ;;  %v2438_v31 = vrot.slane %v2437_v39, 6  ;;  %v307_v61 = vld [vmem:[%s1592_s25 + $0x2c] sm:$0x1]  ;;  %1485 = vmatmul.mubr.msk.bf16.vlgmr.msra.gmra.mxu1 %vm864_vm6, %v854_v49 }
  0x55   : > { %v262_v25 = vmul.f32 %v2440_v28, %v1597_v3  ;;  %v264_v24 = vunpack.c.l.bf16 %v263_v58  ;;  %v282_v41 = vmul.f32 %v2440_v28, %v1602_v4  ;;  %v303_v43 = vmul.f32 %v2440_v28, %v1618_v14  ;;  %1488 = vmatprep.mubr.msk.bf16.mxu1 %vm1535_vm1, %v2429_v2  ;;  %v2444_v39 = vld [vmem:[#allocation7_spill] sm:$0xff] }
  0x56   : > { %v789_v34 = vsel %vm782_vm4, %v2438_v31, %v788_v1  ;;  %v682_v0 = vrot.slane %v604_v50, 1  ;;  %v2415_v7 = vrot.slane %v2009_v56, 1  ;;  %v2442_v45 = vrot.slane %v2441_v52, 1 }
  0x57   : > { %v791_v11 = vsel %vm782_vm4, %v788_v1, %v2412_v30  ;;  %v310_v50 = vunpack.c.l.bf16 %v307_v61  ;;  %v283_v58 = vmul.f32 %v1602_v4, %v264_v24  ;;  %v304_v49 = vmul.f32 %v1618_v14, %v264_v24 }
  0x58   : > { %v683_v32 = vsel %vm450_vm2, %v2442_v45, %v682_v0  ;;  %v685_v35 = vsel %vm450_vm2, %v682_v0, %v2415_v7  ;;  %v328_v31 = vmul.f32 %v1631_v20, %v2444_v39  ;;  %v331_v22 = vunpack.c.l.bf16 %v330_v55  ;;  %v2448_v55 = vld [vmem:[#allocation6_spill] sm:$0xff] }
  0x59   : > { %v710_v8 = vadd.f32 %v683_v32, %v549_v10  ;;  %v2046_v36 = vadd.f32 %v685_v35, %v550_v62  ;;  %v329_v0 = vmul.f32 %v1631_v20, %v310_v50  ;;  %v349_v1 = vmul.f32 %v1636_v21, %v2444_v39  ;;  %v2445_v10 = vld [vmem:[#allocation9_spill] sm:$0xff]  ;;  %v2446_v32 = vld [vmem:[#allocation8_spill] sm:$0xff] }
  0x5a   : > { %v377_v52 = vunpack.c.l.bf16 %v374_v53  ;;  %v437_v62 = vmul.f32 %v1689_v48, %v2445_v10  ;;  %v350_v45 = vmul.f32 %v1636_v21, %v331_v22  ;;  %v371_v24 = vmul.f32 %v1646_v27, %v331_v22 }
  0x5b   : > { %2443 = vst [vmem:[#allocation2_spill] sm:$0xff] %v2046_v36  ;;  %v735_v28 = vrot.slane %v710_v8, 3  ;;  %v2419_v61 = vrot.slane %v2046_v36, 3  ;;  %v2447_v35 = vunpack.c.l.bf16 %v2446_v32  ;;  %v468_v50 = vrot.slane %v282_v41, 1 }
  0x5c   : > { %v2449_v33 = vrot.slane %v2448_v55, 3  ;;  %v396_v8 = vmul.f32 %v1666_v37, %v377_v52  ;;  %v470_v10 = vrot.slane %v283_v58, 1  ;;  %v2450_v27 = vrot.slane %v1781_v23, 1 }
  0x5d   : > { %v438_v30 = vmul.f32 %v1689_v48, %v2447_v35  ;;  %v738_v53 = vsel %vm729_vm5, %v735_v28, %v2419_v61  ;;  %v501_v32 = vadd.f32 %v328_v31, %v303_v43  ;;  %v502_v55 = vadd.f32 %v329_v0, %v304_v49 }
  0x5e   : > { %v736_v39 = vsel %vm729_vm5, %v2449_v33, %v735_v28  ;;  %v764_v7 = vadd.f32 %v738_v53, %v657_v18  ;;  %v469_v22 = vsel %vm450_vm2, %v2450_v27, %v468_v50  ;;  %v471_v41 = vsel %vm450_vm2, %v468_v50, %v470_v10 }
  0x5f   : > { %v763_v19 = vadd.f32 %v736_v39, %v656_v42  ;;  %v490_v35 = vadd.f32 %v469_v22, %v261_v57  ;;  %v533_v12 = vrot.slane %v371_v24, 1  ;;  %v491_v36 = vadd.f32 %v471_v41, %v262_v25 }
  0x60   : > { %v817_v51 = vadd.f32 %v791_v11, %v764_v7  ;;  %v2451_v28 = vrot.slane %v1854_v44, 1  ;;  %v2452_v37 = vrot.slane %v1826_v60, 1  ;;  %v640_v23 = vrot.slane %v501_v32, 2 }
  0x61   : > { %v816_v33 = vadd.f32 %v789_v34, %v763_v19  ;;  %v556_v18 = vadd.f32 %v533_v12, %v350_v45  ;;  %v642_v58 = vrot.slane %v502_v55, 2  ;;  %v2453_v19 = vrot.slane %v1872_v6, 2 }
  0x62   : > { %v610_v61 = vadd.f32 %v2451_v28, %v396_v8  ;;  %v534_v42 = vsel %vm450_vm2, %v2452_v37, %v533_v12  ;;  %v834_v31 = vadd.f32 %v1803_v59, %v817_v51  ;;  %v800_v7 = vrot.slane %v437_v62, 6 }
  0x63   : > { %v833_v43 = vadd.f32 %v1803_v59, %v816_v33  ;;  %v555_v57 = vadd.f32 %v534_v42, %v349_v1  ;;  %v641_v34 = vsel %vm622_vm3, %v2453_v19, %v640_v23  ;;  %v643_v44 = vsel %vm622_vm3, %v640_v23, %v642_v58 }
  0x64   : > { %v694_v49 = vrot.slane %v610_v61, 1  ;;  %v844_v60 = vmax.f32 %v834_v31, 0.0  ;;  %v662_v11 = vadd.f32 %v641_v34, %v490_v35  ;;  %v802_v0 = vrot.slane %v438_v30, 6 }
  0x65   : > { %v843_v25 = vmax.f32 %v833_v43, 0.0  ;;  %v663_v12 = vadd.f32 %v643_v44, %v491_v36  ;;  %v2454_v52 = vrot.slane %v1908_v63, 1  ;;  %v2455_v51 = vrot.slane %v1866_v26, 6  ;;  %v2467_v44 = vld [vmem:[#allocation11_spill] sm:$0xff] }
  0x66   : > { %v717_v24 = vadd.f32 %v694_v49, %v556_v18  ;;  %v257_v50 = vmul.f32 %v1620_v15, %v1597_v3  ;;  %v258_v62 = vmul.f32 %v1622_v16, %v1597_v3  ;;  %v278_v30 = vmul.f32 %v1622_v16, %v1602_v4 }
  0x67   : > { %v695_v45 = vsel %vm450_vm2, %v2454_v52, %v694_v49  ;;  %v801_v1 = vsel %vm782_vm4, %v2455_v51, %v800_v7  ;;  %v852_v6 = vpack.c.bf16 %v844_v60, %v843_v25  ;;  %v299_v63 = vmul.f32 %v1622_v16, %v1618_v14  ;;  %v2465_v49 = vld [vmem:[#allocation2_spill] sm:$0xff]  ;;  %v2469_v25 = vld [vmem:[#allocation12_spill] sm:$0xff] }
  0x68   : > { %v716_v61 = vadd.f32 %v695_v45, %v555_v57  ;;  %v749_v39 = vrot.slane %v717_v24, 3  ;;  %v324_v26 = vmul.f32 %v1625_v17, %v1631_v20  ;;  %v345_v53 = vmul.f32 %v1625_v17, %v1636_v21 }
  0x69   : > { %1477 = vmatmul.mubr.msk.bf16.gmra.mxu0 %vm864_vm6, %v852_v6  ;;  %v433_v15 = vmul.f32 %v1754_v29, %v1689_v48  ;;  %v2456_v3 = vrot.slane %v1815_v9, 1  ;;  %v2457_v8 = vrot.slane %v1967_v38, 1  ;;  %v803_v14 = vsel %vm782_vm4, %v800_v7, %v802_v0 }
  0x6a   : > { %v747_v36 = vrot.slane %v716_v61, 3  ;;  %1480 = vmatprep.mubr.msk.bf16.mxu0 %vm1535_vm1, %v2429_v2  ;;  %v460_v16 = vrot.slane %v278_v30, 1  ;;  %v497_v20 = vadd.f32 %v324_v26, %v299_v63  ;;  %v2458_v10 = vrot.slane %v1898_v5, 1 }
  0x6b   : > { %v526_v4 = vsel %vm450_vm2, %v2457_v8, %v2456_v3  ;;  %v2459_v17 = vrot.slane %v2009_v56, 1  ;;  %v2460_v48 = vrot.slane %v1940_v54, 3  ;;  %v792_v27 = vrot.slane %v433_v15, 6 }
  0x6c   : > { %v750_v9 = vsel %vm729_vm5, %v747_v36, %v749_v39  ;;  %v551_v38 = vadd.f32 %v526_v4, %v345_v53  ;;  %v2461_v2 = vrot.slane %v1945_v13, 1  ;;  %v2462_v5 = vrot.slane %v1775_v40, 1 }
  0x6d   : > { %v687_v21 = vsel %vm450_vm2, %v2459_v17, %v2458_v10  ;;  %v748_v29 = vsel %vm729_vm5, %v2460_v48, %v747_v36  ;;  %v770_v32 = vadd.f32 %v750_v9, %v663_v12  ;;  %v632_v33 = vrot.slane %v497_v20, 2  ;;  %v1169_v36 = vld [vmem:[%s2158_s26 + $0x2c] sm:$0xe] }
  0x6e   : > { %v769_v22 = vadd.f32 %v748_v29, %v662_v11  ;;  %v461_v41 = vsel %vm450_vm2, %v2461_v2, %v460_v16  ;;  %v463_v56 = vsel %vm450_vm2, %v460_v16, %v2462_v5  ;;  %v712_v54 = vadd.f32 %v687_v21, %v551_v38  ;;  %v2471_v11 = vld [vmem:[#allocation10_spill] sm:$0xff] }
  0x6f   : > { %v486_v35 = vadd.f32 %v461_v41, %v257_v50  ;;  %v487_v55 = vadd.f32 %v463_v56, %v258_v62  ;;  %v823_v37 = vadd.f32 %v803_v14, %v770_v32  ;;  %v2463_v42 = vrot.slane %v1985_v46, 2  ;;  %v2199_v41 = vld [vmem:[%s2374_s4] ss:$0 sm:$0xff] }
  0x70   : > { %v822_v28 = vadd.f32 %v801_v1, %v769_v22  ;;  %v2464_v23 = vrot.slane %v1870_v47, 2  ;;  %v739_v58 = vrot.slane %v712_v54, 3  ;;  %v2466_v19 = vrot.slane %v2465_v49, 3 }
  0x71   : > { %v633_v18 = vsel %vm622_vm3, %v2463_v42, %v632_v33  ;;  %v840_v40 = vadd.f32 %v1803_v59, %v823_v37  ;;  %v2468_v7 = vrot.slane %v2467_v44, 3  ;;  %v2470_v60 = vrot.slane %v2469_v25, 6 }
  0x72   : > { %v635_v13 = vsel %vm622_vm3, %v632_v33, %v2464_v23  ;;  %v839_v43 = vadd.f32 %v1803_v59, %v822_v28  ;;  %v658_v31 = vadd.f32 %v633_v18, %v486_v35  ;;  %v740_v34 = vsel %vm729_vm5, %v2466_v19, %v739_v58 }
  0x73   : > { %v659_v57 = vadd.f32 %v635_v13, %v487_v55  ;;  %v742_v46 = vsel %vm729_vm5, %v739_v58, %v2468_v7  ;;  %v793_v47 = vsel %vm782_vm4, %v2470_v60, %v792_v27  ;;  %v2472_v0 = vrot.slane %v2471_v11, 6 }
  0x74   : > { %v849_v52 = vmax.f32 %v839_v43, 0.0  ;;  %v850_v45 = vmax.f32 %v840_v40, 0.0  ;;  %v765_v24 = vadd.f32 %v740_v34, %v658_v31  ;;  %v1170_v3 = vsel %vm2169_vm12, 0, %v1169_v36 }
  0x75   : > { %v795_v12 = vsel %vm782_vm4, %v792_v27, %v2472_v0  ;;  %v766_v51 = vadd.f32 %v742_v46, %v659_v57  ;;  %1171 = vst [vmem:[%s2158_s26 + $0x2c] sm:$0xe] %v1170_v3  ;;  %vm1158_vm13 = vcmask 125952   ;;  %vm1173_vm14 = vcmask 124928  }
  0x76   : > { %v855_v1 = vpack.c.bf16 %v850_v45, %v849_v52  ;;  %v818_v6 = vadd.f32 %v793_v47, %v765_v24  ;;  %v1536_v8 = vmov 0   ;;  %v967_v4 = vlaneseq }
  0x77   : > { %v819_v61 = vadd.f32 %v795_v12, %v766_v51  ;;  %1159 = vst.msk [vmem:[%s2158_s26] sm:$0xf] %vm1158_vm13, %v1536_v8  ;;  %1172 = vst.msk [vmem:[%s2158_s26 + $0x30] sm:$0xf] %vm1158_vm13, %v1536_v8  ;;  %vm1205_vm7 = vsmask.f32 5392 }
  0x78   : > { %1489 = vmatmul.mubr.msk.bf16.gmra.mxu1 %vm864_vm6, %v855_v1  ;;  %v835_v50 = vadd.f32 %v1803_v59, %v818_v6  ;;  %1174 = vst.msk [vmem:[%s2158_s26 + $0x34] sm:$0x7] %vm1173_vm14, %v1536_v8  ;;  %v2182_v14 = vshrl.u32 %v967_v4, 7  ;;  %vm2217_vm10 = vmor %vm1161_vm8, %vm1205_vm7 }
  0x79   : > { %v836_v62 = vadd.f32 %v1803_v59, %v819_v61  ;;  %v1163_v59 = vld [vmem:[%s2158_s26 + $0x4] sm:$0x3] }
  0x7a   : > { %v845_v39 = vmax.f32 %v835_v50, 0.0  ;;  %v1164_v53 = vsel %vm2162_vm9, 0, %v1163_v59  ;;  %v2185_v16 = vmul.u32.u64.low 3435973837, %v2182_v14  ;;  %v2186_v20 = vmul.u32.u64.high 3435973837, %v2182_v14, %v2185_v16 }
  0x7b   : > { %v846_v30 = vmax.f32 %v836_v62, 0.0  ;;  %1165 = vst [vmem:[%s2158_s26 + $0x4] sm:$0x3] %v1164_v53  ;;  %v969_v10 = vadd.s32 8, %v2182_v14  ;;  %v974_v32 = vadd.s32 48, %v2182_v14  ;;  %v975_v33 = vadd.s32 56, %v2182_v14 }
  0x7c   : > { %v984_v48 = vshrl.u32 %v2186_v20, 3  ;;  %v970_v12 = vadd.s32 16, %v2182_v14  ;;  %v976_v16 = vadd.s32 64, %v2182_v14 }
  0x7d   : > { %v853_v63 = vpack.c.bf16 %v846_v30, %v845_v39  ;;  %v2189_v17 = vmul.u32.u64.low 3435973837, %v969_v10  ;;  %v2190_v21 = vmul.u32.u64.high 3435973837, %v969_v10, %v2189_v17 }
  0x7e   : > { %v985_v29 = vmul.u32 10, %v984_v48  ;;  %v2201_v5 = vmul.u32.u64.low 3435973837, %v974_v32  ;;  %v2202_v56 = vmul.u32.u64.high 3435973837, %v974_v32, %v2201_v5 }
  0x7f   : > { %1481 = vmatmul.mubr.msk.bf16.gmra.mxu0 %vm864_vm6, %v853_v63  ;;  %v995_v9 = vshrl.u32 %v2190_v21, 3  ;;  %v2206_v23 = vmul.u32.u64.low 3435973837, %v975_v33  ;;  %v2207_v13 = vmul.u32.u64.high 3435973837, %v975_v33, %v2206_v23  ;;  %v971_v63 = vadd.s32 24, %v2182_v14 }
  0x80   : > { %v986_v38 = vsub.s32 %v2182_v14, %v985_v29  ;;  %v1050_v57 = vshrl.u32 %v2202_v56, 3  ;;  %v2222_v39 = vmul.u32.u64.low 3435973837, %v970_v12  ;;  %v2223_v30 = vmul.u32.u64.high 3435973837, %v970_v12, %v2222_v39 }
  0x81   : > { %v996_v27 = vmul.u32 10, %v995_v9  ;;  %v1061_v0 = vshrl.u32 %v2207_v13, 3  ;;  %v2233_v3 = vmul.u32.u64.low 3435973837, %v971_v63  ;;  %v2234_v8 = vmul.u32.u64.high 3435973837, %v971_v63, %v2233_v3 }
  0x82   : > { %vm1088_vm15 = vcmp.ne.s32.totalorder %v986_v38, 0  ;;  %vm1098_vm0 = vcmp.lt.s32.totalorder %v986_v38, 0  ;;  %v1118_v2 = vadd.s32 10, %v986_v38  ;;  %v1051_v60 = vmul.u32 10, %v1050_v57  ;;  %v1317_v11 = vld [vmem:[%s2158_s26 + $0x4] sm:$0xe] }
  0x83   : > { %v997_v22 = vsub.s32 %v969_v10, %v996_v27  ;;  %vm1108_vm1 = vmand %vm1098_vm0, %vm1088_vm15  ;;  %v1062_v62 = vmul.u32 10, %v1061_v0  ;;  %v1006_v20 = vshrl.u32 %v2223_v30, 3 }
  0x84   : > { %v1128_v35 = vsel %vm1108_vm1, %v1118_v2, %v986_v38  ;;  %v1052_v1 = vsub.s32 %v974_v32, %v1051_v60  ;;  %v2238_v21 = vmul.u32.u64.low 3435973837, %v976_v16  ;;  %v2239_v48 = vmul.u32.u64.high 3435973837, %v976_v16, %v2238_v21 }
  0x85   : > { %vm1089_vm2 = vcmp.ne.s32.totalorder %v997_v22, 0  ;;  %vm1099_vm3 = vcmp.lt.s32.totalorder %v997_v22, 0  ;;  %v1119_v55 = vadd.s32 10, %v997_v22  ;;  %vm1138_vm5 = vcmp.lt.s32.totalorder %v1128_v35, 8 }
  0x86   : > { %vm1109_vm4 = vmand %vm1099_vm3, %vm1089_vm2  ;;  %vm1094_vm11 = vcmp.ne.s32.totalorder %v1052_v1, 0  ;;  %v1063_v15 = vsub.s32 %v975_v33, %v1062_v62  ;;  %v1124_v4 = vadd.s32 10, %v1052_v1  ;;  %v2246_v38 = vadd.s32 72, %v2182_v14 }
  0x87   : > { %v1129_v18 = vsel %vm1109_vm4, %v1119_v55, %v997_v22  ;;  %v1007_v22 = vmul.u32 10, %v1006_v20  ;;  %v1017_v32 = vshrl.u32 %v2234_v8, 3 }
  0x88   : > { %vm1139_vm6 = vcmp.lt.s32.totalorder %v1129_v18, 8  ;;  %vm1095_vm14 = vcmp.ne.s32.totalorder %v1063_v15, 0  ;;  %vm1105_vm15 = vcmp.lt.s32.totalorder %v1063_v15, 0  ;;  %v1125_v17 = vadd.s32 10, %v1063_v15 }
  0x89   : > { %vm2241_vm0 = vmand %vm1105_vm15, %vm1095_vm14  ;;  %v2253_v55 = vmul.u32.u64.low 3435973837, %v2246_v38  ;;  %v2254_v33 = vmul.u32.u64.high 3435973837, %v2246_v38, %v2253_v55  ;;  %v1018_v18 = vmul.u32 10, %v1017_v32 }
  0x8a   : > { %v1135_v56 = vsel %vm2241_vm0, %v1125_v17, %v1063_v15 }
  0x8b   : > { %vm1145_vm2 = vcmp.lt.s32.totalorder %v1135_v56, 8 }
  0xfa   : > { %v918_v54 = vpop.f32.mrf.mxu0 }
  0xfb   : > { %v919_v28 = vadd.f32 %v2199_v41, %v918_v54  ;;  %v2257_v54 = vadd.s32 32, %v2182_v14 }
  0xfc   : > { %v1474_v37 = vpop.f32.mrf.mxu0 }
  0xfd   : > { %v957_v42 = vmax.f32 %v919_v28, 0.0 }
  0xfe   : > { %v921_v58 = vpop.f32.mrf.mxu0 }
  0xff   : > { %v1148_v43 = vsel %vm1138_vm5, %v957_v42, 0.0  ;;  %v922_v40 = vadd.f32 %v2199_v41, %v921_v58  ;;  %v1008_v42 = vsub.s32 %v970_v12, %v1007_v22 }
 0x100   : > { %v1430_v31 = vpack.c.bf16 %v1148_v43, %v1148_v43  ;;  %v1475_v49 = vpop.f32.mrf.mxu0  ;;  %v1072_v43 = vshrl.u32 %v2239_v48, 3 }
 0x101   : > { %v958_v19 = vmax.f32 %v922_v40, 0.0  ;;  %v2262_v40 = vadd.s32 40, %v2182_v14  ;;  %vm1090_vm3 = vcmp.ne.s32.totalorder %v1008_v42, 0  ;;  %vm1100_vm4 = vcmp.lt.s32.totalorder %v1008_v42, 0 }
 0x102   : > { %v1208_v34 = vshrl.u32 %v1430_v31, 16  ;;  %v1211_v44 = vshll.u32 %v1430_v31, 16  ;;  %v1073_v60 = vmul.u32 10, %v1072_v43  ;;  %vm2274_vm5 = vmand %vm1100_vm4, %vm1090_vm3 }
 0x103   : > { %v1149_v7 = vsel %vm1139_vm6, %v958_v19, 0.0  ;;  %v2265_v49 = vmul.u32.u64.low 3435973837, %v2257_v54  ;;  %v2266_v19 = vmul.u32.u64.high 3435973837, %v2257_v54, %v2265_v49 }
 0x104   : > { %v1210_v46 = vrot.slane %v1208_v34, 6  ;;  %v1213_v25 = vrot.slane %v1211_v44, 7  ;;  %v1431_v47 = vpack.c.bf16 %v1149_v7, %v1149_v7  ;;  %v1019_v44 = vsub.s32 %v971_v63, %v1018_v18 }
 0x105   : > { %v1028_v63 = vshrl.u32 %v2266_v19, 3 }
 0x106   : > { %v1214_v52 = vor.u32 %v1213_v25, %v1210_v46  ;;  %v1217_v45 = vshrl.u32 %v1431_v47, 16  ;;  %v1220_v24 = vshll.u32 %v1431_v47, 16  ;;  %vm1091_vm6 = vcmp.ne.s32.totalorder %v1019_v44, 0 }
 0x107   : > { %vm1101_vm7 = vcmp.lt.s32.totalorder %v1019_v44, 0  ;;  %v1121_v30 = vadd.s32 10, %v1019_v44 }
 0x108   : > { %v1318_v51 = vsel %vm2169_vm12, %v1214_v52, %v1317_v11  ;;  %v1219_v6 = vrot.slane %v1217_v45, 6  ;;  %v1222_v61 = vrot.slane %v1220_v24, 7  ;;  %v1215_v59 = vrot.slane %v1214_v52, 4 }
 0x109   : > { %1319 = vst [vmem:[%s2158_s26 + $0x4] sm:$0xe] %v1318_v51  ;;  %vm1104_vm12 = vcmp.lt.s32.totalorder %v1052_v1, 0  ;;  %v2269_v47 = vmul.u32.u64.low 3435973837, %v2262_v40  ;;  %v2270_v11 = vmul.u32.u64.high 3435973837, %v2262_v40, %v2269_v47  ;;  %v1120_v52 = vadd.s32 10, %v1008_v42 }
 0x10a   : > { %v2226_v36 = vor.u32 %v1222_v61, %v1219_v6  ;;  %vm1114_vm8 = vmand %vm1104_vm12, %vm1094_vm11  ;;  %v1083_v24 = vshrl.u32 %v2254_v33, 3  ;;  %v1074_v61 = vsub.s32 %v976_v16, %v1073_v60 }
 0x10b   : > { %v1134_v10 = vsel %vm1114_vm8, %v1124_v4, %v1052_v1  ;;  %v1130_v39 = vsel %vm2274_vm5, %v1120_v52, %v1008_v42  ;;  %vm2285_vm11 = vmand %vm1101_vm7, %vm1091_vm6  ;;  %v1039_v17 = vshrl.u32 %v2270_v11, 3 }
 0x10c   : > { %v1224_v53 = vsel %vm2217_vm10, %v1215_v59, %v2226_v36  ;;  %vm1144_vm1 = vcmp.lt.s32.totalorder %v1134_v10, 8  ;;  %v1084_v8 = vmul.u32 10, %v1083_v24  ;;  %vm1140_vm12 = vcmp.lt.s32.totalorder %v1130_v39, 8 }
 0x10d   : > { %1320 = vst.msk [vmem:[%s2158_s26 + $0x8] sm:$0xf] %vm1158_vm13, %v1224_v53  ;;  %vm1096_vm8 = vcmp.ne.s32.totalorder %v1074_v61, 0  ;;  %vm1106_vm14 = vcmp.lt.s32.totalorder %v1074_v61, 0  ;;  %v1131_v20 = vsel %vm2285_vm11, %v1121_v30, %v1019_v44  ;;  %v1029_v10 = vmul.u32 10, %v1028_v63 }
 0x10e   : > { %vm2300_vm15 = vmand %vm1106_vm14, %vm1096_vm8  ;;  %vm1141_vm0 = vcmp.lt.s32.totalorder %v1131_v20, 8 }
 0x10f   : > { %v1030_v56 = vsub.s32 %v2257_v54, %v1029_v10  ;;  %v1225_v54 = vrot.slane %v2226_v36, 4 }
 0x111   : > { %vm1092_vm3 = vcmp.ne.s32.totalorder %v1030_v56, 0  ;;  %vm1102_vm4 = vcmp.lt.s32.totalorder %v1030_v56, 0 }
 0x112   : > { %vm2320_vm7 = vmand %vm1102_vm4, %vm1092_vm3 }
 0x114   : > { %v942_v29 = vpop.f32.mrf.mxu1 }
 0x115   : > { %v943_v27 = vadd.f32 %v2199_v41, %v942_v29  ;;  %v1126_v29 = vadd.s32 10, %v1074_v61 }
 0x116   : > { %v1486_v2 = vpop.f32.mrf.mxu1 }
 0x117   : > { %v963_v5 = vmax.f32 %v943_v27, 0.0  ;;  %v1085_v27 = vsub.s32 %v2246_v38, %v1084_v8 }
 0x118   : > { %v945_v35 = vpop.f32.mrf.mxu1 }
 0x119   : > { %v1154_v28 = vsel %vm1144_vm1, %v963_v5, 0.0  ;;  %v946_v37 = vadd.f32 %v2199_v41, %v945_v35  ;;  %v1040_v35 = vmul.u32 10, %v1039_v17  ;;  %vm1097_vm1 = vcmp.ne.s32.totalorder %v1085_v27, 0 }
 0x11a   : > { %v1436_v23 = vpack.c.bf16 %v1154_v28, %v1154_v28  ;;  %v1487_v13 = vpop.f32.mrf.mxu1  ;;  %v1136_v28 = vsel %vm2300_vm15, %v1126_v29, %v1074_v61 }
 0x11b   : > { %v964_v58 = vmax.f32 %v946_v37, 0.0  ;;  %v1041_v13 = vsub.s32 %v2262_v40, %v1040_v35  ;;  %vm1146_vm6 = vcmp.lt.s32.totalorder %v1136_v28, 8 }
 0x11c   : > { %v1267_v31 = vshrl.u32 %v1436_v23, 16  ;;  %v1270_v57 = vshll.u32 %v1436_v23, 16  ;;  %v1127_v23 = vadd.s32 10, %v1085_v27 }
 0x11d   : > { %v1155_v34 = vsel %vm1145_vm2, %v964_v58, 0.0  ;;  %vm1107_vm2 = vcmp.lt.s32.totalorder %v1085_v27, 0  ;;  %vm1093_vm11 = vcmp.ne.s32.totalorder %v1041_v13, 0 }
 0x11e   : > { %v1269_v7 = vrot.slane %v1267_v31, 6  ;;  %v1272_v46 = vrot.slane %v1270_v57, 7  ;;  %v1437_v25 = vpack.c.bf16 %v1155_v34, %v1155_v34  ;;  %vm2309_vm5 = vmand %vm1107_vm2, %vm1097_vm1 }
 0x11f   : > { %v1137_v60 = vsel %vm2309_vm5, %v1127_v23, %v1085_v27 }
 0x120   : > { %v2272_v14 = vor.u32 %v1272_v46, %v1269_v7  ;;  %v1277_v0 = vshrl.u32 %v1437_v25, 16  ;;  %v1280_v12 = vshll.u32 %v1437_v25, 16  ;;  %v1122_v7 = vadd.s32 10, %v1030_v56 }
 0x121   : > { %vm1147_vm14 = vcmp.lt.s32.totalorder %v1137_v60, 8 }
 0x122   : > { %v1275_v51 = vrot.slane %v2272_v14, 4  ;;  %v1279_v1 = vrot.slane %v1277_v0, 6  ;;  %v1282_v6 = vrot.slane %v1280_v12, 7  ;;  %v1123_v12 = vadd.s32 10, %v1041_v13 }
 0x123   : > { %v1132_v24 = vsel %vm2320_vm7, %v1122_v7, %v1030_v56 }
 0x124   : > { %v2280_v62 = vor.u32 %v1282_v6, %v1279_v1  ;;  %vm1142_vm15 = vcmp.lt.s32.totalorder %v1132_v24, 8 }
 0x126   : > { %v1284_v15 = vsel %vm2217_vm10, %v1275_v51, %v2280_v62 }
 0x127   : > { %1326 = vst.msk [vmem:[%s2158_s26 + $0x20] sm:$0xf] %vm1158_vm13, %v1284_v15 }
 0x129   : > { %v926_v59 = vpop.f32.mrf.mxu0 }
 0x12a   : > { %v927_v3 = vadd.f32 %v2199_v41, %v926_v59 }
 0x12b   : > { %v1478_v4 = vpop.f32.mrf.mxu0 }
 0x12c   : > { %v959_v16 = vmax.f32 %v927_v3, 0.0 }
 0x12d   : > { %v929_v21 = vpop.f32.mrf.mxu0 }
 0x12e   : > { %v1150_v48 = vsel %vm1140_vm12, %v959_v16, 0.0  ;;  %v930_v9 = vadd.f32 %v2199_v41, %v929_v21  ;;  %vm1103_vm12 = vcmp.lt.s32.totalorder %v1041_v13, 0  ;;  %v1285_v16 = vrot.slane %v2280_v62, 4 }
 0x12f   : > { %v1432_v22 = vpack.c.bf16 %v1150_v48, %v1150_v48  ;;  %v1479_v2 = vpop.f32.mrf.mxu0  ;;  %vm2329_vm8 = vmand %vm1103_vm12, %vm1093_vm11 }
 0x130   : > { %v960_v5 = vmax.f32 %v930_v9, 0.0  ;;  %v1133_v3 = vsel %vm2329_vm8, %v1123_v12, %v1041_v13 }
 0x131   : > { %v1227_v55 = vshrl.u32 %v1432_v22, 16  ;;  %v1230_v33 = vshll.u32 %v1432_v22, 16 }
 0x132   : > { %v1151_v37 = vsel %vm1141_vm0, %v960_v5, 0.0  ;;  %vm1143_vm0 = vcmp.lt.s32.totalorder %v1133_v3, 8 }
 0x133   : > { %v1229_v42 = vrot.slane %v1227_v55, 6  ;;  %v1232_v38 = vrot.slane %v1230_v33, 7  ;;  %v1433_v18 = vpack.c.bf16 %v1151_v37, %v1151_v37 }
 0x135   : > { %v1233_v58 = vor.u32 %v1232_v38, %v1229_v42  ;;  %v1237_v43 = vshrl.u32 %v1433_v18, 16  ;;  %v1240_v31 = vshll.u32 %v1433_v18, 16  ;;  %v1329_v38 = vld [vmem:[%s2158_s26 + $0x2c] sm:$0x3] }
 0x137   : > { %v1234_v19 = vsel %vm2217_vm10, %v1225_v54, %v1233_v58  ;;  %v1239_v44 = vrot.slane %v1237_v43, 6  ;;  %v1242_v40 = vrot.slane %v1240_v31, 7  ;;  %v1235_v47 = vrot.slane %v1233_v58, 4 }
 0x138   : > { %v950_v57 = vpop.f32.mrf.mxu1  ;;  %1321 = vst.msk [vmem:[%s2158_s26 + $0xc] sm:$0xf] %vm1158_vm13, %v1234_v19 }
 0x139   : > { %v951_v34 = vadd.f32 %v2199_v41, %v950_v57  ;;  %v1243_v11 = vor.u32 %v1242_v40, %v1239_v44 }
 0x13a   : > { %v1490_v36 = vpop.f32.mrf.mxu1 }
 0x13b   : > { %v965_v25 = vmax.f32 %v951_v34, 0.0  ;;  %v1244_v6 = vsel %vm2217_vm10, %v1235_v47, %v1243_v11  ;;  %v1245_v31 = vrot.slane %v1243_v11, 4 }
 0x13c   : > { %v953_v0 = vpop.f32.mrf.mxu1  ;;  %1322 = vst.msk [vmem:[%s2158_s26 + $0x10] sm:$0xf] %vm1158_vm13, %v1244_v6 }
 0x13d   : > { %v1156_v52 = vsel %vm1146_vm6, %v965_v25, 0.0  ;;  %v954_v45 = vadd.f32 %v2199_v41, %v953_v0 }
 0x13e   : > { %v1438_v1 = vpack.c.bf16 %v1156_v52, %v1156_v52  ;;  %v1491_v39 = vpop.f32.mrf.mxu1 }
 0x13f   : > { %v934_v61 = vpop.f32.mrf.mxu0  ;;  %v966_v30 = vmax.f32 %v954_v45, 0.0 }
 0x140   : > { %v935_v63 = vadd.f32 %v2199_v41, %v934_v61  ;;  %v1287_v59 = vshrl.u32 %v1438_v1, 16  ;;  %v1290_v53 = vshll.u32 %v1438_v1, 16 }
 0x141   : > { %v1482_v15 = vpop.f32.mrf.mxu0  ;;  %v1157_v8 = vsel %vm1147_vm14, %v966_v30, 0.0 }
 0x142   : > { %v961_v4 = vmax.f32 %v935_v63, 0.0  ;;  %v1289_v20 = vrot.slane %v1287_v59, 6  ;;  %v1292_v10 = vrot.slane %v1290_v53, 7  ;;  %v1439_v17 = vpack.c.bf16 %v1157_v8, %v1157_v8 }
 0x143   : > { %v937_v21 = vpop.f32.mrf.mxu0 }
 0x144   : > { %v1152_v48 = vsel %vm1142_vm15, %v961_v4, 0.0  ;;  %v938_v29 = vadd.f32 %v2199_v41, %v937_v21  ;;  %v1293_v9 = vor.u32 %v1292_v10, %v1289_v20  ;;  %v1297_v27 = vshrl.u32 %v1439_v17, 16 }
 0x145   : > { %v1300_v22 = vshll.u32 %v1439_v17, 16  ;;  %v1434_v32 = vpack.c.bf16 %v1152_v48, %v1152_v48  ;;  %v1483_v2 = vpop.f32.mrf.mxu0 }
 0x146   : > { %v962_v5 = vmax.f32 %v938_v29, 0.0  ;;  %v1294_v56 = vsel %vm2217_vm10, %v1285_v16, %v1293_v9  ;;  %v1295_v62 = vrot.slane %v1293_v9, 4  ;;  %v1299_v35 = vrot.slane %v1297_v27, 6 }
 0x147   : > { %v1302_v55 = vrot.slane %v1300_v22, 7  ;;  %1327 = vst.msk [vmem:[%s2158_s26 + $0x24] sm:$0xf] %vm1158_vm13, %v1294_v56  ;;  %v1247_v33 = vshrl.u32 %v1434_v32, 16  ;;  %v1250_v28 = vshll.u32 %v1434_v32, 16 }
 0x148   : > { %v1153_v41 = vsel %vm1143_vm0, %v962_v5, 0.0 }
 0x149   : > { %v1303_v37 = vor.u32 %v1302_v55, %v1299_v35  ;;  %v1435_v42 = vpack.c.bf16 %v1153_v41, %v1153_v41  ;;  %v1249_v18 = vrot.slane %v1247_v33, 6  ;;  %v1252_v23 = vrot.slane %v1250_v28, 7 }
 0x14b   : > { %v1304_v13 = vsel %vm2217_vm10, %v1295_v62, %v1303_v37  ;;  %v1305_v54 = vrot.slane %v1303_v37, 4  ;;  %v1257_v58 = vshrl.u32 %v1435_v42, 16  ;;  %v1260_v43 = vshll.u32 %v1435_v42, 16 }
 0x14c   : > { %1328 = vst.msk [vmem:[%s2158_s26 + $0x28] sm:$0xf] %vm1158_vm13, %v1304_v13  ;;  %v1253_v57 = vor.u32 %v1252_v23, %v1249_v18 }
 0x14d   : > { %v1330_v49 = vsel %vm2162_vm9, %v1305_v54, %v1329_v38  ;;  %v1259_v19 = vrot.slane %v1257_v58, 6  ;;  %v1262_v34 = vrot.slane %v1260_v43, 7 }
 0x14e   : > { %1331 = vst [vmem:[%s2158_s26 + $0x2c] sm:$0x3] %v1330_v49  ;;  %v1254_v44 = vsel %vm2217_vm10, %v1245_v31, %v1253_v57  ;;  %v1255_v7 = vrot.slane %v1253_v57, 4 }
 0x14f   : > { %1323 = vst.msk [vmem:[%s2158_s26 + $0x14] sm:$0xf] %vm1158_vm13, %v1254_v44  ;;  %v1263_v40 = vor.u32 %v1262_v34, %v1259_v19 }
 0x151   : > { %v1264_v36 = vsel %vm2217_vm10, %v1255_v7, %v1263_v40  ;;  %v1265_v46 = vrot.slane %v1263_v40, 4 }
 0x152   : > { %1324 = vst.msk [vmem:[%s2158_s26 + $0x18] sm:$0xf] %vm1158_vm13, %v1264_v36 }
 0x153   : > { %v1274_v26 = vsel %vm2217_vm10, %v1265_v46, %v2272_v14 }
 0x154   : > { %1325 = vst.msk [vmem:[%s2158_s26 + $0x1c] sm:$0xf] %vm1158_vm13, %v1274_v26 }
 0x155 PF: > { %s15_s18 = sadd.s32 1, %s1532_s18  }
 0x156   : > { %p12_p4 = scmp.ge.s32.totalorder %s15_s18, 4  }
 0x158   :  { %14 = sbr.rel (!%p12_p4) target bundleno = 1 (0x1), region = 78 }

// kernel: fwd.7
= control target key start
LH: loop header
LB: loop body
LE: loop exit
PB: predicated region body
PF: predicated region fallthrough
CT: control target
= control target key end

     0   :  { %s2684_s21 = smov 0   ;;  %s3491_s0 = inlined_call_operand.vmem [shape: bf16[2,100,3], index: 0, kind: input, shape index: {}]   ;;  %s3492_s1 = inlined_call_operand.vmem [shape: bf16[2,100,3], index: 1, kind: input, shape index: {}]   ;;  %s3493_s2 = inlined_call_operand.vmem [shape: bf16[2,100,3], index: 2, kind: input, shape index: {}]   ;;  %s3494_s3 = inlined_call_operand.vmem [shape: bf16[2,100,3], index: 3, kind: input, shape index: {}]   ;;  %s3495_s4 = inlined_call_operand.vmem [shape: bf16[9,3,8], index: 4, kind: input, shape index: {}]   ;;  %s3496_s5 = inlined_call_operand.vmem [shape: f32[1,8], index: 5, kind: input, shape index: {}]   ;;  %s3497_s6 = inlined_call_operand.vmem [shape: bf16[2,110,8], index: 6, kind: output, shape index: {}]  }
   0x1 LB: > { %s2173_s22 = sadd.s32 4294967295, %s2643_s21   ;;  %p2177_p0 = scmp.ge.s32.totalorder %s2643_s21, 1  ;;  %s2643_s21 = sphi %s2684_s21, %s16_s21  }
   0x2   : > { %p242_p1 = scmp.lt.s32.totalorder %s2643_s21, 3 }
   0x4   : > { %p243_p2 = pnand %p2177_p0, %p242_p1 }
   0x5   : > { %p287_p3 = scmp.lt.s32.totalorder (!%p243_p2), %s2173_s22, 1 }
   0x6   : > { %246 = sbr.rel (%p243_p2) target bundleno = 411 (0x19b), region = 44 }
   0xb   : > { %v2183_v0 = vld [vmem:[%s3495_s4 + $0x2] sm:$0x3]  ;;  %vm377_vm0 = vcmask 1040384   ;;  %vm378_vm1 = vcmask 1041408   ;;  %v2645_v1 = vmov 0.0   ;;  %v2646_v2 = vmov 65535  }
   0xc   : > { %2358 = vmatprep.subr.bf16.mxu0 %v2645_v1  ;;  %2556 = vmatprep.subr.bf16.mxu1 %v2645_v1  ;;  %v379_v3 = vsel %vm377_vm0, 4294967295, %v2646_v2  ;;  %vm2647_vm2 = vmmov 0   ;;  %s3541_s22 = smov (!%p287_p3, %s2173_s22), 1  ;;  %v2204_v6 = vld [vmem:[%s3495_s4 + $0x4] sm:$0x3]  ;;  %vm361_vm3 = vcmask 23552  }
   0xd   : > { %v2697_v4 = vsel %vm378_vm1, %v379_v3, 0  ;;  %2360 = vmatprep.mubr.msk.bf16.mxu0 %vm2647_vm2, %v2645_v1  ;;  %2372 = vmatprep.mubr.msk.bf16.mxu1 %vm2647_vm2, %v2645_v1  ;;  %s2710_s27 = smul.u32 52, %s3541_s22  ;;  %v323_v7 = vld [vmem:[%s3495_s4] sm:$0x3]  ;;  %v2216_v17 = vld [vmem:[%s3495_s4 + $0x6] sm:$0x3] }
   0xe   : > { %v382_v5 = vand.u32 %v2183_v0, %v2697_v4  ;;  %v675_v8 = vand.u32 %v2204_v6, %v2697_v4  ;;  %v498_v10 = vand.u32 %v2697_v4, %v323_v7  ;;  %v813_v23 = vand.u32 %v2216_v17, %v2697_v4  ;;  %v2227_v24 = vld [vmem:[%s3495_s4 + $0x8] sm:$0x3] }
   0xf   : > { %s2721_s8 = scalar_lea.vmem %s3492_s1, %s2710_s27  ;;  %s2733_s11 = scalar_lea.vmem %s3491_s0, %s2710_s27  ;;  %vm614_vm4 = vsmask.f32 7424  ;;  %v951_v30 = vand.u32 %v2227_v24, %v2697_v4  ;;  %vm1263_vm5 = vcmask 1046528   ;;  %vm1535_vm6 = vsmask.f32 6400 }
  0x10   : > { %2359 = vmatpush3.bf16.msra.mxu0 %v382_v5  ;;  %2557 = vmatpush3.bf16.msra.mxu1 %v382_v5  ;;  %v2592_v9 = vld [vmem:[%s2721_s8] sm:$0xff]   ;;  %v2593_v11 = vld [vmem:[%s2721_s8 + $0x18] sm:$0xff]   ;;  %v2594_v12 = vld [vmem:[%s2721_s8 + $0x8] sm:$0xff]   ;;  %s2761_s16 = scalar_lea.vmem %s3493_s2, %s2710_s27  ;;  %s2771_s23 = scalar_lea.vmem %s3494_s3, %s2710_s27  ;;  %vm1910_vm7 = vcmask 58368   ;;  %vm1911_vm8 = vsmask.f32 1280 }
  0x11   : > { %2402 = vmatprep.subr.bf16.mxu0 %v2645_v1  ;;  %2380 = vmatprep.subr.bf16.mxu1 %v2645_v1  ;;  %v2595_v13 = vld [vmem:[%s2721_s8 + $0x20] sm:$0xff]   ;;  %v2600_v15 = vld [vmem:[%s2733_s11 + $0x8] sm:$0xff]   ;;  %v2596_v18 = vld [vmem:[%s2721_s8 + $0x10] sm:$0xff]   ;;  %vm1916_vm10 = vcmask 60417   ;;  %vm1917_vm11 = vsmask.f32 7942 }
  0x12   : > { %v2599_v14 = vld [vmem:[%s2733_s11] sm:$0xff]   ;;  %v623_v22 = vshll.u32 %v2600_v15, 16  ;;  %v2602_v27 = vld [vmem:[%s2733_s11 + $0x10] sm:$0xff]   ;;  %v2598_v28 = vld [vmem:[%s2733_s11 + $0x8] sm:$0xff]   ;;  %v627_v31 = vshrl.u32 %v2600_v15, 16  ;;  %vm1908_vm13 = vcmask 60416  }
  0x13   : > { %2361 = vmatmul.mubr.msk.bf16.vlgmr.msra.gmra.mxu0 %vm361_vm3, %v2592_v9  ;;  %2373 = vmatmul.mubr.msk.bf16.vlgmr.msra.gmra.mxu1 %vm361_vm3, %v2593_v11  ;;  %v618_v16 = vshll.u32 %v2599_v14, 16  ;;  %v2597_v19 = vld [vmem:[%s2733_s11] sm:$0xff]   ;;  %v616_v20 = vshrl.u32 %v2599_v14, 16  ;;  %v631_v32 = vshll.u32 %v2602_v27, 16  ;;  %v2604_v33 = vld [vmem:[%s2733_s11 + $0x18] sm:$0xff]   ;;  %v2601_v37 = vld [vmem:[%s2733_s11 + $0x10] sm:$0xff]  }
  0x14   : > { %2403 = vmatpush3.bf16.msra.mxu0 %v675_v8  ;;  %2381 = vmatpush3.bf16.msra.mxu1 %v498_v10  ;;  %v625_v26 = vrot.slane %v623_v22, 1  ;;  %v2618_v36 = vld [vmem:[%s2761_s16] sm:$0xff]   ;;  %v635_v38 = vshrl.u32 %v2602_v27, 16  ;;  %v2619_v39 = vld [vmem:[%s2761_s16 + $0x8] sm:$0xff]   ;;  %v639_v40 = vshll.u32 %v2604_v33, 16  ;;  %v2620_v43 = vld [vmem:[%s2761_s16 + $0x10] sm:$0xff]  }
  0x15   : > { %2364 = vmatprep.mubr.msk.bf16.mxu0 %vm2647_vm2, %v2645_v1  ;;  %2376 = vmatprep.mubr.msk.bf16.mxu1 %vm2647_vm2, %v2645_v1  ;;  %v620_v21 = vrot.slane %v618_v16, 1  ;;  %v633_v35 = vrot.slane %v631_v32, 1  ;;  %v1078_v41 = vshrl.u32 %v2618_v36, 16  ;;  %v1080_v42 = vshll.u32 %v2618_v36, 16  ;;  %v2623_v52 = vld [vmem:[%s2761_s16 + $0x18] sm:$0xff]   ;;  %v2606_v56 = vld [vmem:[%s2733_s11 + $0x20] sm:$0xff]   ;;  %vm3019_vm9 = vmand %vm1910_vm7, %vm1911_vm8 }
  0x16   : > { %2424 = vmatprep.subr.bf16.mxu1 %v2645_v1  ;;  %2446 = vmatprep.subr.bf16.mxu0 %v2645_v1  ;;  %v629_v34 = vor.u32 %v627_v31, %v625_v26  ;;  %v1085_v45 = vshll.u32 %v2619_v39, 16  ;;  %v1089_v46 = vshrl.u32 %v2619_v39, 16  ;;  %v1093_v48 = vshll.u32 %v2620_v43, 16  ;;  %v2625_v61 = vld [vmem:[%s2761_s16 + $0x20] sm:$0xff]   ;;  %v2603_v62 = vld [vmem:[%s2733_s11 + $0x18] sm:$0xff]   ;;  %vm3026_vm12 = vmand %vm1916_vm10, %vm1917_vm11 }
  0x17   : > { %v621_v25 = vor.u32 %v620_v21, %v616_v20  ;;  %v1082_v47 = vrot.slane %v1080_v42, 1  ;;  %v1097_v53 = vshrl.u32 %v2620_v43, 16  ;;  %v637_v54 = vor.u32 %v635_v38, %v633_v35  ;;  %v2627_v9 = vld [vmem:[%s2761_s16 + $0x28] ss:$0 sps:$4 sm:$0x11]   ;;  %v2605_v21 = vld [vmem:[%s2733_s11 + $0x20] sm:$0xff]  }
  0x18   : > { %v634_v44 = vsel %vm614_vm4, %v629_v34, %v633_v35  ;;  %v1087_v49 = vrot.slane %v1085_v45, 1  ;;  %v1095_v51 = vrot.slane %v1093_v48, 1  ;;  %v641_v55 = vrot.slane %v639_v40, 1  ;;  %v2238_v31 = vld [vmem:[%s3495_s4 + $0xa] sm:$0x3]  ;;  %v2608_v34 = vld [vmem:[%s2761_s16] sm:$0xff]  }
  0x19   : > { %v626_v29 = vsel %vm614_vm4, %v621_v25, %v625_v26  ;;  %v1083_v50 = vor.u32 %v1082_v47, %v1078_v41  ;;  %v1101_v60 = vshll.u32 %v2623_v52, 16  ;;  %v1105_v0 = vshrl.u32 %v2623_v52, 16  ;;  %v2833_v25 = vld [vmem:[%s2721_s8 + $0x24] sm:$0xff]   ;;  %v2635_v26 = vld [vmem:[%s2721_s8 + $0x2c] ss:$0 sps:$4 sm:$0x11]  }
  0x1a   : > { %v1091_v57 = vor.u32 %v1089_v46, %v1087_v49  ;;  %v1099_v59 = vor.u32 %v1097_v53, %v1095_v51  ;;  %v643_v2 = vshrl.u32 %v2604_v33, 16  ;;  %v1109_v5 = vshll.u32 %v2625_v61, 16  ;;  %v2250_v36 = vld [vmem:[%s3495_s4 + $0xc] sm:$0x3]  ;;  %v2611_v41 = vld [vmem:[%s2761_s16 + $0x10] sm:$0xff]   ;;  %v2613_v43 = vld [vmem:[%s2761_s16 + $0x18] sm:$0xff]  }
  0x1b   : > { %2365 = vmatmul.mubr.msk.bf16.gmra.mxu0 %vm361_vm3, %v2594_v12  ;;  %2377 = vmatmul.mubr.msk.bf16.gmra.mxu1 %vm361_vm3, %v2595_v13  ;;  %v2805_v58 = vsel %vm614_vm4, %v1083_v50, %v1087_v49  ;;  %v1103_v3 = vrot.slane %v1101_v60, 1  ;;  %v1113_v6 = vshrl.u32 %v2625_v61, 16  ;;  %v642_v7 = vsel %vm614_vm4, %v637_v54, %v641_v55  ;;  %v2609_v38 = vld [vmem:[%s2761_s16 + $0x8] sm:$0xff]   ;;  %v2614_v42 = vld [vmem:[%s2771_s23 + $0x10] sm:$0xff]   ;;  %v2615_v45 = vld [vmem:[%s2761_s16 + $0x20] sm:$0xff]  }
  0x1c   : > { %2368 = vmatprep.mubr.msk.bf16.mxu0 %vm2647_vm2, %v2645_v1  ;;  %2382 = vmatprep.mubr.msk.bf16.mxu1 %vm2647_vm2, %v2645_v1  ;;  %v2810_v63 = vsel %vm614_vm4, %v1091_v57, %v1095_v51  ;;  %v647_v8 = vshll.u32 %v2606_v56, 16  ;;  %v1111_v12 = vrot.slane %v1109_v5, 1  ;;  %v1117_v13 = vshll.u32 %v2627_v9, 16  ;;  %v2612_v40 = vld [vmem:[%s2771_s23 + $0x8] sm:$0xff]   ;;  %v2617_v47 = vld [vmem:[%s2771_s23 + $0x20] sm:$0xff]  }
  0x1d   : > { %v2815_v10 = vsel %vm614_vm4, %v1099_v59, %v1103_v3  ;;  %v1107_v11 = vor.u32 %v1105_v0, %v1103_v3  ;;  %v645_v16 = vor.u32 %v643_v2, %v641_v55  ;;  %v1137_v35 = vand.u32 %v2238_v31, %v2697_v4  ;;  %v2262_v46 = vld [vmem:[%s3495_s4 + $0xe] sm:$0x3]  ;;  %v2621_v48 = vld [vmem:[%s2733_s11 + $0x4] sm:$0xfe]   ;;  %v2274_v53 = vld [vmem:[%s3495_s4 + $0x10] sm:$0x3] }
  0x1e   : > { %v1115_v15 = vor.u32 %v1113_v6, %v1111_v12  ;;  %v649_v17 = vrot.slane %v647_v8, 1  ;;  %v1291_v39 = vand.u32 %v2250_v36, %v2697_v4  ;;  %v2622_v49 = vld [vmem:[%s2733_s11 + $0xc] sm:$0xff]   ;;  %v1444_v50 = vand.u32 %v2262_v46, %v2697_v4  ;;  %v2936_v61 = vld [vmem:[%s2733_s11 + $0x24] sm:$0xff]  }
  0x1f   : > { %v2819_v14 = vsel %vm614_vm4, %v1107_v11, %v1111_v12  ;;  %v1264_v51 = vrot.slane %v2621_v48, 1  ;;  %v1265_v52 = vrot.slane %v2622_v49, 1  ;;  %v1605_v55 = vand.u32 %v2274_v53, %v2697_v4  ;;  %v2626_v4 = vld [vmem:[%s2733_s11 + $0x1c] sm:$0xff]   ;;  %v2630_v2 = vld [vmem:[%s2721_s8 + $0x4] sm:$0xfe]   ;;  %v2631_v3 = vld [vmem:[%s2721_s8 + $0xc] sm:$0xff]  }
  0x20   : > { %v650_v22 = vsel %vm614_vm4, %v645_v16, %v649_v17  ;;  %v1269_v59 = vrot.slane %v2626_v4, 1  ;;  %v1537_v6 = vshrl.u32 %v2621_v48, 16  ;;  %v1545_v8 = vshrl.u32 %v2622_v49, 16  ;;  %v2636_v46 = vld [vmem:[%s2733_s11 + $0x2c] ss:$0 sps:$4 sm:$0x33]  }
  0x21   : > { %v1266_v54 = vsel %vm1263_vm5, %v1264_v51, %v1265_v52  ;;  %v1548_v9 = vshll.u32 %v2622_v49, 16  ;;  %v1418_v11 = vrot.slane %v2631_v3, 1  ;;  %v1581_v49 = vshrl.u32 %v2636_v46, 16 }
  0x22   : > { %vm1923_vm14 = vcmask 59392  }
  0x23   : > { %2369 = vmatmul.mubr.msk.bf16.gmra.mxu0 %vm361_vm3, %v2596_v18  ;;  %2383 = vmatmul.mubr.msk.bf16.vlgmr.msra.gmra.mxu1 %vm361_vm3, %v2597_v19  ;;  %v2607_v18 = vld [vmem:[%s2733_s11 + $0x28] ss:$0 sps:$4 sm:$0x11]   ;;  %v1119_v19 = vrot.slane %v1117_v13, 1  ;;  %v1539_v13 = vrot.slane %v1537_v6, 1  ;;  %v1550_v16 = vrot.slane %v1548_v9, 2 }
  0x24   : > { %2404 = vmatprep.mubr.msk.bf16.mxu0 %vm2647_vm2, %v2645_v1  ;;  %2425 = vmatpush3.bf16.msra.mxu1 %v813_v23  ;;  %v651_v23 = vshrl.u32 %v2606_v56, 16  ;;  %v655_v24 = vshll.u32 %v2607_v18, 16  ;;  %v2624_v56 = vld [vmem:[%s2733_s11 + $0x14] sm:$0xff]  }
  0x25   : > { %2386 = vmatprep.mubr.msk.bf16.mxu1 %vm2647_vm2, %v2645_v1  ;;  %2468 = vmatprep.subr.bf16.mxu1 %v2645_v1  ;;  %v2828_v20 = vsel %vm614_vm4, %v1115_v15, %v1119_v19  ;;  %v1267_v57 = vrot.slane %v2624_v56, 1  ;;  %v1547_v15 = vrot.slane %v1545_v8, 1  ;;  %v2632_v18 = vld [vmem:[%s2721_s8 + $0x14] sm:$0xff]  }
  0x26   : > { %v653_v27 = vor.u32 %v651_v23, %v649_v17  ;;  %v1420_v23 = vrot.slane %v2632_v18, 1 }
  0x27   : > { %v1270_v60 = vsel %vm1263_vm5, %v1267_v57, %v1269_v59 }
  0x2b   : > { %2405 = vmatmul.mubr.msk.bf16.vlgmr.msra.gmra.mxu0 %vm361_vm3, %v626_v29  ;;  %2387 = vmatmul.mubr.msk.bf16.gmra.mxu1 %vm361_vm3, %v2598_v28  ;;  %v657_v28 = vrot.slane %v655_v24, 1  ;;  %v1424_v29 = vrot.slane %v2833_v25, 1 }
  0x2c   : > { %2447 = vmatpush3.bf16.msra.mxu0 %v951_v30  ;;  %2390 = vmatprep.mubr.msk.bf16.mxu1 %vm2647_vm2, %v2645_v1  ;;  %v1426_v30 = vrot.slane %v2635_v26, 1 }
  0x2d   : > { %2408 = vmatprep.mubr.msk.bf16.mxu0 %vm2647_vm2, %v2645_v1  ;;  %2490 = vmatprep.subr.bf16.mxu0 %v2645_v1  ;;  %v658_v33 = vsel %vm614_vm4, %v653_v27, %v657_v28  ;;  %v1421_v28 = vsel %vm1263_vm5, %v1418_v11, %v1420_v23 }
  0x2e   : > { %v2849_v32 = vsel %vm1263_vm5, %v1424_v29, %v1426_v30  ;;  %v2633_v30 = vld [vmem:[%s2721_s8 + $0x1c] sm:$0xff]   ;;  %s2559_s8 = smul.u32 56, %s3541_s22 }
  0x33   : > { %2409 = vmatmul.mubr.msk.bf16.gmra.mxu0 %vm361_vm3, %v634_v44  ;;  %2391 = vmatmul.mubr.msk.bf16.gmra.mxu1 %vm361_vm3, %v2601_v37  ;;  %v2610_v37 = vld [vmem:[%s2771_s23] sm:$0xff]   ;;  %v2616_v44 = vld [vmem:[%s2771_s23 + $0x18] sm:$0xff]  }
  0x34   : > { %2412 = vmatprep.mubr.msk.bf16.mxu0 %vm2647_vm2, %v2645_v1  ;;  %2394 = vmatprep.mubr.msk.bf16.mxu1 %vm2647_vm2, %v2645_v1 }
  0x3b   : > { %2413 = vmatmul.mubr.msk.bf16.gmra.mxu0 %vm361_vm3, %v642_v7  ;;  %2395 = vmatmul.mubr.msk.bf16.gmra.mxu1 %vm361_vm3, %v2603_v62  ;;  %v1271_v62 = vrot.slane %v2936_v61, 1  ;;  %v1540_v7 = vshll.u32 %v2621_v48, 16 }
  0x3c   : > { %2416 = vmatprep.mubr.msk.bf16.mxu0 %vm2647_vm2, %v2645_v1  ;;  %2398 = vmatprep.mubr.msk.bf16.mxu1 %vm2647_vm2, %v2645_v1 }
  0x3d   : > { %v1272_v0 = vsel %vm1263_vm5, %v1269_v59, %v1271_v62 }
  0x43   : > { %2417 = vmatmul.mubr.msk.bf16.gmra.mxu0 %vm361_vm3, %v650_v22  ;;  %2399 = vmatmul.mubr.msk.bf16.gmra.mxu1 %vm361_vm3, %v2605_v21  ;;  %v1554_v21 = vshrl.u32 %v2624_v56, 16  ;;  %v1557_v22 = vshll.u32 %v2624_v56, 16 }
  0x44   : > { %2420 = vmatprep.mubr.msk.bf16.mxu0 %vm2647_vm2, %v2645_v1  ;;  %2426 = vmatprep.mubr.msk.bf16.mxu1 %vm2647_vm2, %v2645_v1 }
  0x45   : > { %v1556_v26 = vrot.slane %v1554_v21, 1  ;;  %v1559_v27 = vrot.slane %v1557_v22, 2 }
  0x47   : > { %v1560_v31 = vor.u32 %v1559_v27, %v1556_v26 }
  0x4b   : > { %2421 = vmatmul.mubr.msk.bf16.gmra.mxu0 %vm361_vm3, %v658_v33  ;;  %2427 = vmatmul.mubr.msk.bf16.vlgmr.msra.gmra.mxu1 %vm361_vm3, %v2608_v34  ;;  %v1563_v33 = vshrl.u32 %v2626_v4, 16  ;;  %v1566_v34 = vshll.u32 %v2626_v4, 16 }
  0x4c   : > { %2448 = vmatprep.mubr.msk.bf16.mxu0 %vm2647_vm2, %v2645_v1  ;;  %2469 = vmatpush3.bf16.msra.mxu1 %v1137_v35  ;;  %v1422_v35 = vrot.slane %v2633_v30, 1 }
  0x4d   : > { %2430 = vmatprep.mubr.msk.bf16.mxu1 %vm2647_vm2, %v2645_v1  ;;  %2512 = vmatprep.subr.bf16.mxu1 %v2645_v1 }
  0x53   : > { %2449 = vmatmul.mubr.msk.bf16.vlgmr.msra.gmra.mxu0 %vm361_vm3, %v2610_v37  ;;  %2431 = vmatmul.mubr.msk.bf16.gmra.mxu1 %vm361_vm3, %v2609_v38  ;;  %v1565_v37 = vrot.slane %v1563_v33, 1  ;;  %v1568_v38 = vrot.slane %v1566_v34, 2 }
  0x54   : > { %2491 = vmatpush3.bf16.msra.mxu0 %v1291_v39  ;;  %2434 = vmatprep.mubr.msk.bf16.mxu1 %vm2647_vm2, %v2645_v1  ;;  %v1423_v39 = vsel %vm1263_vm5, %v1420_v23, %v1422_v35 }
  0x55   : > { %2452 = vmatprep.mubr.msk.bf16.mxu0 %vm2647_vm2, %v2645_v1  ;;  %2534 = vmatprep.subr.bf16.mxu0 %v2645_v1 }
  0x5b   : > { %2453 = vmatmul.mubr.msk.bf16.gmra.mxu0 %vm361_vm3, %v2612_v40  ;;  %2435 = vmatmul.mubr.msk.bf16.gmra.mxu1 %vm361_vm3, %v2611_v41  ;;  %v1569_v40 = vor.u32 %v1568_v38, %v1565_v37  ;;  %v1572_v41 = vshrl.u32 %v2936_v61, 16 }
  0x5c   : > { %2456 = vmatprep.mubr.msk.bf16.mxu0 %vm2647_vm2, %v2645_v1  ;;  %2438 = vmatprep.mubr.msk.bf16.mxu1 %vm2647_vm2, %v2645_v1 }
  0x63   : > { %2457 = vmatmul.mubr.msk.bf16.gmra.mxu0 %vm361_vm3, %v2614_v42  ;;  %2439 = vmatmul.mubr.msk.bf16.gmra.mxu1 %vm361_vm3, %v2613_v43  ;;  %v1575_v42 = vshll.u32 %v2936_v61, 16  ;;  %v1570_v43 = vsel %vm1535_vm6, %v1560_v31, %v1569_v40 }
  0x64   : > { %2460 = vmatprep.mubr.msk.bf16.mxu0 %vm2647_vm2, %v2645_v1  ;;  %2442 = vmatprep.mubr.msk.bf16.mxu1 %vm2647_vm2, %v2645_v1 }
  0x6b   : > { %2461 = vmatmul.mubr.msk.bf16.gmra.mxu0 %vm361_vm3, %v2616_v44  ;;  %2443 = vmatmul.mubr.msk.bf16.gmra.mxu1 %vm361_vm3, %v2615_v45  ;;  %v1574_v44 = vrot.slane %v1572_v41, 1  ;;  %v1577_v45 = vrot.slane %v1575_v42, 2  ;;  %v2648_v41 = vmov 0  }
  0x6c   : > { %2464 = vmatprep.mubr.msk.bf16.mxu0 %vm2647_vm2, %v2645_v1  ;;  %2470 = vmatprep.mubr.msk.bf16.mxu1 %vm2647_vm2, %v2645_v1 }
  0x6d   : > { %v1578_v48 = vor.u32 %v1577_v45, %v1574_v44 }
  0x6f   : > { %v1579_v51 = vsel %vm1535_vm6, %v1569_v40, %v1578_v48 }
  0x73   : > { %2465 = vmatmul.mubr.msk.bf16.gmra.mxu0 %vm361_vm3, %v2617_v47  ;;  %2471 = vmatmul.mubr.msk.bf16.vlgmr.msra.gmra.mxu1 %vm361_vm3, %v2805_v58  ;;  %v1268_v58 = vsel %vm1263_vm5, %v1265_v52, %v1267_v57  ;;  %v1425_v47 = vsel %vm1263_vm5, %v1422_v35, %v1424_v29  ;;  %v1583_v52 = vrot.slane %v1581_v49, 1 }
  0x74   : > { %2492 = vmatprep.mubr.msk.bf16.mxu0 %vm2647_vm2, %v2645_v1  ;;  %2513 = vmatpush3.bf16.msra.mxu1 %v1444_v50  ;;  %v1584_v50 = vshll.u32 %v2636_v46, 16 }
  0x75   : > { %2474 = vmatprep.mubr.msk.bf16.mxu1 %vm2647_vm2, %v2645_v1 }
  0x76   : > { %v1586_v53 = vrot.slane %v1584_v50, 2 }
  0x78   : > { %v1587_v25 = vor.u32 %v1586_v53, %v1583_v52 }
  0x7a   : > { %v1588_v29 = vsel %vm1535_vm6, %v1578_v48, %v1587_v25 }
  0x7b   : > { %2493 = vmatmul.mubr.msk.bf16.vlgmr.msra.gmra.mxu0 %vm361_vm3, %v1266_v54  ;;  %2475 = vmatmul.mubr.msk.bf16.gmra.mxu1 %vm361_vm3, %v2810_v63  ;;  %v2629_v63 = vld [vmem:[%s2733_s11 + $0x2c] ss:$0 sps:$4 sm:$0x11]   ;;  %s3016_s11 = scalar_lea.vmem %s3497_s6, %s2559_s8 }
  0x7c   : > { %2535 = vmatpush3.bf16.msra.mxu0 %v1605_v55  ;;  %2478 = vmatprep.mubr.msk.bf16.mxu1 %vm2647_vm2, %v2645_v1  ;;  %v1273_v5 = vrot.slane %v2629_v63, 1  ;;  %1909 = vst.msk [vmem:[%s3016_s11] sm:$0xf] %vm1908_vm13, %v2648_v41  ;;  %1922 = vst.msk [vmem:[%s3016_s11 + $0x30] sm:$0xf] %vm1908_vm13, %v2648_v41 }
  0x7d   : > { %2496 = vmatprep.mubr.msk.bf16.mxu0 %vm2647_vm2, %v2645_v1  ;;  %1924 = vst.msk [vmem:[%s3016_s11 + $0x34] sm:$0x7] %vm1923_vm14, %v2648_v41 }
  0x7e   : > { %v1274_v12 = vsel %vm1263_vm5, %v1271_v62, %v1273_v5 }
  0x83   : > { %2497 = vmatmul.mubr.msk.bf16.gmra.mxu0 %vm361_vm3, %v1268_v58  ;;  %2479 = vmatmul.mubr.msk.bf16.gmra.mxu1 %vm361_vm3, %v2815_v10  ;;  %v1417_v10 = vrot.slane %v2630_v2, 1 }
  0x84   : > { %2500 = vmatprep.mubr.msk.bf16.mxu0 %vm2647_vm2, %v2645_v1  ;;  %2482 = vmatprep.mubr.msk.bf16.mxu1 %vm2647_vm2, %v2645_v1 }
  0x85   : > { %v1419_v17 = vsel %vm1263_vm5, %v1417_v10, %v1418_v11 }
  0x8b   : > { %2501 = vmatmul.mubr.msk.bf16.gmra.mxu0 %vm361_vm3, %v1270_v60  ;;  %2483 = vmatmul.mubr.msk.bf16.gmra.mxu1 %vm361_vm3, %v2819_v14  ;;  %v1542_v14 = vrot.slane %v1540_v7, 2 }
  0x8c   : > { %2504 = vmatprep.mubr.msk.bf16.mxu0 %vm2647_vm2, %v2645_v1  ;;  %2486 = vmatprep.mubr.msk.bf16.mxu1 %vm2647_vm2, %v2645_v1 }
  0x8d   : > { %v1543_v19 = vor.u32 %v1542_v14, %v1539_v13 }
  0x93   : > { %2505 = vmatmul.mubr.msk.bf16.gmra.mxu0 %vm361_vm3, %v1272_v0  ;;  %2487 = vmatmul.mubr.msk.bf16.gmra.mxu1 %vm361_vm3, %v2828_v20  ;;  %v1551_v20 = vor.u32 %v1550_v16, %v1547_v15  ;;  %v1913_v16 = vld [vmem:[%s3016_s11 + $0x4] sm:$0x3] }
  0x94   : > { %2508 = vmatprep.mubr.msk.bf16.mxu0 %vm2647_vm2, %v2645_v1  ;;  %2514 = vmatprep.mubr.msk.bf16.mxu1 %vm2647_vm2, %v2645_v1  ;;  %v1914_v18 = vsel %vm3019_vm9, 0, %v1913_v16 }
  0x95   : > { %v1552_v24 = vsel %vm1535_vm6, %v1543_v19, %v1551_v20  ;;  %v1561_v36 = vsel %vm1535_vm6, %v1551_v20, %v1560_v31  ;;  %v1919_v20 = vld [vmem:[%s3016_s11 + $0x2c] sm:$0xe]  ;;  %1915 = vst [vmem:[%s3016_s11 + $0x4] sm:$0x3] %v1914_v18 }
  0x96   : > { %v1920_v23 = vsel %vm3026_vm12, 0, %v1919_v20 }
  0x97   : > { %1921 = vst [vmem:[%s3016_s11 + $0x2c] sm:$0xe] %v1920_v23 }
  0x9b   : > { %2509 = vmatmul.mubr.msk.bf16.gmra.mxu0 %vm361_vm3, %v1274_v12  ;;  %2515 = vmatmul.mubr.msk.bf16.vlgmr.msra.gmra.mxu1 %vm361_vm3, %v1419_v17 }
  0x9c   : > { %2536 = vmatprep.mubr.msk.bf16.mxu0 %vm2647_vm2, %v2645_v1  ;;  %2518 = vmatprep.mubr.msk.bf16.mxu1 %vm2647_vm2, %v2645_v1 }
  0xa3   : > { %2537 = vmatmul.mubr.msk.bf16.vlgmr.msra.gmra.mxu0 %vm361_vm3, %v1552_v24  ;;  %2519 = vmatmul.mubr.msk.bf16.gmra.mxu1 %vm361_vm3, %v1421_v28 }
  0xa4   : > { %2540 = vmatprep.mubr.msk.bf16.mxu0 %vm2647_vm2, %v2645_v1  ;;  %2522 = vmatprep.mubr.msk.bf16.mxu1 %vm2647_vm2, %v2645_v1 }
  0xab   : > { %2541 = vmatmul.mubr.msk.bf16.gmra.mxu0 %vm361_vm3, %v1561_v36  ;;  %2523 = vmatmul.mubr.msk.bf16.gmra.mxu1 %vm361_vm3, %v1423_v39 }
  0xac   : > { %2544 = vmatprep.mubr.msk.bf16.mxu0 %vm2647_vm2, %v2645_v1  ;;  %2526 = vmatprep.mubr.msk.bf16.mxu1 %vm2647_vm2, %v2645_v1 }
  0xb3   : > { %2545 = vmatmul.mubr.msk.bf16.gmra.mxu0 %vm361_vm3, %v1570_v43  ;;  %2527 = vmatmul.mubr.msk.bf16.gmra.mxu1 %vm361_vm3, %v1425_v47 }
  0xb4   : > { %2548 = vmatprep.mubr.msk.bf16.mxu0 %vm2647_vm2, %v2645_v1  ;;  %2530 = vmatprep.mubr.msk.bf16.mxu1 %vm2647_vm2, %v2645_v1 }
  0xbb   : > { %2549 = vmatmul.mubr.msk.bf16.gmra.mxu0 %vm361_vm3, %v1579_v51  ;;  %2531 = vmatmul.mubr.msk.bf16.gmra.mxu1 %vm361_vm3, %v2849_v32 }
  0xbc   : > { %2552 = vmatprep.mubr.msk.bf16.mxu0 %vm2647_vm2, %v2645_v1 }
  0xc3   : > { %2553 = vmatmul.mubr.msk.bf16.gmra.mxu0 %vm361_vm3, %v1588_v29 }
  0xd3   : > { %v418_v54 = vpop.f32.mrf.mxu0  ;;  %v3004_v55 = vpop.f32.mrf.mxu1 }
  0xd5   : > { %v2362_v56 = vpop.f32.mrf.mxu0  ;;  %v2374_v57 = vpop.f32.mrf.mxu1 }
  0xd7   : > { %v421_v58 = vpop.f32.mrf.mxu0  ;;  %v3006_v4 = vpop.f32.mrf.mxu1 }
  0xd9   : > { %v2363_v59 = vpop.f32.mrf.mxu0  ;;  %v2375_v60 = vpop.f32.mrf.mxu1 }
  0xdb   : > { %v426_v32 = vpop.f32.mrf.mxu0  ;;  %v3008_v61 = vpop.f32.mrf.mxu1 }
  0xdd   : > { %v2366_v1 = vpop.f32.mrf.mxu0  ;;  %v2378_v62 = vpop.f32.mrf.mxu1 }
  0xdf   : > { %v429_v63 = vpop.f32.mrf.mxu0  ;;  %v3010_v0 = vpop.f32.mrf.mxu1 }
  0xe1   : > { %v2367_v2 = vpop.f32.mrf.mxu0  ;;  %v2379_v3 = vpop.f32.mrf.mxu1 }
  0xe3   : > { %v434_v5 = vpop.f32.mrf.mxu0  ;;  %v534_v6 = vpop.f32.mrf.mxu1 }
  0xe4   : > { %v535_v7 = vadd.f32 %v534_v6, %v418_v54 }
  0xe5   : > { %v2370_v8 = vpop.f32.mrf.mxu0  ;;  %v2384_v9 = vpop.f32.mrf.mxu1 }
  0xe7   : > { %v437_v10 = vpop.f32.mrf.mxu0  ;;  %v537_v11 = vpop.f32.mrf.mxu1 }
  0xe8   : > { %v538_v12 = vadd.f32 %v537_v11, %v421_v58 }
  0xe9   : > { %v2371_v13 = vpop.f32.mrf.mxu0  ;;  %v2385_v14 = vpop.f32.mrf.mxu1 }
  0xeb   : > { %v711_v17 = vpop.f32.mrf.mxu0  ;;  %v542_v21 = vpop.f32.mrf.mxu1 }
  0xec   : > { %v750_v22 = vadd.f32 %v711_v17, %v535_v7  ;;  %v543_v24 = vadd.f32 %v542_v21, %v426_v32 }
  0xed   : > { %v2406_v26 = vpop.f32.mrf.mxu0  ;;  %v2388_v27 = vpop.f32.mrf.mxu1 }
  0xef   : > { %v714_v28 = vpop.f32.mrf.mxu0  ;;  %v545_v30 = vpop.f32.mrf.mxu1 }
  0xf0   : > { %v751_v31 = vadd.f32 %v714_v28, %v538_v12  ;;  %v546_v33 = vadd.f32 %v545_v30, %v429_v63 }
  0xf1   : > { %v2407_v34 = vpop.f32.mrf.mxu0  ;;  %v2389_v35 = vpop.f32.mrf.mxu1 }
  0xf3   : > { %v719_v36 = vpop.f32.mrf.mxu0  ;;  %v550_v37 = vpop.f32.mrf.mxu1 }
  0xf4   : > { %v752_v38 = vadd.f32 %v719_v36, %v543_v24  ;;  %v551_v39 = vadd.f32 %v550_v37, %v434_v5 }
  0xf5   : > { %v2410_v40 = vpop.f32.mrf.mxu0  ;;  %v2392_v42 = vpop.f32.mrf.mxu1 }
  0xf7   : > { %v722_v43 = vpop.f32.mrf.mxu0  ;;  %v553_v44 = vpop.f32.mrf.mxu1 }
  0xf8   : > { %v753_v45 = vadd.f32 %v722_v43, %v546_v33  ;;  %v554_v46 = vadd.f32 %v553_v44, %v437_v10 }
  0xf9   : > { %v2411_v47 = vpop.f32.mrf.mxu0  ;;  %v2393_v48 = vpop.f32.mrf.mxu1 }
  0xfb   : > { %v727_v49 = vpop.f32.mrf.mxu0  ;;  %v558_v50 = vpop.f32.mrf.mxu1 }
  0xfc   : > { %v754_v51 = vadd.f32 %v727_v49, %v551_v39  ;;  %v559_v52 = vadd.f32 %v558_v50, %v3004_v55 }
  0xfd   : > { %v2414_v53 = vpop.f32.mrf.mxu0  ;;  %v2396_v25 = vpop.f32.mrf.mxu1 }
  0xff   : > { %v730_v29 = vpop.f32.mrf.mxu0  ;;  %v561_v54 = vpop.f32.mrf.mxu1 }
 0x100   : > { %v755_v56 = vadd.f32 %v730_v29, %v554_v46  ;;  %v562_v57 = vadd.f32 %v561_v54, %v3006_v4 }
 0x101   : > { %v2415_v58 = vpop.f32.mrf.mxu0  ;;  %v2397_v59 = vpop.f32.mrf.mxu1 }
 0x103   : > { %v735_v60 = vpop.f32.mrf.mxu0  ;;  %v566_v32 = vpop.f32.mrf.mxu1 }
 0x104   : > { %v756_v1 = vadd.f32 %v735_v60, %v559_v52  ;;  %v567_v62 = vadd.f32 %v566_v32, %v3008_v61 }
 0x105   : > { %v2418_v63 = vpop.f32.mrf.mxu0  ;;  %v2400_v2 = vpop.f32.mrf.mxu1 }
 0x107   : > { %v738_v3 = vpop.f32.mrf.mxu0  ;;  %v569_v5 = vpop.f32.mrf.mxu1 }
 0x108   : > { %v757_v6 = vadd.f32 %v738_v3, %v562_v57  ;;  %v570_v55 = vadd.f32 %v569_v5, %v3010_v0 }
 0x109   : > { %v2419_v7 = vpop.f32.mrf.mxu0  ;;  %v2401_v8 = vpop.f32.mrf.mxu1 }
 0x10b   : > { %v743_v9 = vpop.f32.mrf.mxu0  ;;  %v849_v11 = vpop.f32.mrf.mxu1 }
 0x10c   : > { %v758_v10 = vadd.f32 %v743_v9, %v567_v62  ;;  %v888_v4 = vadd.f32 %v849_v11, %v750_v22 }
 0x10d   : > { %v2422_v12 = vpop.f32.mrf.mxu0  ;;  %v2428_v13 = vpop.f32.mrf.mxu1 }
 0x10f   : > { %v746_v14 = vpop.f32.mrf.mxu0  ;;  %v852_v17 = vpop.f32.mrf.mxu1 }
 0x110   : > { %v759_v16 = vadd.f32 %v746_v14, %v570_v55  ;;  %v889_v18 = vadd.f32 %v852_v17, %v751_v31  ;;  %v1717_v17 = vlaneseq }
 0x111   : > { %v2423_v61 = vpop.f32.mrf.mxu0  ;;  %v2429_v20 = vpop.f32.mrf.mxu1 }
 0x113   : > { %v987_v21 = vpop.f32.mrf.mxu0  ;;  %v857_v23 = vpop.f32.mrf.mxu1 }
 0x114   : > { %v3044_v24 = vadd.f32 %v987_v21, %v888_v4  ;;  %v890_v26 = vadd.f32 %v857_v23, %v752_v38  ;;  %v3072_v21 = vshrl.u32 %v1717_v17, 7 }
 0x115   : > { %v2450_v0 = vpop.f32.mrf.mxu0  ;;  %v2432_v27 = vpop.f32.mrf.mxu1 }
 0x116   : > { %v1719_v0 = vadd.s32 8, %v3072_v21 }
 0x117   : > { %v990_v28 = vpop.f32.mrf.mxu0  ;;  %v860_v30 = vpop.f32.mrf.mxu1 }
 0x118   : > { %v3046_v33 = vadd.f32 %v990_v28, %v889_v18  ;;  %v891_v22 = vadd.f32 %v860_v30, %v753_v45 }
 0x119   : > { %v2451_v34 = vpop.f32.mrf.mxu0  ;;  %v2433_v35 = vpop.f32.mrf.mxu1 }
 0x11b   : > { %v995_v36 = vpop.f32.mrf.mxu0  ;;  %v865_v37 = vpop.f32.mrf.mxu1 }
 0x11c   : > { %v3048_v39 = vadd.f32 %v995_v36, %v890_v26  ;;  %v892_v31 = vadd.f32 %v865_v37, %v754_v51  ;;  %v3085_v36 = vmul.u32.u64.low 3435973837, %v1719_v0  ;;  %v3086_v37 = vmul.u32.u64.high 3435973837, %v1719_v0, %v3085_v36 }
 0x11d   : > { %v2454_v40 = vpop.f32.mrf.mxu0  ;;  %v2436_v41 = vpop.f32.mrf.mxu1 }
 0x11f   : > { %v998_v42 = vpop.f32.mrf.mxu0  ;;  %v868_v43 = vpop.f32.mrf.mxu1 }
 0x120   : > { %v3050_v44 = vadd.f32 %v998_v42, %v891_v22  ;;  %v893_v38 = vadd.f32 %v868_v43, %v755_v56  ;;  %v3080_v22 = vmul.u32.u64.low 3435973837, %v3072_v21  ;;  %v3081_v34 = vmul.u32.u64.high 3435973837, %v3072_v21, %v3080_v22 }
 0x121   : > { %v2455_v46 = vpop.f32.mrf.mxu0  ;;  %v2437_v47 = vpop.f32.mrf.mxu1  ;;  %v1720_v42 = vadd.s32 16, %v3072_v21 }
 0x122   : > { %v1721_v46 = vadd.s32 24, %v3072_v21 }
 0x123   : > { %v1003_v48 = vpop.f32.mrf.mxu0  ;;  %v873_v49 = vpop.f32.mrf.mxu1 }
 0x124   : > { %v3052_v50 = vadd.f32 %v1003_v48, %v892_v31  ;;  %v894_v45 = vadd.f32 %v873_v49, %v756_v1  ;;  %v3097_v48 = vadd.s32 32, %v3072_v21 }
 0x125   : > { %v2458_v52 = vpop.f32.mrf.mxu0  ;;  %v2440_v53 = vpop.f32.mrf.mxu1 }
 0x126   : > { %v3100_v52 = vmul.u32.u64.low 3435973837, %v1720_v42  ;;  %v3101_v53 = vmul.u32.u64.high 3435973837, %v1720_v42, %v3100_v52 }
 0x127   : > { %v1006_v25 = vpop.f32.mrf.mxu0  ;;  %v876_v29 = vpop.f32.mrf.mxu1 }
 0x128   : > { %v3054_v54 = vadd.f32 %v1006_v25, %v893_v38  ;;  %v895_v51 = vadd.f32 %v876_v29, %v757_v6  ;;  %v3104_v25 = vadd.s32 40, %v3072_v21  ;;  %v1756_v17 = vshrl.u32 %v3101_v53, 3 }
 0x129   : > { %v2459_v57 = vpop.f32.mrf.mxu0  ;;  %v2441_v58 = vpop.f32.mrf.mxu1 }
 0x12b   : > { %v1011_v59 = vpop.f32.mrf.mxu0  ;;  %v881_v60 = vpop.f32.mrf.mxu1 }
 0x12c   : > { %v3056_v32 = vadd.f32 %v1011_v59, %v894_v45  ;;  %v896_v56 = vadd.f32 %v881_v60, %v758_v10  ;;  %v1734_v45 = vshrl.u32 %v3081_v34, 3 }
 0x12d   : > { %v2462_v62 = vpop.f32.mrf.mxu0  ;;  %v2444_v63 = vpop.f32.mrf.mxu1  ;;  %v3111_v58 = vmul.u32.u64.low 3435973837, %v1721_v46  ;;  %v3112_v59 = vmul.u32.u64.high 3435973837, %v1721_v46, %v3111_v58 }
 0x12e   : > { %v3221_v58 = vld [vmem:[%s3496_s5] ss:$0 sm:$0xff] }
 0x12f   : > { %v1014_v2 = vpop.f32.mrf.mxu0  ;;  %v884_v3 = vpop.f32.mrf.mxu1  ;;  %v1767_v34 = vshrl.u32 %v3112_v59, 3 }
 0x130   : > { %v3058_v5 = vadd.f32 %v1014_v2, %v895_v51  ;;  %v897_v1 = vadd.f32 %v884_v3, %v759_v16  ;;  %v1745_v51 = vshrl.u32 %v3086_v37, 3  ;;  %v1735_v2 = vmul.u32 10, %v1734_v45 }
 0x131   : > { %v2463_v55 = vpop.f32.mrf.mxu0  ;;  %v2445_v7 = vpop.f32.mrf.mxu1  ;;  %v1768_v53 = vmul.u32 10, %v1767_v34 }
 0x132   : > { %v1746_v7 = vmul.u32 10, %v1745_v51 }
 0x133   : > { %v1019_v8 = vpop.f32.mrf.mxu0  ;;  %v3062_v6 = vpop.f32.mrf.mxu1 }
 0x134   : > { %v3060_v9 = vadd.f32 %v1019_v8, %v896_v56  ;;  %v3115_v56 = vmul.u32.u64.low 3435973837, %v3097_v48  ;;  %v3116_v62 = vmul.u32.u64.high 3435973837, %v3097_v48, %v3115_v56  ;;  %v3125_v8 = vadd.s32 48, %v3072_v21 }
 0x135   : > { %v2466_v11 = vpop.f32.mrf.mxu0  ;;  %v2472_v4 = vpop.f32.mrf.mxu1 }
 0x136   : > { %v1778_v37 = vshrl.u32 %v3116_v62, 3 }
 0x137   : > { %v1022_v12 = vpop.f32.mrf.mxu0  ;;  %v3066_v10 = vpop.f32.mrf.mxu1 }
 0x138   : > { %v3064_v13 = vadd.f32 %v1022_v12, %v897_v1  ;;  %v3119_v3 = vmul.u32.u64.low 3435973837, %v3104_v25  ;;  %v3120_v1 = vmul.u32.u64.high 3435973837, %v3104_v25, %v3119_v3  ;;  %v1779_v56 = vmul.u32 10, %v1778_v37 }
 0x139   : > { %v2467_v14 = vpop.f32.mrf.mxu0  ;;  %v2473_v18 = vpop.f32.mrf.mxu1 }
 0x13a   : > { %v3130_v14 = vsub.s32 %v3072_v21, %v1735_v2 }
 0x13b   : > { %v3068_v61 = vpop.f32.mrf.mxu0  ;;  %v3070_v16 = vpop.f32.mrf.mxu1 }
 0x13c   : > { %vm1838_vm15 = vcmp.ne.s32.totalorder %v3130_v14, 0  ;;  %vm1848_vm0 = vcmp.lt.s32.totalorder %v3130_v14, 0  ;;  %v1868_v59 = vadd.s32 10, %v3130_v14 }
 0x13d   : > { %v2494_v20 = vpop.f32.mrf.mxu0  ;;  %v2476_v23 = vpop.f32.mrf.mxu1  ;;  %vm3161_vm3 = vmand %vm1848_vm0, %vm1838_vm15 }
 0x13e   : > { %v3135_v20 = vsub.s32 %v1719_v0, %v1746_v7  ;;  %v1757_v0 = vmul.u32 10, %v1756_v17  ;;  %v3179_v17 = vadd.s32 64, %v3072_v21  ;;  %v1878_v34 = vsel %vm3161_vm3, %v1868_v59, %v3130_v14 }
 0x13f   : > { %v3074_v26 = vpop.f32.mrf.mxu0  ;;  %v3077_v27 = vpop.f32.mrf.mxu1  ;;  %vm3247_vm3 = vcmp.lt.s32.totalorder %v1878_v34, 8 }
 0x140   : > { %vm1839_vm1 = vcmp.ne.s32.totalorder %v3135_v20, 0  ;;  %vm1849_vm2 = vcmp.lt.s32.totalorder %v3135_v20, 0  ;;  %v3171_v2 = vsub.s32 %v1720_v42, %v1757_v0 }
 0x141   : > { %v2495_v28 = vpop.f32.mrf.mxu0  ;;  %v2477_v30 = vpop.f32.mrf.mxu1  ;;  %vm3167_vm4 = vmand %vm1849_vm2, %vm1839_vm1 }
 0x142   : > { %v3138_v23 = vmul.u32.u64.low 3435973837, %v3125_v8  ;;  %v3139_v28 = vmul.u32.u64.high 3435973837, %v3125_v8, %v3138_v23  ;;  %v3142_v30 = vadd.s32 56, %v3072_v21  ;;  %vm1840_vm5 = vcmp.ne.s32.totalorder %v3171_v2, 0 }
 0x143   : > { %v3083_v35 = vpop.f32.mrf.mxu0  ;;  %v3088_v31 = vpop.f32.mrf.mxu1  ;;  %vm1850_vm6 = vcmp.lt.s32.totalorder %v3171_v2, 0  ;;  %v1870_v14 = vadd.s32 10, %v3171_v2 }
 0x144   : > { %v1800_v7 = vshrl.u32 %v3139_v28, 3  ;;  %v1212_v28 = vadd.f32 %v3062_v6, %v3044_v24  ;;  %vm3227_vm1 = vmand %vm1850_vm6, %vm1840_vm5 }
 0x145   : > { %v2498_v40 = vpop.f32.mrf.mxu0  ;;  %v2480_v41 = vpop.f32.mrf.mxu1 }
 0x146   : > { %v1789_v41 = vshrl.u32 %v3120_v1, 3  ;;  %v1801_v0 = vmul.u32 10, %v1800_v7  ;;  %v1366_v24 = vadd.f32 %v3068_v61, %v1212_v28 }
 0x147   : > { %v3091_v43 = vpop.f32.mrf.mxu0  ;;  %v3093_v38 = vpop.f32.mrf.mxu1 }
 0x148   : > { %v1790_v3 = vmul.u32 10, %v1789_v41 }
 0x149   : > { %v2499_v47 = vpop.f32.mrf.mxu0  ;;  %v2481_v49 = vpop.f32.mrf.mxu1 }
 0x14a   : > { %v3156_v49 = vmul.u32.u64.low 3435973837, %v3142_v30  ;;  %v3157_v45 = vmul.u32.u64.high 3435973837, %v3142_v30, %v3156_v49  ;;  %v3195_v37 = vsub.s32 %v3104_v25, %v1790_v3 }
 0x14b   : > { %v3106_v29 = vpop.f32.mrf.mxu0  ;;  %v3109_v57 = vpop.f32.mrf.mxu1  ;;  %v3207_v41 = vmul.u32.u64.low 3435973837, %v3179_v17  ;;  %v3208_v49 = vmul.u32.u64.high 3435973837, %v3179_v17, %v3207_v41 }
 0x14c   : > { %vm1843_vm15 = vcmp.ne.s32.totalorder %v3195_v37, 0  ;;  %vm1853_vm0 = vcmp.lt.s32.totalorder %v3195_v37, 0  ;;  %v3265_v34 = vadd.s32 10, %v3195_v37 }
 0x14d   : > { %v2502_v60 = vpop.f32.mrf.mxu0  ;;  %v2484_v63 = vpop.f32.mrf.mxu1  ;;  %vm3277_vm6 = vmand %vm1853_vm0, %vm1843_vm15 }
 0x14e   : > { %v1869_v60 = vadd.s32 10, %v3135_v20 }
 0x14f   : > { %v3122_v55 = vpop.f32.mrf.mxu0  ;;  %v3127_v11 = vpop.f32.mrf.mxu1 }
 0x150   : > { %v1879_v42 = vsel %vm3167_vm4, %v1869_v60, %v3135_v20  ;;  %v1811_v20 = vshrl.u32 %v3157_v45, 3 }
 0x151   : > { %v2503_v4 = vpop.f32.mrf.mxu0  ;;  %v2485_v12 = vpop.f32.mrf.mxu1  ;;  %vm3251_vm4 = vcmp.lt.s32.totalorder %v1879_v42, 8 }
 0x152   : > { %v3176_v12 = vsub.s32 %v1721_v46, %v1768_v53 }
 0x153   : > { %v3133_v18 = vpop.f32.mrf.mxu0  ;;  %v3144_v22 = vpop.f32.mrf.mxu1 }
 0x154   : > { %vm1841_vm7 = vcmp.ne.s32.totalorder %v3176_v12, 0  ;;  %vm1851_vm10 = vcmp.lt.s32.totalorder %v3176_v12, 0  ;;  %v1871_v53 = vadd.s32 10, %v3176_v12 }
 0x155   : > { %v2506_v36 = vpop.f32.mrf.mxu0  ;;  %v2488_v40 = vpop.f32.mrf.mxu1  ;;  %vm3243_vm2 = vmand %vm1851_vm10, %vm1841_vm7 }
 0x156   : > { %v3188_v36 = vsub.s32 %v3097_v48, %v1779_v56  ;;  %v3202_v48 = vadd.s32 72, %v3072_v21  ;;  %v1213_v21 = vadd.f32 %v3066_v10, %v3046_v33  ;;  %v3232_v33 = vsub.s32 %v3125_v8, %v1801_v0 }
 0x157   : > { %v3151_v47 = vpop.f32.mrf.mxu0  ;;  %v3159_v52 = vpop.f32.mrf.mxu1  ;;  %v1812_v10 = vmul.u32 10, %v1811_v20 }
 0x158   : > { %vm1842_vm11 = vcmp.ne.s32.totalorder %v3188_v36, 0  ;;  %vm1852_vm14 = vcmp.lt.s32.totalorder %v3188_v36, 0  ;;  %v3235_v60 = vmul.u32.u64.low 3435973837, %v3202_v48  ;;  %v3236_v56 = vmul.u32.u64.high 3435973837, %v3202_v48, %v3235_v60 }
 0x159   : > { %v2507_v51 = vpop.f32.mrf.mxu0  ;;  %v2489_v62 = vpop.f32.mrf.mxu1  ;;  %vm3259_vm5 = vmand %vm1852_vm14, %vm1842_vm11  ;;  %v1872_v28 = vadd.s32 10, %v3188_v36  ;;  %vm1844_vm7 = vcmp.ne.s32.totalorder %v3232_v33, 0  ;;  %vm1854_vm10 = vcmp.lt.s32.totalorder %v3232_v33, 0  ;;  %vm1955_vm11 = vsmask.f32 5392 }
 0x15a   : > { %v1367_v62 = vadd.f32 %v3074_v26, %v1213_v21  ;;  %vm3314_vm15 = vmand %vm1854_vm10, %vm1844_vm7 }
 0x15b   : > { %v3173_v1 = vpop.f32.mrf.mxu0  ;;  %v1480_v4 = vpop.f32.mrf.mxu1 }
 0x15c   : > { %v1519_v61 = vadd.f32 %v1480_v4, %v1366_v24  ;;  %v1880_v24 = vsel %vm3227_vm1, %v1870_v14, %v3171_v2 }
 0x15d   : > { %v2510_v23 = vpop.f32.mrf.mxu0  ;;  %v2516_v46 = vpop.f32.mrf.mxu1  ;;  %vm3291_vm14 = vcmp.lt.s32.totalorder %v1880_v24, 8 }
 0x15e   : > { %v1214_v46 = vadd.f32 %v3070_v16, %v3048_v39  ;;  %v1881_v39 = vsel %vm3243_vm2, %v1871_v53, %v3176_v12  ;;  %v3287_v16 = vsub.s32 %v3142_v30, %v1812_v10  ;;  %v1882_v12 = vsel %vm3259_vm5, %v1872_v28, %v3188_v36  ;;  %v2067_v23 = vld [vmem:[%s3016_s11 + $0x4] sm:$0xe] }
 0x15f   : > { %v3197_v40 = vpop.f32.mrf.mxu0  ;;  %v1483_v6 = vpop.f32.mrf.mxu1  ;;  %v3303_v30 = vadd.s32 10, %v3232_v33  ;;  %vm3318_vm0 = vcmp.lt.s32.totalorder %v1881_v39, 8 }
 0x160   : > { %v1520_v42 = vadd.f32 %v1483_v6, %v1367_v62  ;;  %v1368_v2 = vadd.f32 %v3083_v35, %v1214_v46  ;;  %v1883_v35 = vsel %vm3277_vm6, %v3265_v34, %v3195_v37  ;;  %vm1845_vm1 = vcmp.ne.s32.totalorder %v3287_v16, 0  ;;  %vm3373_vm6 = vmor %vm1911_vm8, %vm1955_vm11 }
 0x161   : > { %v2511_v25 = vpop.f32.mrf.mxu0  ;;  %v2517_v45 = vpop.f32.mrf.mxu1  ;;  %vm1855_vm2 = vcmp.lt.s32.totalorder %v3287_v16, 0  ;;  %v1884_v46 = vsel %vm3314_vm15, %v3303_v30, %v3232_v33 }
 0x162   : > { %vm3346_vm5 = vmand %vm1855_vm2, %vm1845_vm1  ;;  %vm3391_vm7 = vcmp.lt.s32.totalorder %v1884_v46, 8 }
 0x163   : > { %v1641_v51 = vpop.f32.mrf.mxu0  ;;  %v1488_v63 = vpop.f32.mrf.mxu1 }
 0x164   : > { %v1680_v3 = vadd.f32 %v1641_v51, %v1519_v61  ;;  %v1822_v61 = vshrl.u32 %v3208_v49, 3  ;;  %v1215_v49 = vadd.f32 %v3077_v27, %v3050_v44  ;;  %v1521_v53 = vadd.f32 %v1488_v63, %v1368_v2 }
 0x165   : > { %v2538_v4 = vpop.f32.mrf.mxu0  ;;  %v2520_v20 = vpop.f32.mrf.mxu1  ;;  %v1833_v44 = vshrl.u32 %v3236_v56, 3  ;;  %v1216_v56 = vadd.f32 %v3088_v31, %v3052_v50 }
 0x166   : > { %v1697_v0 = vadd.f32 %v3221_v58, %v1680_v3  ;;  %v1369_v27 = vadd.f32 %v3091_v43, %v1215_v49  ;;  %v1823_v4 = vmul.u32 10, %v1822_v61 }
 0x167   : > { %v1644_v25 = vpop.f32.mrf.mxu0  ;;  %v1491_v6 = vpop.f32.mrf.mxu1  ;;  %v1834_v31 = vmul.u32 10, %v1833_v44  ;;  %v1370_v33 = vadd.f32 %v3106_v29, %v1216_v56 }
 0x168   : > { %v1707_v14 = vmax.f32 %v1697_v0, 0.0  ;;  %v1681_v21 = vadd.f32 %v1644_v25, %v1520_v42  ;;  %v3331_v42 = vadd.s32 10, %v3287_v16  ;;  %v1522_v43 = vadd.f32 %v1491_v6, %v1369_v27 }
 0x169   : > { %v2539_v45 = vpop.f32.mrf.mxu0  ;;  %v2521_v60 = vpop.f32.mrf.mxu1  ;;  %v3379_v19 = vsub.s32 %v3202_v48, %v1834_v31 }
 0x16a   : > { %v1898_v59 = vsel %vm3247_vm3, %v1707_v14, 0.0  ;;  %v1698_v10 = vadd.f32 %v3221_v58, %v1681_v21  ;;  %vm3338_vm3 = vcmp.lt.s32.totalorder %v1882_v12, 8  ;;  %v3353_v45 = vsub.s32 %v3179_v17, %v1823_v4 }
 0x16b   : > { %v2294_v37 = vpack.c.bf16 %v1898_v59, %v1898_v59  ;;  %v1649_v62 = vpop.f32.mrf.mxu0  ;;  %v1496_v7 = vpop.f32.mrf.mxu1  ;;  %v1217_v12 = vadd.f32 %v3093_v38, %v3054_v54  ;;  %v1885_v17 = vsel %vm3346_vm5, %v3331_v42, %v3287_v16  ;;  %vm1847_vm10 = vcmp.ne.s32.totalorder %v3379_v19, 0 }
 0x16c   : > { %v1708_v63 = vmax.f32 %v1698_v10, 0.0  ;;  %v1682_v8 = vadd.f32 %v1649_v62, %v1521_v53  ;;  %v1523_v10 = vadd.f32 %v1496_v7, %v1370_v33  ;;  %vm1846_vm8 = vcmp.ne.s32.totalorder %v3353_v45, 0 }
 0x16d   : > { %v1958_v26 = vshrl.u32 %v2294_v37, 16  ;;  %v1961_v28 = vshll.u32 %v2294_v37, 16  ;;  %v2542_v34 = vpop.f32.mrf.mxu0  ;;  %v2524_v24 = vpop.f32.mrf.mxu1  ;;  %v1371_v37 = vadd.f32 %v3122_v55, %v1217_v12  ;;  %vm3408_vm11 = vcmp.lt.s32.totalorder %v1885_v17, 8 }
 0x16e   : > { %v1899_v0 = vsel %vm3251_vm4, %v1708_v63, 0.0  ;;  %v1699_v20 = vadd.f32 %v3221_v58, %v1682_v8  ;;  %vm3367_vm4 = vcmp.lt.s32.totalorder %v1883_v35, 8  ;;  %v1218_v35 = vadd.f32 %v3109_v57, %v3056_v32 }
 0x16f   : > { %v1960_v41 = vrot.slane %v1958_v26, 6  ;;  %v1963_v25 = vrot.slane %v1961_v28, 7  ;;  %v2295_v39 = vpack.c.bf16 %v1899_v0, %v1899_v0  ;;  %v1652_v2 = vpop.f32.mrf.mxu0  ;;  %v1499_v21 = vpop.f32.mrf.mxu1 }
 0x170   : > { %v1709_v6 = vmax.f32 %v1699_v20, 0.0  ;;  %v1683_v61 = vadd.f32 %v1652_v2, %v1522_v43  ;;  %v1524_v26 = vadd.f32 %v1499_v21, %v1371_v37  ;;  %v1372_v0 = vadd.f32 %v3133_v18, %v1218_v35 }
 0x171   : > { %v1964_v30 = vor.u32 %v1963_v25, %v1960_v41  ;;  %v1967_v49 = vshrl.u32 %v2295_v39, 16  ;;  %v1970_v53 = vshll.u32 %v2295_v39, 16  ;;  %v2543_v59 = vpop.f32.mrf.mxu0  ;;  %v2525_v36 = vpop.f32.mrf.mxu1  ;;  %v3396_v41 = vadd.s32 10, %v3353_v45 }
 0x172   : > { %v1900_v60 = vsel %vm3291_vm14, %v1709_v6, 0.0  ;;  %v1700_v29 = vadd.f32 %v3221_v58, %v1683_v61  ;;  %v1219_v18 = vadd.f32 %v3127_v11, %v3058_v5  ;;  %vm1857_vm14 = vcmp.lt.s32.totalorder %v3379_v19, 0 }
 0x173   : > { %v2068_v54 = vsel %vm3026_vm12, %v1964_v30, %v2067_v23  ;;  %v1969_v38 = vrot.slane %v1967_v49, 6  ;;  %v1972_v62 = vrot.slane %v1970_v53, 7  ;;  %v1657_v44 = vpop.f32.mrf.mxu0  ;;  %v2296_v16 = vpack.c.bf16 %v1900_v60, %v1900_v60  ;;  %v1504_v55 = vpop.f32.mrf.mxu1 }
 0x174   : > { %2069 = vst [vmem:[%s3016_s11 + $0x4] sm:$0xe] %v2068_v54  ;;  %v1710_v63 = vmax.f32 %v1700_v29, 0.0  ;;  %v1684_v7 = vadd.f32 %v1657_v44, %v1523_v10  ;;  %v1965_v8 = vrot.slane %v1964_v30, 4  ;;  %vm1856_vm12 = vcmp.lt.s32.totalorder %v3353_v45, 0 }
 0x175   : > { %v1973_v4 = vor.u32 %v1972_v62, %v1969_v38  ;;  %v2546_v28 = vpop.f32.mrf.mxu0  ;;  %v1977_v34 = vshrl.u32 %v2296_v16, 16  ;;  %v1980_v42 = vshll.u32 %v2296_v16, 16  ;;  %v2528_v43 = vpop.f32.mrf.mxu1  ;;  %v1525_v23 = vadd.f32 %v1504_v55, %v1372_v0  ;;  %vm3430_vm15 = vmand %vm1856_vm12, %vm1846_vm8 }
 0x176   : > { %v1901_v56 = vsel %vm3318_vm0, %v1710_v63, 0.0  ;;  %v1701_v48 = vadd.f32 %v3221_v58, %v1684_v7  ;;  %v1220_v49 = vadd.f32 %v3144_v22, %v3060_v9  ;;  %v1373_v14 = vadd.f32 %v3151_v47, %v1219_v18  ;;  %vm3453_vm0 = vmand %vm1857_vm14, %vm1847_vm10 }
 0x177   : > { %v1974_v32 = vsel %vm3373_vm6, %v1965_v8, %v1973_v4  ;;  %v2297_v57 = vpack.c.bf16 %v1901_v56, %v1901_v56  ;;  %v1660_v20 = vpop.f32.mrf.mxu0  ;;  %v1979_v3 = vrot.slane %v1977_v34, 6  ;;  %v1982_v25 = vrot.slane %v1980_v42, 7  ;;  %v1507_v2 = vpop.f32.mrf.mxu1 }
 0x178   : > { %2070 = vst.msk [vmem:[%s3016_s11 + $0x8] sm:$0xf] %vm1908_vm13, %v1974_v32  ;;  %v1711_v39 = vmax.f32 %v1701_v48, 0.0  ;;  %v1685_v50 = vadd.f32 %v1660_v20, %v1524_v26  ;;  %v1975_v6 = vrot.slane %v1973_v4, 4  ;;  %v1526_v17 = vadd.f32 %v1507_v2, %v1373_v14 }
 0x179   : > { %v1987_v31 = vshrl.u32 %v2297_v57, 16  ;;  %v1990_v33 = vshll.u32 %v2297_v57, 16  ;;  %v2547_v46 = vpop.f32.mrf.mxu0  ;;  %v1983_v21 = vor.u32 %v1982_v25, %v1979_v3  ;;  %v2529_v30 = vpop.f32.mrf.mxu1  ;;  %v1374_v63 = vadd.f32 %v3173_v1, %v1220_v49 }
 0x17a   : > { %v1902_v61 = vsel %vm3338_vm3, %v1711_v39, 0.0  ;;  %v1702_v12 = vadd.f32 %v3221_v58, %v1685_v50  ;;  %v1877_v1 = vadd.s32 10, %v3379_v19  ;;  %v1221_v42 = vadd.f32 %v3159_v52, %v3064_v13 }
 0x17b   : > { %v1989_v53 = vrot.slane %v1987_v31, 6  ;;  %v1992_v5 = vrot.slane %v1990_v33, 7  ;;  %v2298_v11 = vpack.c.bf16 %v1902_v61, %v1902_v61  ;;  %v1665_v59 = vpop.f32.mrf.mxu0  ;;  %v1984_v60 = vsel %vm3373_vm6, %v1975_v6, %v1983_v21  ;;  %v1512_v36 = vpop.f32.mrf.mxu1 }
 0x17c   : > { %v1712_v29 = vmax.f32 %v1702_v12, 0.0  ;;  %v1686_v37 = vadd.f32 %v1665_v59, %v1525_v23  ;;  %v1985_v54 = vrot.slane %v1983_v21, 4  ;;  %2071 = vst.msk [vmem:[%s3016_s11 + $0xc] sm:$0xf] %vm1908_vm13, %v1984_v60  ;;  %v1527_v43 = vadd.f32 %v1512_v36, %v1374_v63 }
 0x17d   : > { %v1993_v9 = vor.u32 %v1992_v5, %v1989_v53  ;;  %v1997_v22 = vshrl.u32 %v2298_v11, 16  ;;  %v2000_v38 = vshll.u32 %v2298_v11, 16  ;;  %v2550_v62 = vpop.f32.mrf.mxu0  ;;  %v2532_v16 = vpop.f32.mrf.mxu1  ;;  %v1375_v39 = vadd.f32 %v3197_v40, %v1221_v42 }
 0x17e   : > { %v1903_v44 = vsel %vm3367_vm4, %v1712_v29, 0.0  ;;  %v1703_v47 = vadd.f32 %v3221_v58, %v1686_v37  ;;  %v1886_v13 = vsel %vm3430_vm15, %v3396_v41, %v3353_v45  ;;  %v1887_v60 = vsel %vm3453_vm0, %v1877_v1, %v3379_v19 }
 0x17f   : > { %v1994_v55 = vsel %vm3373_vm6, %v1985_v54, %v1993_v9  ;;  %v1999_v7 = vrot.slane %v1997_v22, 6  ;;  %v2002_v35 = vrot.slane %v2000_v38, 7  ;;  %v1668_v8 = vpop.f32.mrf.mxu0  ;;  %v2299_v4 = vpack.c.bf16 %v1903_v44, %v1903_v44  ;;  %v1515_v28 = vpop.f32.mrf.mxu1 }
 0x180   : > { %2072 = vst.msk [vmem:[%s3016_s11 + $0x10] sm:$0xf] %vm1908_vm13, %v1994_v55  ;;  %v1713_v26 = vmax.f32 %v1703_v47, 0.0  ;;  %v1687_v27 = vadd.f32 %v1668_v8, %v1526_v17  ;;  %v1995_v56 = vrot.slane %v1993_v9, 4  ;;  %v1528_v6 = vadd.f32 %v1515_v28, %v1375_v39 }
 0x181   : > { %v2003_v48 = vor.u32 %v2002_v35, %v1999_v7  ;;  %v2551_v0 = vpop.f32.mrf.mxu0  ;;  %v2007_v32 = vshrl.u32 %v2299_v4, 16  ;;  %v2010_v57 = vshll.u32 %v2299_v4, 16  ;;  %v2533_v25 = vpop.f32.mrf.mxu1  ;;  %vm1896_vm1 = vcmp.lt.s32.totalorder %v1886_v13, 8 }
 0x182   : > { %v1904_v20 = vsel %vm3391_vm7, %v1713_v26, 0.0  ;;  %v1704_v3 = vadd.f32 %v3221_v58, %v1687_v27  ;;  %vm1897_vm2 = vcmp.lt.s32.totalorder %v1887_v60, 8  ;;  %v2079_v0 = vld [vmem:[%s3016_s11 + $0x2c] sm:$0x3] }
 0x183   : > { %v2004_v2 = vsel %vm3373_vm6, %v1995_v56, %v2003_v48  ;;  %v2300_v50 = vpack.c.bf16 %v1904_v20, %v1904_v20  ;;  %v1673_v18 = vpop.f32.mrf.mxu0  ;;  %v2009_v52 = vrot.slane %v2007_v32, 6  ;;  %v2012_v24 = vrot.slane %v2010_v57, 7 }
 0x184   : > { %2073 = vst.msk [vmem:[%s3016_s11 + $0x14] sm:$0xf] %vm1908_vm13, %v2004_v2  ;;  %v1714_v31 = vmax.f32 %v1704_v3, 0.0  ;;  %v1688_v33 = vadd.f32 %v1673_v18, %v1527_v43  ;;  %v2005_v45 = vrot.slane %v2003_v48, 4 }
 0x185   : > { %v2017_v23 = vshrl.u32 %v2300_v50, 16  ;;  %v2020_v46 = vshll.u32 %v2300_v50, 16  ;;  %v2554_v40 = vpop.f32.mrf.mxu0  ;;  %v2013_v41 = vor.u32 %v2012_v24, %v2009_v52 }
 0x186   : > { %v1905_v61 = vsel %vm3408_vm11, %v1714_v31, 0.0  ;;  %v1705_v12 = vadd.f32 %v3221_v58, %v1688_v33 }
 0x187   : > { %v2019_v30 = vrot.slane %v2017_v23, 6  ;;  %v2022_v49 = vrot.slane %v2020_v46, 7  ;;  %v2301_v53 = vpack.c.bf16 %v1905_v61, %v1905_v61  ;;  %v1676_v5 = vpop.f32.mrf.mxu0  ;;  %v2014_v11 = vsel %vm3373_vm6, %v2005_v45, %v2013_v41 }
 0x188   : > { %v1715_v59 = vmax.f32 %v1705_v12, 0.0  ;;  %v1689_v14 = vadd.f32 %v1676_v5, %v1528_v6  ;;  %v2015_v29 = vrot.slane %v2013_v41, 4  ;;  %2074 = vst.msk [vmem:[%s3016_s11 + $0x18] sm:$0xf] %vm1908_vm13, %v2014_v11 }
 0x189   : > { %v2023_v10 = vor.u32 %v2022_v49, %v2019_v30  ;;  %v2027_v36 = vshrl.u32 %v2301_v53, 16  ;;  %v2030_v37 = vshll.u32 %v2301_v53, 16  ;;  %v2555_v54 = vpop.f32.mrf.mxu0 }
 0x18a   : > { %v1906_v9 = vsel %vm1896_vm1, %v1715_v59, 0.0  ;;  %v1706_v22 = vadd.f32 %v3221_v58, %v1689_v14 }
 0x18b   : > { %v2024_v38 = vsel %vm3373_vm6, %v2015_v29, %v2023_v10  ;;  %v2029_v62 = vrot.slane %v2027_v36, 6  ;;  %v2032_v17 = vrot.slane %v2030_v37, 7  ;;  %v2302_v19 = vpack.c.bf16 %v1906_v9, %v1906_v9 }
 0x18c   : > { %2075 = vst.msk [vmem:[%s3016_s11 + $0x1c] sm:$0xf] %vm1908_vm13, %v2024_v38  ;;  %v1716_v44 = vmax.f32 %v1706_v22, 0.0  ;;  %v2025_v47 = vrot.slane %v2023_v10, 4 }
 0x18d   : > { %v2033_v16 = vor.u32 %v2032_v17, %v2029_v62  ;;  %v2037_v63 = vshrl.u32 %v2302_v19, 16  ;;  %v2040_v55 = vshll.u32 %v2302_v19, 16 }
 0x18e   : > { %v1907_v7 = vsel %vm1897_vm2, %v1716_v44, 0.0 }
 0x18f   : > { %v2034_v58 = vsel %vm3373_vm6, %v2025_v47, %v2033_v16  ;;  %v2303_v35 = vpack.c.bf16 %v1907_v7, %v1907_v7  ;;  %v2039_v8 = vrot.slane %v2037_v63, 6  ;;  %v2042_v4 = vrot.slane %v2040_v55, 7 }
 0x190   : > { %2076 = vst.msk [vmem:[%s3016_s11 + $0x20] sm:$0xf] %vm1908_vm13, %v2034_v58  ;;  %v2035_v27 = vrot.slane %v2033_v16, 4 }
 0x191   : > { %v2047_v26 = vshrl.u32 %v2303_v35, 16  ;;  %v2050_v28 = vshll.u32 %v2303_v35, 16  ;;  %v2043_v34 = vor.u32 %v2042_v4, %v2039_v8 }
 0x193   : > { %v2049_v1 = vrot.slane %v2047_v26, 6  ;;  %v2052_v42 = vrot.slane %v2050_v28, 7  ;;  %v2044_v56 = vsel %vm3373_vm6, %v2035_v27, %v2043_v34  ;;  %v2045_v48 = vrot.slane %v2043_v34, 4 }
 0x194   : > { %2077 = vst.msk [vmem:[%s3016_s11 + $0x24] sm:$0xf] %vm1908_vm13, %v2044_v56 }
 0x195   : > { %v2053_v43 = vor.u32 %v2052_v42, %v2049_v1 }
 0x197   : > { %v2054_v32 = vsel %vm3373_vm6, %v2045_v48, %v2053_v43  ;;  %v2055_v57 = vrot.slane %v2053_v43, 4 }
 0x198   : > { %2078 = vst.msk [vmem:[%s3016_s11 + $0x28] sm:$0xf] %vm1908_vm13, %v2054_v32 }
 0x199   : > { %v2080_v20 = vsel %vm3019_vm9, %v2055_v57, %v2079_v0 }
 0x19a   : > { %2081 = vst [vmem:[%s3016_s11 + $0x2c] sm:$0x3] %v2080_v20 }
 0x19b PF: > { %s16_s21 = sadd.s32 1, %s2643_s21  }
 0x19c   : > { %p13_p4 = scmp.ge.s32.totalorder %s16_s21, 4  }
 0x19e   :  { %15 = sbr.rel (!%p13_p4) target bundleno = 1 (0x1), region = 91 }

// kernel: fwd.11
= control target key start
LH: loop header
LB: loop body
LE: loop exit
PB: predicated region body
PF: predicated region fallthrough
CT: control target
= control target key end

     0   :  { %s859_s27 = smov 0   ;;  %s961_s0 = inlined_call_operand.vmem [shape: bf16[2,16,32], index: 0, kind: input, shape index: {}]   ;;  %s962_s1 = inlined_call_operand.vmem [shape: bf16[2,16,32], index: 1, kind: input, shape index: {}]   ;;  %s963_s2 = inlined_call_operand.vmem [shape: bf16[2,16,32], index: 2, kind: input, shape index: {}]   ;;  %s964_s3 = inlined_call_operand.vmem [shape: bf16[2,16,32], index: 3, kind: input, shape index: {}]   ;;  %s965_s4 = inlined_call_operand.vmem [shape: f32[9,1,32], index: 4, kind: input, shape index: {}]   ;;  %s966_s5 = inlined_call_operand.vmem [shape: f32[1,32], index: 5, kind: input, shape index: {}]   ;;  %s967_s6 = inlined_call_operand.vmem [shape: bf16[32,32], index: 6, kind: input, shape index: {}]   ;;  %s968_s7 = inlined_call_operand.vmem [shape: f32[1,32], index: 7, kind: input, shape index: {}]   ;;  %s969_s8 = inlined_call_operand.vmem [shape: bf16[2,20,32], index: 8, kind: output, shape index: {}]  }
   0x1 LB: > { %s734_s28 = sadd.s32 4294967295, %s809_s27   ;;  %p738_p0 = scmp.ge.s32.totalorder %s809_s27, 1  ;;  %s809_s27 = sphi %s859_s27, %s18_s27  }
   0x2   : > { %p292_p1 = scmp.lt.s32.totalorder %s809_s27, 3 }
   0x4   : > { %p293_p2 = pnand %p738_p0, %p292_p1 }
   0x5   : > { %p341_p3 = scmp.lt.s32.totalorder (!%p293_p2), %s734_s28, 1 }
   0x6   : > { %296 = sbr.rel (%p293_p2) target bundleno = 251 (0xfb), region = 52 }
   0xb   : > { %v801_v0 = vld [vmem:[%s967_s6 + $0x8] sm:$0xff]   ;;  %v811_v1 = vmov 0.0   ;;  %v802_v2 = vld [vmem:[%s967_s6] sm:$0xff]   ;;  %vm812_vm0 = vmmov 0   ;;  %s975_s28 = smov (!%p341_p3, %s734_s28), 1  ;;  %vm620_vm1 = vcmask 254976  }
   0xc   : > { %781 = vmatprep.subr.bf16.mxu0 %v811_v1  ;;  %785 = vmatprep.mubr.msk.bf16.mxu0 %vm812_vm0, %v811_v1  ;;  %s773_s11 = sshll.u32 %s975_s28, 3  ;;  %s789_s12 = smul.u32 12, %s975_s28  ;;  %v748_v3 = vld [vmem:[%s965_s4] ss:$0 sm:$0xff]  ;;  %v750_v4 = vld [vmem:[%s965_s4 + $0x1] ss:$0 sm:$0xff] }
   0xd   : > { %782 = vmatpush3.bf16.msra.mxu0 %v801_v0  ;;  %v752_v5 = vld [vmem:[%s965_s4 + $0x2] ss:$0 sm:$0xff]  ;;  %s885_s21 = scalar_lea.vmem %s961_s0, %s773_s11  ;;  %s350_s24 = scalar_lea.vmem %s962_s1, %s773_s11  ;;  %v754_v6 = vld [vmem:[%s965_s4 + $0x3] ss:$0 sm:$0xff]  ;;  %v758_v7 = vld [vmem:[%s965_s4 + $0x5] ss:$0 sm:$0xff] }
   0xe   : > { %783 = vmatprep.subr.bf16.mxu0 %v811_v1  ;;  %s355_s10 = scalar_lea.vmem %s963_s2, %s773_s11  ;;  %s360_s15 = scalar_lea.vmem %s964_s3, %s773_s11  ;;  %v367_v8 = vld [vmem:[%s885_s21] sm:$0xf]  ;;  %v388_v10 = vld [vmem:[%s885_s21 + $0x4] sm:$0x1]  ;;  %vm482_vm2 = vcmask 1046528   ;;  %v813_v23 = vmov 0  }
   0xf   : > { %v377_v9 = vld [vmem:[%s350_s24] sm:$0xf]  ;;  %s907_s18 = scalar_lea.vmem %s969_s8, %s789_s12  ;;  %v368_v11 = vunpack.c.l.bf16 %v367_v8  ;;  %v389_v13 = vunpack.c.l.bf16 %v388_v10  ;;  %v422_v16 = vld [vmem:[%s355_s10 + $0x4] sm:$0x1]  ;;  %v760_v34 = vld [vmem:[%s965_s4 + $0x6] ss:$0 sm:$0xff] }
  0x10   : > { %v378_v12 = vunpack.c.l.bf16 %v377_v9  ;;  %v400_v14 = vld [vmem:[%s355_s10] sm:$0xf]  ;;  %v423_v19 = vunpack.c.l.bf16 %v422_v16  ;;  %v435_v21 = vld [vmem:[%s885_s21 + $0x4] sm:$0x3]  ;;  %621 = vst.msk [vmem:[%s907_s18 + $0x8] sm:$0x3] %vm620_vm1, %v813_v23 }
  0x11   : > { %784 = vmatpush3.bf16.msra.mxu0 %v802_v2  ;;  %v411_v15 = vld [vmem:[%s360_s15] sm:$0xf]  ;;  %v401_v17 = vunpack.c.l.bf16 %v400_v14  ;;  %v376_v24 = vmul.f32 %v748_v3, %v368_v11  ;;  %v398_v26 = vmul.f32 %v752_v5, %v368_v11  ;;  %v756_v27 = vld [vmem:[%s965_s4 + $0x4] ss:$0 sm:$0xff]  ;;  %v399_v30 = vmul.f32 %v752_v5, %v389_v13  ;;  %v762_v35 = vld [vmem:[%s965_s4 + $0x7] ss:$0 sm:$0xff] }
  0x12   : > { %v412_v18 = vunpack.c.l.bf16 %v411_v15  ;;  %v434_v20 = vld [vmem:[%s885_s21] sm:$0xc]  ;;  %v387_v25 = vmul.f32 %v750_v4, %v378_v12  ;;  %v449_v28 = vld [vmem:[%s350_s24 + $0x4] sm:$0x3]  ;;  %v433_v33 = vmul.f32 %v758_v7, %v423_v19  ;;  %v437_v37 = vunpack.c.l.bf16 %v435_v21  ;;  %v764_v40 = vld [vmem:[%s965_s4 + $0x8] ss:$0 sm:$0xff] }
  0x13   : > { %v448_v22 = vld [vmem:[%s350_s24] sm:$0xc]  ;;  %v462_v29 = vld [vmem:[%s885_s21 + $0x4] sm:$0x7]  ;;  %v410_v31 = vmul.f32 %v754_v6, %v401_v17  ;;  %v432_v32 = vmul.f32 %v758_v7, %v401_v17  ;;  %v436_v36 = vunpack.c.l.bf16 %v434_v20  ;;  %v451_v39 = vunpack.c.l.bf16 %v449_v28  ;;  %v765_v7 = vld [vmem:[%s966_s5] ss:$0 sm:$0xff] }
  0x14   : > { %v450_v38 = vunpack.c.l.bf16 %v448_v22  ;;  %v421_v41 = vmul.f32 %v756_v27, %v412_v18  ;;  %v463_v42 = vunpack.c.l.bf16 %v462_v29  ;;  %v447_v46 = vmul.f32 %v760_v34, %v437_v37  ;;  %v611_v13 = vld [vmem:[%s907_s18] sm:$0x7]  ;;  %v617_v15 = vld [vmem:[%s907_s18 + $0x4] sm:$0xc] }
  0x15   : > { %v476_v43 = vrot.slane %v410_v31, 7  ;;  %v483_v44 = vrot.slane %v432_v32, 1  ;;  %v446_v45 = vmul.f32 %v760_v34, %v436_v36  ;;  %v461_v48 = vmul.f32 %v762_v35, %v451_v39  ;;  %v766_v20 = vld [vmem:[%s968_s7] ss:$0 sm:$0xff] }
  0x16   : > { %v460_v47 = vmul.f32 %v762_v35, %v450_v38  ;;  %v472_v49 = vmul.f32 %v764_v40, %v436_v36  ;;  %v473_v50 = vmul.f32 %v764_v40, %v463_v42  ;;  %v474_v53 = vadd.f32 %v387_v25, %v376_v24 }
  0x17   : > { %v478_v51 = vadd.f32 %v476_v43, %v398_v26  ;;  %v479_v52 = vadd.f32 %v476_v43, %v399_v30  ;;  %v484_v54 = vrot.slane %v433_v33, 1  ;;  %v489_v56 = vadd.f32 %v461_v48, %v447_v46 }
  0x18   : > { %v488_v55 = vadd.f32 %v460_v47, %v446_v45  ;;  %vm499_vm3 = vcmask 1043456   ;;  %v509_v59 = vrot.slane %v472_v49, 5  ;;  %v510_v63 = vrot.slane %v473_v50, 5 }
  0x19   : > { %v492_v57 = vrot.slane %v478_v51, 1  ;;  %v493_v58 = vrot.slane %v479_v52, 1  ;;  %v485_v60 = vsel %vm482_vm2, %v483_v44, %v484_v54  ;;  %v501_v62 = vrot.slane %v489_v56, 4 }
  0x1a   : > { %v500_v61 = vrot.slane %v488_v55, 4  ;;  %v487_v0 = vadd.f32 %v485_v60, %v421_v41  ;;  %vm508_vm4 = vcmask 1042432   ;;  %vm547_vm5 = vcmask 261120  }
  0x1b   : > { %v494_v1 = vsel %vm482_vm2, %v492_v57, %v493_v58  ;;  %v511_v5 = vsel %vm508_vm4, %v509_v59, %v510_v63  ;;  %vm608_vm6 = vcmask 256000   ;;  %vm609_vm7 = vsmask.f32 2304 }
  0x1c   : > { %v496_v2 = vadd.f32 %v494_v1, %v474_v53  ;;  %v502_v3 = vsel %vm499_vm3, %v500_v61, %v501_v62  ;;  %vm931_vm8 = vmand %vm608_vm6, %vm609_vm7  ;;  %vm614_vm9 = vcmask 257026   ;;  %vm615_vm10 = vsmask.f32 7946 }
  0x1d   : > { %v504_v4 = vadd.f32 %v502_v3, %v487_v0  ;;  %v612_v14 = vsel %vm931_vm8, 0, %v611_v13  ;;  %vm940_vm11 = vmand %vm614_vm9, %vm615_vm10  ;;  %v592_v18 = vlaneseq }
  0x1e   : > { %613 = vst [vmem:[%s907_s18] sm:$0x7] %v612_v14  ;;  %v618_v17 = vsel %vm940_vm11, 0, %v617_v15 }
  0x1f   : > { %v505_v6 = vadd.f32 %v504_v4, %v496_v2  ;;  %619 = vst [vmem:[%s907_s18 + $0x4] sm:$0xc] %v618_v17  ;;  %v593_v19 = vshrl.u32 %v592_v18, 7 }
  0x21   : > { %v513_v8 = vadd.f32 %v511_v5, %v505_v6  ;;  %v598_v21 = vand.u32 3, %v593_v19 }
  0x23   : > { %v521_v9 = vadd.f32 %v765_v7, %v513_v8  ;;  %vm606_vm12 = vcmp.lt.s32.totalorder %v598_v21, 2 }
  0x25   : > { %v522_v10 = vmax.f32 %v521_v9, 0.0  ;;  %v637_v34 = vld [vmem:[%s907_s18] sm:$0xc] }
  0x26   : > { %v640_v36 = vld [vmem:[%s907_s18 + $0x4] sm:$0x7] }
  0x27   : > { %v523_v11 = vpack.c.bf16 %v522_v10, %v522_v10 }
  0x29   : > { %786 = vmatmul.mubr.msk.bf16.vlgmr.msra.gmra.mxu0 %vm547_vm5, %v523_v11 }
  0xe9   : > { %v585_v22 = vpop.f32.mrf.mxu0 }
  0xea   : > { %v586_v23 = vadd.f32 %v766_v20, %v585_v22 }
  0xeb   : > { %v787_v24 = vpop.f32.mrf.mxu0 }
  0xec   : > { %v591_v25 = vmax.f32 %v586_v23, 0.0 }
  0xed   : > { %v588_v26 = vpop.f32.mrf.mxu0 }
  0xee   : > { %v607_v27 = vsel %vm606_vm12, %v591_v25, 0.0 }
  0xef   : > { %v777_v28 = vpack.c.bf16 %v607_v27, %v607_v27  ;;  %v788_v29 = vpop.f32.mrf.mxu0 }
  0xf1   : > { %v627_v30 = vshrl.u32 %v777_v28, 16  ;;  %v630_v31 = vshll.u32 %v777_v28, 16 }
  0xf3   : > { %v629_v32 = vrot.slane %v627_v30, 5  ;;  %v632_v33 = vrot.slane %v630_v31, 6 }
  0xf5   : > { %v633_v35 = vor.u32 %v632_v33, %v629_v32 }
  0xf7   : > { %v634_v37 = vrot.slane %v633_v35, 4  ;;  %v638_v38 = vsel %vm940_vm11, %v633_v35, %v637_v34 }
  0xf8   : > { %639 = vst [vmem:[%s907_s18] sm:$0xc] %v638_v38 }
  0xf9   : > { %v641_v39 = vsel %vm931_vm8, %v634_v37, %v640_v36 }
  0xfa   : > { %642 = vst [vmem:[%s907_s18 + $0x4] sm:$0x7] %v641_v39 }
  0xfb PF: > { %s18_s27 = sadd.s32 1, %s809_s27  }
  0xfc   : > { %p15_p4 = scmp.ge.s32.totalorder %s18_s27, 4  }
  0xfe   :  { %17 = sbr.rel (!%p15_p4) target bundleno = 1 (0x1), region = 99 }

// kernel: fwd.12
= control target key start
LH: loop header
LB: loop body
LE: loop exit
PB: predicated region body
PF: predicated region fallthrough
CT: control target
= control target key end

     0   :  { %s636_s18 = smov 0   ;;  %s713_s0 = inlined_call_operand.vmem [shape: bf16[2,20,32], index: 0, kind: input, shape index: {}]   ;;  %s714_s1 = inlined_call_operand.vmem [shape: f32[9,1,32], index: 1, kind: input, shape index: {}]   ;;  %s715_s2 = inlined_call_operand.vmem [shape: f32[1,32], index: 2, kind: input, shape index: {}]   ;;  %s716_s3 = inlined_call_operand.vmem [shape: bf16[32,64], index: 3, kind: input, shape index: {}]   ;;  %s717_s4 = inlined_call_operand.vmem [shape: f32[1,64], index: 4, kind: input, shape index: {}]   ;;  %s718_s5 = inlined_call_operand.vmem [shape: f32[2,1,64], index: 5, kind: output, shape index: {}]  }
   0x1 LB: > { %s542_s19 = sadd.s32 4294967295, %s602_s18   ;;  %p546_p0 = scmp.ge.s32.totalorder %s602_s18, 1  ;;  %s602_s18 = sphi %s636_s18, %s15_s18  }
   0x2   : > { %p187_p1 = scmp.lt.s32.totalorder %s602_s18, 3 }
   0x4   : > { %p188_p2 = pnand %p546_p0, %p187_p1 }
   0x5   : > { %p213_p3 = scmp.lt.s32.totalorder (!%p188_p2), %s542_s19, 1 }
   0x6   : > { %191 = sbr.rel (%p188_p2) target bundleno = 260 (0x104), region = 40 }
   0xb   : > { %v594_v0 = vld [vmem:[%s716_s3 + $0x8] sm:$0xff]   ;;  %v604_v1 = vmov 0.0   ;;  %v595_v2 = vld [vmem:[%s716_s3] sm:$0xff]   ;;  %vm605_vm0 = vmmov 0   ;;  %s720_s19 = smov (!%p213_p3, %s542_s19), 1  ;;  %vm331_vm1 = vcmask 1046528  }
   0xc   : > { %575 = vmatprep.subr.bf16.mxu0 %v604_v1  ;;  %579 = vmatprep.mubr.msk.bf16.mxu0 %vm605_vm0, %v604_v1  ;;  %s583_s24 = smul.u32 12, %s720_s19  ;;  %v550_v3 = vld [vmem:[%s714_s1 + $0x1] ss:$0 sm:$0xff]  ;;  %v554_v4 = vld [vmem:[%s714_s1 + $0x3] ss:$0 sm:$0xff]  ;;  %vm339_vm2 = vcmask 1045504   ;;  %s220_s29 = scalar_lea.vmem %s718_s5, %s720_s19 }
   0xd   : > { %576 = vmatpush3.bf16.msra.mxu0 %v594_v0  ;;  %v552_v14 = vld [vmem:[%s714_s1 + $0x2] ss:$0 sm:$0xff]  ;;  %v558_v19 = vld [vmem:[%s714_s1 + $0x5] ss:$0 sm:$0xff]  ;;  %v562_v22 = vld [vmem:[%s714_s1 + $0x7] ss:$0 sm:$0xff] }
   0xe   : > { %577 = vmatprep.subr.bf16.mxu0 %v604_v1  ;;  %s656_s27 = scalar_lea.vmem %s713_s0, %s583_s24  ;;  %v556_v27 = vld [vmem:[%s714_s1 + $0x4] ss:$0 sm:$0xff]  ;;  %v560_v37 = vld [vmem:[%s714_s1 + $0x6] ss:$0 sm:$0xff]  ;;  %v548_v40 = vld [vmem:[%s714_s1] ss:$0 sm:$0xff] }
   0xf   : > { %v222_v5 = vld [vmem:[%s656_s27] sm:$0xff]   ;;  %v305_v21 = vld [vmem:[%s656_s27 + $0x8] sm:$0x1]  ;;  %vm377_vm3 = vcmask 1042432   ;;  %vm423_vm4 = vcmask 261120   ;;  %vm484_vm6 = vcmask 523264  }
  0x10   : > { %v232_v6 = vld [vmem:[%s656_s27 + $0x4] sm:$0x1]  ;;  %v244_v7 = vld [vmem:[%s656_s27] sm:$0xe]  ;;  %v223_v8 = vunpack.c.l.bf16 %v222_v5  ;;  %v295_v20 = vunpack.c.h.bf16 %v222_v5  ;;  %v306_v32 = vunpack.c.l.bf16 %v305_v21  ;;  %v317_v34 = vld [vmem:[%s656_s27 + $0x4] sm:$0xe] }
  0x11   : > { %578 = vmatpush3.bf16.msra.mxu0 %v595_v2  ;;  %v233_v9 = vunpack.c.l.bf16 %v232_v6  ;;  %v245_v10 = vunpack.c.l.bf16 %v244_v7  ;;  %v256_v11 = vld [vmem:[%s656_s27] sm:$0xc]  ;;  %v257_v12 = vld [vmem:[%s656_s27 + $0x4] sm:$0x3]  ;;  %v318_v45 = vunpack.c.l.bf16 %v317_v34  ;;  %v564_v51 = vld [vmem:[%s714_s1 + $0x8] ss:$0 sm:$0xff] }
  0x12   : > { %v270_v13 = vld [vmem:[%s656_s27 + $0x4] sm:$0x7]  ;;  %v258_v15 = vunpack.c.l.bf16 %v256_v11  ;;  %v259_v16 = vunpack.c.l.bf16 %v257_v12  ;;  %v282_v18 = vld [vmem:[%s656_s27] sm:$0x8]  ;;  %v242_v23 = vmul.f32 %v550_v3, %v223_v8  ;;  %v315_v33 = vmul.f32 %v562_v22, %v295_v20 }
  0x13   : > { %v271_v17 = vunpack.c.l.bf16 %v270_v13  ;;  %v243_v24 = vmul.f32 %v550_v3, %v233_v9  ;;  %v255_v28 = vmul.f32 %v552_v14, %v233_v9  ;;  %v283_v29 = vunpack.c.l.bf16 %v282_v18 }
  0x14   : > { %v268_v25 = vmul.f32 %v554_v4, %v258_v15  ;;  %v269_v26 = vmul.f32 %v554_v4, %v259_v16  ;;  %v254_v31 = vmul.f32 %v552_v14, %v245_v10  ;;  %v280_v35 = vmul.f32 %v556_v27, %v258_v15  ;;  %v565_v15 = vld [vmem:[%s715_s2] ss:$0 sm:$0xff] }
  0x15   : > { %v293_v30 = vmul.f32 %v558_v19, %v271_v17  ;;  %v292_v36 = vmul.f32 %v558_v19, %v283_v29  ;;  %v316_v41 = vmul.f32 %v562_v22, %v306_v32  ;;  %v332_v42 = vrot.slane %v242_v23, 1  ;;  %v566_v22 = vld [vmem:[%s717_s4] ss:$0 sm:$0xff] }
  0x16   : > { %v340_v38 = vrot.slane %v268_v25, 2  ;;  %v341_v39 = vrot.slane %v269_v26, 2  ;;  %v333_v43 = vrot.slane %v243_v24, 1  ;;  %v281_v49 = vmul.f32 %v556_v27, %v271_v17 }
  0x17   : > { %v350_v44 = vrot.slane %v293_v30, 1  ;;  %v349_v48 = vrot.slane %v292_v36, 1  ;;  %v304_v50 = vmul.f32 %v560_v37, %v295_v20  ;;  %v358_v53 = vrot.slane %v315_v33, 1 }
  0x18   : > { %v342_v46 = vsel %vm339_vm2, %v340_v38, %v341_v39  ;;  %v346_v47 = vadd.f32 %v341_v39, %v255_v28  ;;  %v231_v54 = vmul.f32 %v548_v40, %v223_v8  ;;  %v359_v56 = vrot.slane %v316_v41, 1 }
  0x19   : > { %v345_v52 = vadd.f32 %v342_v46, %v254_v31  ;;  %v351_v55 = vsel %vm331_vm1, %v349_v48, %v350_v44  ;;  %v334_v57 = vsel %vm331_vm1, %v332_v42, %v333_v43  ;;  %v327_v60 = vmul.f32 %v564_v51, %v318_v45 }
  0x1a   : > { %v366_v59 = vrot.slane %v346_v47, 2  ;;  %v360_v61 = vsel %vm331_vm1, %v358_v53, %v359_v56  ;;  %v328_v62 = vmul.f32 %v564_v51, %v306_v32  ;;  %v354_v63 = vadd.f32 %v351_v55, %v280_v35 }
  0x1b   : > { %v365_v58 = vrot.slane %v345_v52, 2  ;;  %v355_v0 = vadd.f32 %v350_v44, %v281_v49  ;;  %v362_v1 = vadd.f32 %v360_v61, %v304_v50  ;;  %v336_v2 = vadd.f32 %v334_v57, %v231_v54 }
  0x1c   : > { %v385_v7 = vrot.slane %v327_v60, 2  ;;  %v386_v8 = vrot.slane %v328_v62, 2  ;;  %v468_v20 = vlaneseq  ;;  %vm493_vm7 = vcmask 516096  }
  0x1d   : > { %v367_v3 = vsel %vm339_vm2, %v365_v58, %v366_v59  ;;  %v371_v4 = vrot.slane %v362_v1, 3 }
  0x1e   : > { %v369_v9 = vadd.f32 %v367_v3, %v336_v2  ;;  %v387_v13 = vsel %vm339_vm2, %v385_v7, %v386_v8  ;;  %v469_v21 = vshrl.u32 %v468_v20, 7 }
  0x1f   : > { %v373_v5 = vadd.f32 %v371_v4, %v354_v63  ;;  %v374_v6 = vadd.f32 %v371_v4, %v355_v0 }
  0x20   : > { %v474_v23 = vand.u32 3, %v469_v21 }
  0x21   : > { %v378_v10 = vrot.slane %v373_v5, 5  ;;  %v379_v11 = vrot.slane %v374_v6, 5 }
  0x22   : > { %vm482_vm5 = vcmp.lt.s32.totalorder %v474_v23, 2 }
  0x23   : > { %v380_v12 = vsel %vm377_vm3, %v378_v10, %v379_v11 }
  0x24   : > { %v382_v14 = vadd.f32 %v380_v12, %v369_v9 }
  0x26   : > { %v389_v16 = vadd.f32 %v387_v13, %v382_v14 }
  0x28   : > { %v397_v17 = vadd.f32 %v565_v15, %v389_v16 }
  0x2a   : > { %v398_v18 = vmax.f32 %v397_v17, 0.0 }
  0x2c   : > { %v399_v19 = vpack.c.bf16 %v398_v18, %v398_v18 }
  0x2e   : > { %580 = vmatmul.mubr.msk.bf16.vlgmr.msra.gmra.mxu0 %vm423_vm4, %v399_v19 }
  0xee   : > { %v461_v24 = vpop.f32.mrf.mxu0 }
  0xef   : > { %v462_v25 = vadd.f32 %v566_v22, %v461_v24 }
  0xf0   : > { %v581_v26 = vpop.f32.mrf.mxu0 }
  0xf1   : > { %v467_v27 = vmax.f32 %v462_v25, 0.0 }
  0xf2   : > { %v464_v28 = vpop.f32.mrf.mxu0 }
  0xf3   : > { %v483_v29 = vsel %vm482_vm5, %v467_v27, 0.0 }
  0xf4   : > { %v485_v30 = vsel %vm484_vm6, %v483_v29, 0.0  ;;  %v582_v31 = vpop.f32.mrf.mxu0 }
  0xf5   : > { %v486_v32 = vrot.slane %v485_v30, 4 }
  0xf7   : > { %v487_v33 = vadd.f32 %v486_v32, %v485_v30 }
  0xf9   : > { %v488_v34 = vrot.slane %v487_v33, 2 }
  0xfb   : > { %v489_v35 = vadd.f32 %v488_v34, %v487_v33 }
  0xfd   : > { %v490_v36 = vrot.slane %v489_v35, 1 }
  0xff   : > { %v491_v37 = vadd.f32 %v490_v36, %v489_v35 }
 0x101   : > { %v492_v38 = vmul.f32 0.25, %v491_v37 }
 0x103   : > { %494 = vst.msk [vmem:[%s220_s29] sm:$0x1] %vm493_vm7, %v492_v38 }
 0x104 PF: > { %s15_s18 = sadd.s32 1, %s602_s18  }
 0x105   : > { %p12_p4 = scmp.ge.s32.totalorder %s15_s18, 4  }
 0x107   :  { %14 = sbr.rel (!%p12_p4) target bundleno = 1 (0x1), region = 78 }

// kernel: fwd.13
= control target key start
LH: loop header
LB: loop body
LE: loop exit
PB: predicated region body
PF: predicated region fallthrough
CT: control target
= control target key end

     0   :  { %v168_v1 = vmov 0.0   ;;  %vm169_vm0 = vmmov 0   ;;  %s212_s0 = inlined_call_operand.vmem [shape: bf16[2,64], index: 0, kind: input, shape index: {}]   ;;  %s213_s1 = inlined_call_operand.vmem [shape: bf16[64,10], index: 1, kind: input, shape index: {}]   ;;  %s214_s2 = inlined_call_operand.vmem [shape: f32[1,10], index: 2, kind: input, shape index: {}]   ;;  %s215_s3 = inlined_call_operand.hbm [shape: f32[2,10], index: 3, kind: output, shape index: {}]  }
   0x1   :  { %v142_v0 = vld [vmem:[%s213_s1 + $0x18] sm:$0xff]   ;;  %127 = vmatprep.subr.bf16.mxu0 %v168_v1  ;;  %v143_v2 = vld [vmem:[%s213_s1 + $0x10] sm:$0xff]   ;;  %135 = vmatprep.mubr.msk.bf16.mxu0 %vm169_vm0, %v168_v1 }
   0x2   :  { %128 = vmatpush3.bf16.msra.mxu0 %v142_v0 }
   0x3   :  { %129 = vmatprep.subr.bf16.mxu0 %v168_v1 }
   0x4   :  { %8 = vsyncpa [#allocation3], 0  ;;  %v144_v3 = vld [vmem:[%s213_s1 + $0x8] sm:$0xff]   ;;  %v145_v4 = vld [vmem:[%s213_s1] sm:$0xff]   ;;  %vm56_vm1 = vcmask 523264   ;;  %s170_s24 = smov [#allocation2]  }
   0x5   :  { %v16_v5 = vld [vmem:[%s212_s0] sm:$0x1]  ;;  %s108_s25 = sshll.u32 %s170_s24, 4  ;;  %vm100_vm2 = vcmask 74752   ;;  %s109_s25 = int_to_ptr.vmem [resolvable:$true] %s108_s25 }
   0x6   :  { %130 = vmatpush3.bf16.msra.mxu0 %v143_v2  ;;  %v116_v6 = vld [vmem:[%s214_s2] ss:$0 sm:$0xff]  ;;  %s146_s1 = scalar_lea.vmem %s109_s25, 32  ;;  %p151_p1 = scmp.lt.s32.totalorder %s109_s25, %s109_s25 }
   0x7   :  { %131 = vmatprep.subr.bf16.mxu0 %v168_v1  ;;  %p147_p0 = scmp.ne.s32.totalorder %s109_s25, %s146_s1  ;;  %p152_p2 = scmp.lt.s32.totalorder %s146_s1, %s146_s1 }
   0x9   :  { %p153_p3 = por %p152_p2, %p151_p1 }
   0xa   :  { %132 = vmatpush3.bf16.msra.mxu0 %v144_v3 }
   0xb   :  { %133 = vmatprep.subr.bf16.mxu0 %v168_v1  ;;  %p154_p4 = pnand %p153_p3, %p147_p0 }
   0xe   :  { %134 = vmatpush3.bf16.msra.mxu0 %v145_v4 }
  0x11   :  { %136 = vmatmul.mubr.msk.bf16.vlgmr.msra.gmra.mxu0 %vm56_vm1, %v16_v5 }
  0xd1   :  { %v94_v7 = vpop.f32.mrf.mxu0 }
  0xd2   :  { %v95_v8 = vadd.f32 %v116_v6, %v94_v7 }
  0xd3   :  { %v137_v9 = vpop.f32.mrf.mxu0 }
  0xd4   :  { %101 = vst.msk [vmem:[#allocation2] sm:$0x3] %vm100_vm2, %v95_v8 }
  0xd5   :  { %v97_v10 = vpop.f32.mrf.mxu0 }
  0xd6   :  { %157 = shalt.err (!%p154_p4)
}
  0xd7   :  { %111 = dma.vmem_to_hbm [thread:$0]  %s109_s25, 32, %s215_s3, [#allocation3]   ;;  %v138_v11 = vpop.f32.mrf.mxu0 }
  0xd8   :  { %166 = dma.done.wait [#allocation3], 32  }
  0xd9   :  { %167 = vsyncadd [#allocation3], 4294967264 }
  0xda   :  { %115 = vsyncpa [#allocation3], 1 }

</bundles_post_ra>
